<compile_context>
chip_gen: v7x
topology: tpu7x:2x2x1
jax: 0.10.0
libtpu: 0.0.40
codegen_flags: <defaults>
</compile_context>

<pallas_src>
import functools

import jax
import jax.numpy as jnp
from jax.experimental import pallas as pl
from jax.experimental.pallas import tpu as pltpu


def _round_up(v, m):
    return ((v + m - 1) // m) * m


def _pick_tn(Np, cap=1024):
    """Largest lane-aligned tile <= cap that divides Np; prefer >= 2 tiles so
    the parallel N axis can be split across v7x's two TensorCores."""
    best = Np
    tn = 128
    while tn <= min(cap, Np):
        if Np % tn == 0:
            best = tn
        tn += 128
    if best == Np and Np >= 256 and (Np // 2) % 128 == 0:
        best = Np // 2
    return best


# ---------------------------------------------------------------------------
# Pallas kernel: one full-K MXU pass per (Mp, tn) output tile.
#   y_tile = relu?( x(Mp,K)bf16 @ W(K,tn)bf16  [f32 accumulate]  + b(1,tn)f32 )
# No reduction grid axis -> no accumulator scratch, single output write.
# ---------------------------------------------------------------------------
def _linear_kernel(x_ref, w_ref, b_ref, o_ref, *, relu):
    acc = jnp.dot(x_ref[...], w_ref[...], preferred_element_type=jnp.float32)
    r = acc + b_ref[...]
    if relu:
        r = jnp.maximum(r, 0.0)
    o_ref[...] = r.astype(o_ref.dtype)


def pallas_linear(x, w_bf16, b_f32_2d, *, relu=False):
    """y = relu?(x @ W + b).

    x:        (M, K) float32/bfloat16 activations; K must be 128-aligned
              (true for fc7/fc8: 2048 / 4096).
    w_bf16:   (K, Np) bfloat16 weights, Np a multiple of 128 (pre-padded).
    b_f32_2d: (1, Np) float32 bias (zero-padded).
    Returns (M, Np) float32; caller slices off any padded columns.
    """
    M, K = x.shape
    K2, Np = w_bf16.shape
    assert K == K2 and K % 128 == 0 and Np % 128 == 0
    assert b_f32_2d.shape == (1, Np)

    Mp = _round_up(M, 8)
    # Only the tiny activation tile is padded/cast per call (few KiB).
    xp = jnp.zeros((Mp, K), jnp.bfloat16).at[:M, :].set(x.astype(jnp.bfloat16))

    tn = _pick_tn(Np)

    out = pl.pallas_call(
        functools.partial(_linear_kernel, relu=relu),
        out_shape=jax.ShapeDtypeStruct((Mp, Np), jnp.float32),
        grid_spec=pltpu.PrefetchScalarGridSpec(
            num_scalar_prefetch=0,
            grid=(Np // tn,),
            in_specs=[
                pl.BlockSpec((Mp, K), lambda j: (0, 0)),   # x resident, full K
                pl.BlockSpec((K, tn), lambda j: (0, j)),   # weight N-stripe
                pl.BlockSpec((1, tn), lambda j: (0, j)),   # bias N-stripe
            ],
            out_specs=pl.BlockSpec((Mp, tn), lambda j: (0, j)),
        ),
        compiler_params=pltpu.CompilerParams(
            dimension_semantics=("parallel",),
            vmem_limit_bytes=32 * 1024 * 1024,
        ),
    )(xp, w_bf16, b_f32_2d)
    return out[:M, :]


# ---------------------------------------------------------------------------
# Parameters: PyTorch-style f32 init, then a ONE-TIME prep that pads N to the
# lane multiple and casts weights to bf16 (bias stays f32).
# ---------------------------------------------------------------------------
def _prep_layer(w_f32, b_f32):
    K, N = w_f32.shape
    Np = _round_up(N, 128)
    wp = jnp.zeros((K, Np), jnp.bfloat16).at[:, :N].set(w_f32.astype(jnp.bfloat16))
    bp = jnp.zeros((1, Np), jnp.float32).at[0, :N].set(b_f32)
    return {"w": wp, "b": bp, "n": N}


def init_params(key, n_out=256):
    k7w, k7b, k8w, k8b = jax.random.split(key, 4)
    # nn.Linear default init: U(-1/sqrt(fan_in), 1/sqrt(fan_in))
    lim7 = 1.0 / jnp.sqrt(2048.0)
    lim8 = 1.0 / jnp.sqrt(4096.0)
    fc7_w = jax.random.uniform(k7w, (2048, 4096), jnp.float32, -lim7, lim7)
    fc7_b = jax.random.uniform(k7b, (4096,), jnp.float32, -lim7, lim7)
    fc8_w = jax.random.uniform(k8w, (4096, n_out), jnp.float32, -lim8, lim8)
    fc8_b = jax.random.uniform(k8b, (n_out,), jnp.float32, -lim8, lim8)
    return {"fc7": _prep_layer(fc7_w, fc7_b),
            "fc8": _prep_layer(fc8_w, fc8_b)}


# ---------------------------------------------------------------------------
# Forward: front (stub) -> fc7 + ReLU -> fc8 + ReLU.
# ---------------------------------------------------------------------------
def appearance_forward(params, x):
    # TODO(synk): appr_front (self.front) is an external module not defined in
    # the spec; it is stubbed as identity, so x is the (B, 2048) feature.
    h = x.reshape(x.shape[0], -1)

    fc7 = params["fc7"]
    h = pallas_linear(h, fc7["w"], fc7["b"], relu=True)[:, :fc7["n"]]

    fc8 = params["fc8"]
    h = pallas_linear(h, fc8["w"], fc8["b"], relu=True)[:, :fc8["n"]]
    return h


if __name__ == "__main__":
    key = jax.random.PRNGKey(0)
    kp, kx = jax.random.split(key, 2)

    n_out = 256
    params = init_params(kp, n_out=n_out)

    # Small batch of (stubbed) ResNet features, matching fc7.in_features=2048.
    x = jax.random.normal(kx, (2, 2048), jnp.float32)

    out = appearance_forward(params, x)
    out = jax.block_until_ready(out)

    assert out.shape == (2, n_out), out.shape
    assert bool(jnp.all(jnp.isfinite(out)))
    assert bool(jnp.all(out >= 0.0))  # final ReLU
    print("KERNEL_OK")
</pallas_src>

<mosaic_0001>
module attributes {stable_mosaic.version = 11 : i64} {
  func.func @_linear_kernel(%arg0: i32, %arg1: memref<8x2048xbf16, #tpu.memory_space<vmem>>, %arg2: memref<2048x1024xbf16, #tpu.memory_space<vmem>>, %arg3: memref<1x1024xf32, #tpu.memory_space<vmem>>, %arg4: memref<8x1024xf32, #tpu.memory_space<vmem>>) attributes {dimension_semantics = [#tpu.dimension_semantics<parallel>], iteration_bounds = array<i64: 4>, scalar_prefetch = 0 : i64, scratch_operands = 0 : i64, tpu.core_type = #tpu.core_type<tc>, window_params = [{pipeline_mode = #tpu.pipeline_mode<synchronous>, transform_indices = @transform_0, window_bounds = array<i64: 8, 2048>}, {transform_indices = @transform_1, window_bounds = array<i64: 2048, 1024>}, {transform_indices = @transform_2, window_bounds = array<i64: 1, 1024>}, {transform_indices = @transform_3, window_bounds = array<i64: 8, 1024>}]} {
    %c0 = arith.constant 0 : index
    %c0_0 = arith.constant 0 : index
    %0 = vector.load %arg1[%c0, %c0_0] : memref<8x2048xbf16, #tpu.memory_space<vmem>>, vector<8x2048xbf16>
    %c0_1 = arith.constant 0 : index
    %c0_2 = arith.constant 0 : index
    %1 = vector.load %arg2[%c0_1, %c0_2] : memref<2048x1024xbf16, #tpu.memory_space<vmem>>, vector<2048x1024xbf16>
    %cst = arith.constant dense<0.000000e+00> : vector<8x1024xf32>
    %2 = tpu.matmul %0, %1, %cst {dimension_numbers = #tpu.dot_dimension_numbers<[1], [0], [0], [1], [0, 0, 1, 1], [], []>} : vector<8x2048xbf16>, vector<2048x1024xbf16>, vector<8x1024xf32> -> vector<8x1024xf32>
    %c0_3 = arith.constant 0 : index
    %c0_4 = arith.constant 0 : index
    %3 = vector.load %arg3[%c0_3, %c0_4] : memref<1x1024xf32, #tpu.memory_space<vmem>>, vector<1x1024xf32>
    %4 = vector.broadcast %3 : vector<1x1024xf32> to vector<8x1024xf32>
    %5 = arith.addf %2, %4 : vector<8x1024xf32>
    %cst_5 = arith.constant 0.000000e+00 : f32
    %6 = vector.broadcast %cst_5 : f32 to vector<8x1024xf32>
    %7 = arith.maximumf %5, %6 : vector<8x1024xf32>
    %c0_6 = arith.constant 0 : index
    %c0_7 = arith.constant 0 : index
    %8 = vector.load %arg4[%c0_6, %c0_7] : memref<8x1024xf32, #tpu.memory_space<vmem>>, vector<8x1024xf32>
    tpu.vector_store %arg4[%c0_6, %c0_7], %7 {strides = array<i32>} : memref<8x1024xf32, #tpu.memory_space<vmem>>, vector<8x1024xf32>,
    return
  }
  func.func @transform_0(%arg0: i32) -> (i32, i32) {
    %c0_i32 = arith.constant 0 : i32
    %c0_i32_0 = arith.constant 0 : i32
    %c0_i32_1 = arith.constant 0 : i32
    return %c0_i32, %c0_i32_0 : i32, i32
  }
  func.func @transform_1(%arg0: i32) -> (i32, i32) {
    %c0_i32 = arith.constant 0 : i32
    %c0_i32_0 = arith.constant 0 : i32
    return %c0_i32, %arg0 : i32, i32
  }
  func.func @transform_2(%arg0: i32) -> (i32, i32) {
    %c0_i32 = arith.constant 0 : i32
    %c0_i32_0 = arith.constant 0 : i32
    return %c0_i32, %arg0 : i32, i32
  }
  func.func @transform_3(%arg0: i32) -> (i32, i32) {
    %c0_i32 = arith.constant 0 : i32
    %c0_i32_0 = arith.constant 0 : i32
    return %c0_i32, %arg0 : i32, i32
  }
}

</mosaic_0001>

<bundles_post_ra>
// kernel: tpu_custom_call.1
= control target key start
LH: loop header
LB: loop body
LE: loop exit
PB: predicated region body
PF: predicated region fallthrough
CT: control target
= control target key end

     0   :  { %8 = vsyncpa [#allocation3], 0  ;;  %s10817_s0 = inlined_call_operand.hbm [shape: bf16[8,2048], index: 0, kind: input, shape index: {}]   ;;  %s10818_s1 = inlined_call_operand.hbm [shape: bf16[2048,4096], index: 1, kind: input, shape index: {}]   ;;  %s10819_s2 = inlined_call_operand.hbm [shape: f32[1,4096], index: 2, kind: input, shape index: {}]   ;;  %s10820_s3 = inlined_call_operand.hbm [shape: f32[8,4096], index: 3, kind: output, shape index: {}]  }
   0x1   :  { %9 = vsyncpa [#allocation6], 0 }
   0x2   :  { %11 = vsyncpa [#allocation6 + $0x1], 0 }
   0x3   :  { %12 = vsyncpa [#allocation4], 0 }
   0x4   :  { %14 = vsyncpa [#allocation4 + $0x1], 0  ;;  %s9387_s12 = smov 0   ;;  %s9389_s13 = smov 0  }
   0x5   :  { %s9391_s14 = smov 0   ;;  %s9393_s15 = smov 0  }
   0x6 LB: > { %s9408_s16 = sadd.s32 1, %s9358_s15   ;;  %s48_s17 = sadd.s32 1, %s9354_s14  ;;  %s9358_s15 = sphi %s9393_s15, %s10846_s15   ;;  %s9354_s14 = sphi %s9391_s14, %s10845_s14   ;;  %s9350_s13 = sphi %s9389_s13, %s10844_s13   ;;  %s9346_s12 = sphi %s9387_s12, %s10843_s12  }
   0x7   : > { %s45_s18 = ssub.s32 %s9358_s15, %s9408_s16  ;;  %p55_p0 = scmp.ne.s32.totalorder %s9354_s14, %s9350_s13 }
   0x8   : > { %p46_p1 = scmp.eq.s32.totalorder %s45_s18, 0  ;;  %p56_p2 = scmp.eq.s32.totalorder %s9358_s15, 0 }
   0x9   : > { %p9144_p3 = scmp.lt.s32.totalorder %s9358_s15, 4  ;;  %s148_s20 = sand.u32 1, %s9358_s15  }
   0xa   : > { %s9418_s19 = scalar_select %p46_p1, %s9354_s14, %s48_s17  }
   0xb   : > { %p57_p4 = por %p56_p2, %p55_p0  ;;  %s150_s21 = sand.u32 1, %s9354_s14  }
   0xc   : > { %s7939_s22 = sshll.u32 %s150_s21, 13  ;;  %s8995_s23 = sshll.u32 %s9358_s15, 9 }
   0xd   : > { %s9431_s26 = scalar_lea.hbm %s10818_s1, %s8995_s23  ;;  %s152_s27 = scalar_lea.vmem [#allocation5], %s7939_s22 }
   0xe   : > { %s159_s28 = sshll.u32 %s152_s27, 4  ;;  %p9433_p5 = pnand %p9144_p3, %p57_p4  ;;  %s9437_s28 = int_to_ptr.vmem [resolvable:$true] %s159_s28 }
   0xf   : > { %s9439_s30 = scalar_lea.sflag [#allocation6], %s148_s20  ;;  %s9200_s4 = scalar_lea.hbm %s9431_s26, 131072 }
  0x10   : > { %s10828_s29 = scalar_select %p9433_p5, 1, 0 }
  0x11   : > { %p9201_p6 = scmp.ne.s32.totalorder %s9431_s26, %s9200_s4  ;;  %p10822_p7 = pneg %p9433_p5 }
  0x12   : > { %s9205_s7 = scalar_lea.hbm %s10818_s1, 524288  ;;  %p9206_p10 = scmp.lt.u32.totalorder %s9431_s26, %s10818_s1 }
  0x13   : > { %p9203_p8 = pnand %p10822_p7, %p9201_p6  ;;  %p9207_p11 = scmp.lt.u32.totalorder %s9205_s7, %s9200_s4 }
  0x14   : > { %p9209_p13 = scmp.lt.u32.totalorder %s9200_s4, %s9431_s26 }
  0x15   : > { %p9204_p9 = pneg %p9203_p8  ;;  %p9208_p12 = por %p9207_p11, %p9206_p10 }
  0x17   : > { %p9210_p1 = por %p9209_p13, %p9208_p12 }
  0x19   : > { %p9211_p2 = pnand %p9210_p1, %p9204_p9 }
  0x1b   : > { %9214 = shalt.err (!%p9211_p2)
}
  0x1c   : > { %s9215_s10 = scalar_lea.vmem %s9437_s28, 131072  ;;  %s9360_s11 = smov [#allocation5]  }
  0x1d   : > { %p9216_p3 = scmp.ne.s32.totalorder %s9437_s28, %s9215_s10  ;;  %s9220_s17 = sshll.u32 %s9360_s11, 4  ;;  %s9221_s17 = int_to_ptr.vmem [resolvable:$false] %s9220_s17 }
  0x1e   : > { %s9222_s18 = scalar_lea.vmem %s9221_s17, 262144  ;;  %p9223_p8 = scmp.lt.s32.totalorder %s9437_s28, %s9221_s17 }
  0x1f   : > { %p9218_p4 = pnand %p9216_p3, %p10822_p7  ;;  %p9224_p10 = scmp.lt.s32.totalorder %s9222_s18, %s9215_s10 }
  0x21   : > { %p9219_p6 = pneg %p9218_p4  ;;  %p9225_p11 = por %p9224_p10, %p9223_p8 }
  0x23   : > { %p9226_p12 = pnand %p9225_p11, %p9219_p6 }
  0x25   : > { %9229 = shalt.err (!%p9226_p12)
}
  0x26   : > { %s9361_s20 = smov 2048   ;;  %s9362_s22 = smov 512  }
  0x27   : > { %s9363_s23 = smov 32   ;;  %s9468_s24 = sadd.s32 4294967295, %s9358_s15  }
  0x28   : > { %9135 = dma.hbm_to_vmem [thread:$0]  (!%p9433_p5), %s9431_s26, 131072, %s9437_s28, %s9439_s30, %s9361_s20, %s9362_s22, %s9363_s23  }
  0x29   : > { %s7935_s25 = sadd.s32 4294967294, %s9358_s15   ;;  %p61_p9 = scmp.ne.s32.totalorder %s9350_s13, %s9346_s12 }
  0x2a   : > { %p10821_p13 = scmp.eq.s32.totalorder %s9468_s24, 0  ;;  %p111_p1 = scmp.eq.s32.totalorder %s9468_s24, 3 }
  0x2b   : > { %p117_p2 = scmp.eq.s32.totalorder %s7935_s25, 3  ;;  %p7936_p3 = scmp.ge.s32.totalorder %s9358_s15, 1 }
  0x2c   : > { %p9478_p4 = por %p10821_p13, %p61_p9  ;;  %p9485_p6 = por %p111_p1, %p55_p0 }
  0x2d   : > { %p9489_p8 = por %p117_p2, %p61_p9  ;;  %p124_p10 = scmp.lt.s32.totalorder %s9358_s15, 5 }
  0x2e   : > { %s10829_s27 = scalar_select %p9478_p4, 1, 0 }
  0x2f   : > { %s10830_s26 = scalar_select %p9485_p6, 1, 0 }
  0x30   : > { %s10831_s28 = scalar_select %p9489_p8, 1, 0 }
  0x31   : > { %p9494_p11 = pnand %p7936_p3, %p124_p10  ;;  %s9364_s5 = smov [#allocation2]  }
  0x32   : > { %s137_s6 = sshll.u32 %s9364_s5, 4  ;;  %s7942_s7 = sshll.u32 %s150_s21, 3  ;;  %s138_s6 = int_to_ptr.vmem [resolvable:$true] %s137_s6 }
  0x33   : > { %s10832_s4 = scalar_select %p9494_p11, 1, 0 }
  0x34   : > { %p9128_p12 = pneg %p9494_p11  ;;  %s8996_s8 = sshll.u32 %s9358_s15, 7 }
  0x35   : > { %s173_s9 = scalar_lea.vmem [#allocation7], %s7942_s7  ;;  %s9512_s20 = scalar_lea.hbm %s10819_s2, %s8996_s8 }
  0x36   : > { %s181_s10 = sshll.u32 %s173_s9, 4  ;;  %p9505_p0 = pnand %p9128_p12, %p10821_p13  ;;  %s9514_s10 = int_to_ptr.vmem [resolvable:$true] %s181_s10 }
  0x37   : > { %s9230_s23 = scalar_lea.hbm %s10817_s0, 1024 }
  0x38   : > { %p9231_p9 = scmp.ne.s32.totalorder %s10817_s0, %s9230_s23  ;;  %p9232_p1 = pneg %p9505_p0 }
  0x39   : > { %p9237_p10 = scmp.lt.u32.totalorder %s9230_s23, %s10817_s0 }
  0x3a   : > { %p9233_p2 = pnand %p9232_p1, %p9231_p9 }
  0x3c   : > { %p9234_p3 = pneg %p9233_p2 }
  0x3e   : > { %p9239_p12 = pnand %p9237_p10, %p9234_p3 }
  0x40   : > { %9242 = shalt.err (!%p9239_p12)
}
  0x41   : > { %s9243_s8 = scalar_lea.vmem %s138_s6, 1024  ;;  %p9251_p6 = scmp.lt.s32.totalorder %s138_s6, %s138_s6 }
  0x42   : > { %p9244_p13 = scmp.ne.s32.totalorder %s138_s6, %s9243_s8  ;;  %p9252_p4 = scmp.lt.s32.totalorder %s9243_s8, %s9243_s8 }
  0x44   : > { %p9246_p7 = pnand %p9244_p13, %p9232_p1  ;;  %p9253_p11 = por %p9252_p4, %p9251_p6 }
  0x46   : > { %p9247_p8 = pneg %p9246_p7 }
  0x48   : > { %p9254_p5 = pnand %p9253_p11, %p9247_p8 }
  0x4a   : > { %9257 = shalt.err (!%p9254_p5)
}
  0x4b   : > { %9131 = dma.hbm_to_vmem [thread:$0]  (!%p9505_p0), %s10817_s0, 1024, %s138_s6, [#allocation3]  }
  0x4c   : > { %s9258_s21 = scalar_lea.hbm %s9512_s20, 128  ;;  %p10834_p13 = scmp.ne.s32.totalorder %s10828_s29, 0 }
  0x4d   : > { %p9259_p9 = scmp.ne.s32.totalorder %s9512_s20, %s9258_s21  ;;  %s9263_s25 = scalar_lea.hbm %s10819_s2, 512 }
  0x4e   : > { %p10835_p7 = pneg %p10834_p13  ;;  %p9264_p5 = scmp.lt.u32.totalorder %s9512_s20, %s10819_s2 }
  0x4f   : > { %p9265_p4 = scmp.lt.u32.totalorder %s9263_s25, %s9258_s21  ;;  %p9267_p8 = scmp.lt.u32.totalorder %s9258_s21, %s9512_s20 }
  0x50   : > { %p9261_p1 = pnand %p9259_p9, %p10835_p7 }
  0x51   : > { %p9266_p6 = por %p9265_p4, %p9264_p5 }
  0x52   : > { %p9262_p2 = pneg %p9261_p1 }
  0x53   : > { %p9268_p11 = por %p9267_p8, %p9266_p6 }
  0x55   : > { %p9269_p3 = pnand %p9268_p11, %p9262_p2 }
  0x57   : > { %9272 = shalt.err (!%p9269_p3)
}
  0x58   : > { %s9273_s6 = scalar_lea.vmem %s9514_s10, 128  ;;  %p10836_p10 = pmov %p10835_p7 }
  0x59   : > { %p9274_p0 = scmp.ne.s32.totalorder %s9514_s10, %s9273_s6  ;;  %s9365_s7 = smov [#allocation7]  }
  0x5a   : > { %s9278_s9 = sshll.u32 %s9365_s7, 4  ;;  %s9279_s9 = int_to_ptr.vmem [resolvable:$false] %s9278_s9 }
  0x5b   : > { %p9276_p12 = pnand %p9274_p0, %p10836_p10  ;;  %s9280_s8 = scalar_lea.vmem %s9279_s9, 256 }
  0x5c   : > { %p9281_p7 = scmp.lt.s32.totalorder %s9514_s10, %s9279_s9  ;;  %p9282_p1 = scmp.lt.s32.totalorder %s9280_s8, %s9273_s6 }
  0x5d   : > { %p9277_p9 = pneg %p9276_p12 }
  0x5e   : > { %p9283_p5 = por %p9282_p1, %p9281_p7 }
  0x60   : > { %p9284_p4 = pnand %p9283_p5, %p9277_p9 }
  0x62   : > { %9287 = shalt.err (!%p9284_p4)
}
  0x63   : > { %9138 = dma.hbm_to_vmem [thread:$0]  (!%p10834_p13), %s9512_s20, 128, %s9514_s10, %s9439_s30  }
  0x64   : > { %p10837_p2 = scmp.ne.s32.totalorder %s10832_s4, 0 }
  0x65   : > { %p10838_p6 = scmp.eq.s32.totalorder (!%p10837_p2), %s9468_s24, 0 }
  0x66   : > { %190 = sbr.rel (%p10837_p2) target bundleno = 1374 (0x55e), region = 32 }
  0x6d   : > { %9333 = dma.done.wait (%p10838_p6), [#allocation3], 1024   ;;  %p10839_p8 = pmov %p10838_p6 }
  0x6e   : > { %s196_s17 = sand.u32 1, %s9468_s24   ;;  %s9564_s18 = sand.u32 1, %s9350_s13  }
  0x6f   : > { %9335 = vsyncadd (%p10839_p8), [#allocation3], 4294966272  ;;  %s7947_s29 = sshll.u32 %s9564_s18, 13  ;;  %s197_s21 = scalar_lea.sflag [#allocation6], %s196_s17 }
  0x70   : > { %s9567_s22 = scalar_lea.vmem [#allocation5], %s7947_s29  ;;  %p10840_p13 = scmp.ne.s32.totalorder %s10829_s27, 0 }
  0x72   : > { %9337 = dma.done.wait (%p10840_p13), %s197_s21, 131200  }
  0x73   : > { %9339 = vsyncadd (%p10840_p13), %s197_s21, 4294836096  ;;  %v248_v0 = vld [vmem:[%s9567_s22] sm:$0xff]  ;;  %v249_v2 = vld [vmem:[%s9567_s22 + $0x8] sm:$0xff]  ;;  %s7948_s30 = sshll.u32 %s9564_s18, 3  ;;  %s7949_s4 = sshll.u32 %s9564_s18, 6 }
  0x74   : > { %v252_v1 = vld [vmem:[%s9567_s22 + $0x20] sm:$0xff]  ;;  %v253_v4 = vld [vmem:[%s9567_s22 + $0x28] sm:$0xff]  ;;  %s10431_s27 = scalar_lea.vmem [#allocation7], %s7948_s30  ;;  %s10450_s10 = scalar_lea.vmem [#allocation8], %s7949_s4 }
  0x75   : > { %v7967_v3 = vcombine.high %v248_v0, %v252_v1  ;;  %v7966_v5 = vcombine.low %v248_v0, %v252_v1  ;;  %v256_v6 = vld [vmem:[%s9567_s22 + $0x40] sm:$0xff]  ;;  %v7969_v8 = vcombine.high %v249_v2, %v253_v4  ;;  %v7968_v9 = vcombine.low %v249_v2, %v253_v4  ;;  %v257_v11 = vld [vmem:[%s9567_s22 + $0x48] sm:$0xff]  ;;  %s8997_s20 = sshll.u32 %s9468_s24, 10  ;;  %s7833_s23 = sshll.u32 %s10450_s10, 4  ;;  %s10773_s23 = int_to_ptr.vmem [resolvable:$true] %s7833_s23 }
  0x76   : > { %v260_v7 = vld [vmem:[%s9567_s22 + $0x60] sm:$0xff]  ;;  %v261_v12 = vld [vmem:[%s9567_s22 + $0x68] sm:$0xff]  ;;  %s10771_s5 = scalar_lea.hbm %s10820_s3, %s8997_s20  ;;  %s7819_s24 = scalar_lea.sflag [#allocation4], %s9564_s18 }
  0x77   : > { %v7975_v10 = vcombine.high %v256_v6, %v260_v7  ;;  %v264_v13 = vld [vmem:[%s9567_s22 + $0x80] sm:$0xff]  ;;  %6490 = vmatprep.subr.bf16.mxu0 %v7967_v3  ;;  %v7977_v14 = vcombine.high %v257_v11, %v261_v12  ;;  %v265_v16 = vld [vmem:[%s9567_s22 + $0x88] sm:$0xff]  ;;  %6818 = vmatprep.subr.bf16.mxu1 %v7969_v8  ;;  %v7974_v18 = vcombine.low %v256_v6, %v260_v7  ;;  %s9288_s6 = scalar_lea.vmem %s10773_s23, 1024  ;;  %p10841_p3 = scmp.ne.s32.totalorder %s10830_s26, 0 }
  0x78   : > { %v268_v15 = vld [vmem:[%s9567_s22 + $0xa0] sm:$0xff]  ;;  %v269_v17 = vld [vmem:[%s9567_s22 + $0xa8] sm:$0xff]  ;;  %6491 = vmatpush1.bf16.msra.mxu0 %v7966_v5  ;;  %6819 = vmatpush1.bf16.msra.mxu1 %v7968_v9  ;;  %v7976_v19 = vcombine.low %v257_v11, %v261_v12  ;;  %p9289_p11 = scmp.ne.s32.totalorder %s10773_s23, %s9288_s6  ;;  %s9366_s7 = smov [#allocation8]  }
  0x79   : > { %6492 = vmatprep.subr.bf16.mxu0 %v7975_v10  ;;  %v7983_v20 = vcombine.high %v264_v13, %v268_v15  ;;  %6820 = vmatprep.subr.bf16.mxu1 %v7977_v14  ;;  %v7985_v21 = vcombine.high %v265_v16, %v269_v17  ;;  %v272_v22 = vld [vmem:[%s9567_s22 + $0xc0] sm:$0xff]  ;;  %v273_v24 = vld [vmem:[%s9567_s22 + $0xc8] sm:$0xff]  ;;  %v7982_v26 = vcombine.low %v264_v13, %v268_v15  ;;  %s9292_s9 = sshll.u32 %s9366_s7, 4  ;;  %s9293_s9 = int_to_ptr.vmem [resolvable:$false] %s9292_s9 }
  0x7a   : > { %v276_v23 = vld [vmem:[%s9567_s22 + $0xe0] sm:$0xff]  ;;  %v277_v25 = vld [vmem:[%s9567_s22 + $0xe8] sm:$0xff]  ;;  %v7984_v27 = vcombine.low %v265_v16, %v269_v17  ;;  %p9290_p0 = pnand %p9289_p11, %p10841_p3  ;;  %s9294_s8 = scalar_lea.vmem %s9293_s9, 2048 }
  0x7b   : > { %v7991_v28 = vcombine.high %v272_v22, %v276_v23  ;;  %v7993_v29 = vcombine.high %v273_v24, %v277_v25  ;;  %v280_v30 = vld [vmem:[%s9567_s22 + $0x100] sm:$0xff]  ;;  %v281_v32 = vld [vmem:[%s9567_s22 + $0x108] sm:$0xff]  ;;  %v7990_v34 = vcombine.low %v272_v22, %v276_v23  ;;  %v7992_v35 = vcombine.low %v273_v24, %v277_v25  ;;  %p9295_p12 = scmp.lt.s32.totalorder %s10773_s23, %s9293_s9  ;;  %p9296_p9 = scmp.lt.s32.totalorder %s9294_s8, %s9288_s6 }
  0x7c   : > { %6493 = vmatpush1.bf16.msra.mxu0 %v7974_v18  ;;  %6821 = vmatpush1.bf16.msra.mxu1 %v7976_v19  ;;  %v284_v31 = vld [vmem:[%s9567_s22 + $0x120] sm:$0xff]  ;;  %v285_v33 = vld [vmem:[%s9567_s22 + $0x128] sm:$0xff]  ;;  %p9291_p10 = pneg %p9290_p0 }
  0x7d   : > { %6494 = vmatprep.subr.bf16.mxu0 %v7983_v20  ;;  %6822 = vmatprep.subr.bf16.mxu1 %v7985_v21  ;;  %v7999_v36 = vcombine.high %v280_v30, %v284_v31  ;;  %v8001_v37 = vcombine.high %v281_v32, %v285_v33  ;;  %v288_v38 = vld [vmem:[%s9567_s22 + $0x140] sm:$0xff]  ;;  %v289_v40 = vld [vmem:[%s9567_s22 + $0x148] sm:$0xff]  ;;  %v7998_v42 = vcombine.low %v280_v30, %v284_v31  ;;  %p9297_p7 = por %p9296_p9, %p9295_p12 }
  0x7e   : > { %v292_v39 = vld [vmem:[%s9567_s22 + $0x160] sm:$0xff]  ;;  %v293_v41 = vld [vmem:[%s9567_s22 + $0x168] sm:$0xff]  ;;  %v8000_v43 = vcombine.low %v281_v32, %v285_v33 }
  0x7f   : > { %v8007_v44 = vcombine.high %v288_v38, %v292_v39  ;;  %v8009_v45 = vcombine.high %v289_v40, %v293_v41  ;;  %v296_v46 = vld [vmem:[%s9567_s22 + $0x180] sm:$0xff]  ;;  %v297_v48 = vld [vmem:[%s9567_s22 + $0x188] sm:$0xff]  ;;  %v8006_v50 = vcombine.low %v288_v38, %v292_v39  ;;  %v8008_v51 = vcombine.low %v289_v40, %v293_v41  ;;  %p9298_p1 = pnand %p9297_p7, %p9291_p10 }
  0x80   : > { %6495 = vmatpush1.bf16.msra.mxu0 %v7982_v26  ;;  %6823 = vmatpush1.bf16.msra.mxu1 %v7984_v27  ;;  %v300_v47 = vld [vmem:[%s9567_s22 + $0x1a0] sm:$0xff]  ;;  %v301_v49 = vld [vmem:[%s9567_s22 + $0x1a8] sm:$0xff] }
  0x81   : > { %6496 = vmatprep.subr.bf16.mxu0 %v7991_v28  ;;  %6824 = vmatprep.subr.bf16.mxu1 %v7993_v29  ;;  %v8015_v52 = vcombine.high %v296_v46, %v300_v47  ;;  %v9601_v53 = vld [vmem:[#allocation2] sm:$0xff]  ;;  %v8017_v54 = vcombine.high %v297_v48, %v301_v49  ;;  %v305_v58 = vld [vmem:[%s9567_s22 + $0x1c8] sm:$0xff]  ;;  %v8014_v60 = vcombine.low %v296_v46, %v300_v47 }
  0x82   : > { %v304_v55 = vld [vmem:[%s9567_s22 + $0x1c0] sm:$0xff]  ;;  %v9607_v57 = vcombine.high %v9601_v53, %v9601_v53  ;;  %v309_v59 = vld [vmem:[%s9567_s22 + $0x1e8] sm:$0xff]  ;;  %v8016_v61 = vcombine.low %v297_v48, %v301_v49 }
  0x83   : > { %v308_v56 = vld [vmem:[%s9567_s22 + $0x1e0] sm:$0xff]  ;;  %v8025_v63 = vcombine.high %v305_v58, %v309_v59  ;;  %v313_v2 = vld [vmem:[%s9567_s22 + $0x208] sm:$0xff]  ;;  %v8024_v5 = vcombine.low %v305_v58, %v309_v59 }
  0x84   : > { %6497 = vmatpush1.bf16.msra.mxu0 %v7990_v34  ;;  %6825 = vmatpush1.bf16.msra.mxu1 %v7992_v35  ;;  %v8023_v62 = vcombine.high %v304_v55, %v308_v56  ;;  %v312_v0 = vld [vmem:[%s9567_s22 + $0x200] sm:$0xff]  ;;  %v317_v3 = vld [vmem:[%s9567_s22 + $0x228] sm:$0xff]  ;;  %v8022_v4 = vcombine.low %v304_v55, %v308_v56 }
  0x85   : > { %6498 = vmatprep.subr.bf16.mxu0 %v7999_v36  ;;  %6826 = vmatprep.subr.bf16.mxu1 %v8001_v37  ;;  %v316_v1 = vld [vmem:[%s9567_s22 + $0x220] sm:$0xff]  ;;  %v8033_v7 = vcombine.high %v313_v2, %v317_v3  ;;  %v321_v10 = vld [vmem:[%s9567_s22 + $0x248] sm:$0xff]  ;;  %v8032_v13 = vcombine.low %v313_v2, %v317_v3 }
  0x86   : > { %6522 = vmatprep.mubr.bf16.mxu0 %v9607_v57  ;;  %6850 = vmatprep.mubr.bf16.mxu1 %v9607_v57  ;;  %v8031_v6 = vcombine.high %v312_v0, %v316_v1  ;;  %v320_v8 = vld [vmem:[%s9567_s22 + $0x240] sm:$0xff]  ;;  %v325_v11 = vld [vmem:[%s9567_s22 + $0x268] sm:$0xff]  ;;  %v8030_v12 = vcombine.low %v312_v0, %v316_v1 }
  0x87   : > { %v324_v9 = vld [vmem:[%s9567_s22 + $0x260] sm:$0xff]  ;;  %v8041_v15 = vcombine.high %v321_v10, %v325_v11  ;;  %v329_v18 = vld [vmem:[%s9567_s22 + $0x288] sm:$0xff]  ;;  %v8040_v21 = vcombine.low %v321_v10, %v325_v11 }
  0x88   : > { %6499 = vmatpush1.bf16.msra.mxu0 %v7998_v42  ;;  %6827 = vmatpush1.bf16.msra.mxu1 %v8000_v43  ;;  %v8039_v14 = vcombine.high %v320_v8, %v324_v9  ;;  %v328_v16 = vld [vmem:[%s9567_s22 + $0x280] sm:$0xff]  ;;  %v333_v19 = vld [vmem:[%s9567_s22 + $0x2a8] sm:$0xff]  ;;  %v8038_v20 = vcombine.low %v320_v8, %v324_v9 }
  0x89   : > { %6500 = vmatprep.subr.bf16.mxu0 %v8007_v44  ;;  %6828 = vmatprep.subr.bf16.mxu1 %v8009_v45  ;;  %v332_v17 = vld [vmem:[%s9567_s22 + $0x2a0] sm:$0xff]  ;;  %v8049_v23 = vcombine.high %v329_v18, %v333_v19  ;;  %v337_v26 = vld [vmem:[%s9567_s22 + $0x2c8] sm:$0xff]  ;;  %v8048_v29 = vcombine.low %v329_v18, %v333_v19 }
  0x8a   : > { %v8047_v22 = vcombine.high %v328_v16, %v332_v17  ;;  %v336_v24 = vld [vmem:[%s9567_s22 + $0x2c0] sm:$0xff]  ;;  %v341_v27 = vld [vmem:[%s9567_s22 + $0x2e8] sm:$0xff]  ;;  %v8046_v28 = vcombine.low %v328_v16, %v332_v17 }
  0x8b   : > { %v340_v25 = vld [vmem:[%s9567_s22 + $0x2e0] sm:$0xff]  ;;  %v8057_v31 = vcombine.high %v337_v26, %v341_v27  ;;  %v345_v34 = vld [vmem:[%s9567_s22 + $0x308] sm:$0xff]  ;;  %v8056_v37 = vcombine.low %v337_v26, %v341_v27 }
  0x8c   : > { %6501 = vmatpush1.bf16.msra.mxu0 %v8006_v50  ;;  %6829 = vmatpush1.bf16.msra.mxu1 %v8008_v51  ;;  %v8055_v30 = vcombine.high %v336_v24, %v340_v25  ;;  %v344_v32 = vld [vmem:[%s9567_s22 + $0x300] sm:$0xff]  ;;  %v349_v35 = vld [vmem:[%s9567_s22 + $0x328] sm:$0xff]  ;;  %v8054_v36 = vcombine.low %v336_v24, %v340_v25 }
  0x8d   : > { %6502 = vmatprep.subr.bf16.mxu0 %v8015_v52  ;;  %6830 = vmatprep.subr.bf16.mxu1 %v8017_v54  ;;  %v348_v33 = vld [vmem:[%s9567_s22 + $0x320] sm:$0xff]  ;;  %v8065_v39 = vcombine.high %v345_v34, %v349_v35  ;;  %v353_v42 = vld [vmem:[%s9567_s22 + $0x348] sm:$0xff]  ;;  %v8064_v45 = vcombine.low %v345_v34, %v349_v35 }
  0x8e   : > { %v8063_v38 = vcombine.high %v344_v32, %v348_v33  ;;  %v352_v40 = vld [vmem:[%s9567_s22 + $0x340] sm:$0xff]  ;;  %v357_v43 = vld [vmem:[%s9567_s22 + $0x368] sm:$0xff]  ;;  %v8062_v44 = vcombine.low %v344_v32, %v348_v33 }
  0x8f   : > { %v356_v41 = vld [vmem:[%s9567_s22 + $0x360] sm:$0xff]  ;;  %v8073_v47 = vcombine.high %v353_v42, %v357_v43  ;;  %v361_v50 = vld [vmem:[%s9567_s22 + $0x388] sm:$0xff]  ;;  %v8072_v54 = vcombine.low %v353_v42, %v357_v43 }
  0x90   : > { %6503 = vmatpush1.bf16.msra.mxu0 %v8014_v60  ;;  %6831 = vmatpush1.bf16.msra.mxu1 %v8016_v61  ;;  %v8071_v46 = vcombine.high %v352_v40, %v356_v41  ;;  %v360_v48 = vld [vmem:[%s9567_s22 + $0x380] sm:$0xff]  ;;  %v365_v51 = vld [vmem:[%s9567_s22 + $0x3a8] sm:$0xff]  ;;  %v8070_v52 = vcombine.low %v352_v40, %v356_v41 }
  0x91   : > { %6504 = vmatprep.subr.bf16.mxu0 %v8023_v62  ;;  %6832 = vmatprep.subr.bf16.mxu1 %v8025_v63  ;;  %v364_v49 = vld [vmem:[%s9567_s22 + $0x3a0] sm:$0xff]  ;;  %v8081_v56 = vcombine.high %v361_v50, %v365_v51  ;;  %v369_v60 = vld [vmem:[%s9567_s22 + $0x3c8] sm:$0xff]  ;;  %v8080_v63 = vcombine.low %v361_v50, %v365_v51 }
  0x92   : > { %v8079_v55 = vcombine.high %v360_v48, %v364_v49  ;;  %v368_v58 = vld [vmem:[%s9567_s22 + $0x3c0] sm:$0xff]  ;;  %v373_v61 = vld [vmem:[%s9567_s22 + $0x3e8] sm:$0xff]  ;;  %v8078_v62 = vcombine.low %v360_v48, %v364_v49 }
  0x93   : > { %v372_v59 = vld [vmem:[%s9567_s22 + $0x3e0] sm:$0xff]  ;;  %v8089_v1 = vcombine.high %v369_v60, %v373_v61 }
  0x94   : > { %6505 = vmatpush1.bf16.msra.mxu0 %v8022_v4  ;;  %6833 = vmatpush1.bf16.msra.mxu1 %v8024_v5  ;;  %v8087_v0 = vcombine.high %v368_v58, %v372_v59  ;;  %v376_v2 = vld [vmem:[%s9567_s22 + $0x400] sm:$0xff]  ;;  %v377_v4 = vld [vmem:[%s9567_s22 + $0x408] sm:$0xff] }
  0x95   : > { %6506 = vmatprep.subr.bf16.mxu0 %v8031_v6  ;;  %6834 = vmatprep.subr.bf16.mxu1 %v8033_v7  ;;  %v380_v3 = vld [vmem:[%s9567_s22 + $0x420] sm:$0xff]  ;;  %v381_v5 = vld [vmem:[%s9567_s22 + $0x428] sm:$0xff]  ;;  %v8086_v6 = vcombine.low %v368_v58, %v372_v59  ;;  %v8088_v7 = vcombine.low %v369_v60, %v373_v61 }
  0x96   : > { %v8095_v8 = vcombine.high %v376_v2, %v380_v3  ;;  %v8097_v9 = vcombine.high %v377_v4, %v381_v5  ;;  %v384_v10 = vld [vmem:[%s9567_s22 + $0x440] sm:$0xff]  ;;  %v8094_v16 = vcombine.low %v376_v2, %v380_v3  ;;  %v8096_v17 = vcombine.low %v377_v4, %v381_v5 }
  0x97   : > { %v388_v11 = vld [vmem:[%s9567_s22 + $0x460] sm:$0xff] }
  0x98   : > { %6507 = vmatpush1.bf16.msra.mxu0 %v8030_v12  ;;  %6835 = vmatpush1.bf16.msra.mxu1 %v8032_v13  ;;  %v9653_v12 = vcombine.low %v9601_v53, %v9601_v53  ;;  %v385_v13 = vld [vmem:[%s9567_s22 + $0x448] sm:$0xff]  ;;  %v8103_v18 = vcombine.high %v384_v10, %v388_v11  ;;  %v8102_v24 = vcombine.low %v384_v10, %v388_v11 }
  0x99   : > { %6508 = vmatprep.subr.bf16.mxu0 %v8039_v14  ;;  %6836 = vmatprep.subr.bf16.mxu1 %v8041_v15  ;;  %v389_v14 = vld [vmem:[%s9567_s22 + $0x468] sm:$0xff] }
  0x9a   : > { %v9657_v15 = vld [vmem:[#allocation2 + $0x8] sm:$0xff]  ;;  %v8105_v19 = vcombine.high %v385_v13, %v389_v14  ;;  %v8104_v25 = vcombine.low %v385_v13, %v389_v14 }
  0x9b   : > { %v9663_v53 = vcombine.high %v9657_v15, %v9657_v15 }
  0x9c   : > { %6509 = vmatpush1.bf16.msra.mxu0 %v8038_v20  ;;  %6837 = vmatpush1.bf16.msra.mxu1 %v8040_v21  ;;  %v392_v20 = vld [vmem:[%s9567_s22 + $0x480] sm:$0xff] }
  0x9d   : > { %6510 = vmatprep.subr.bf16.mxu0 %v8047_v22  ;;  %6838 = vmatprep.subr.bf16.mxu1 %v8049_v23  ;;  %v396_v21 = vld [vmem:[%s9567_s22 + $0x4a0] sm:$0xff]  ;;  %v393_v22 = vld [vmem:[%s9567_s22 + $0x488] sm:$0xff] }
  0x9e   : > { %v397_v23 = vld [vmem:[%s9567_s22 + $0x4a8] sm:$0xff]  ;;  %v8111_v26 = vcombine.high %v392_v20, %v396_v21  ;;  %v8110_v32 = vcombine.low %v392_v20, %v396_v21 }
  0x9f   : > { %v8113_v27 = vcombine.high %v393_v22, %v397_v23  ;;  %v8112_v33 = vcombine.low %v393_v22, %v397_v23 }
  0xa0   : > { %6511 = vmatpush1.bf16.msra.mxu0 %v8046_v28  ;;  %6839 = vmatpush1.bf16.msra.mxu1 %v8048_v29  ;;  %v400_v28 = vld [vmem:[%s9567_s22 + $0x4c0] sm:$0xff] }
  0xa1   : > { %6512 = vmatprep.subr.bf16.mxu0 %v8055_v30  ;;  %6840 = vmatprep.subr.bf16.mxu1 %v8057_v31  ;;  %v404_v29 = vld [vmem:[%s9567_s22 + $0x4e0] sm:$0xff]  ;;  %v401_v30 = vld [vmem:[%s9567_s22 + $0x4c8] sm:$0xff] }
  0xa2   : > { %v405_v31 = vld [vmem:[%s9567_s22 + $0x4e8] sm:$0xff]  ;;  %v8119_v34 = vcombine.high %v400_v28, %v404_v29  ;;  %v8118_v40 = vcombine.low %v400_v28, %v404_v29 }
  0xa3   : > { %v8121_v35 = vcombine.high %v401_v30, %v405_v31  ;;  %v8120_v41 = vcombine.low %v401_v30, %v405_v31 }
  0xa4   : > { %6513 = vmatpush1.bf16.msra.mxu0 %v8054_v36  ;;  %6841 = vmatpush1.bf16.msra.mxu1 %v8056_v37  ;;  %v408_v36 = vld [vmem:[%s9567_s22 + $0x500] sm:$0xff] }
  0xa5   : > { %6514 = vmatprep.subr.bf16.mxu0 %v8063_v38  ;;  %6842 = vmatprep.subr.bf16.mxu1 %v8065_v39  ;;  %v412_v37 = vld [vmem:[%s9567_s22 + $0x520] sm:$0xff]  ;;  %v409_v38 = vld [vmem:[%s9567_s22 + $0x508] sm:$0xff] }
  0xa6   : > { %v413_v39 = vld [vmem:[%s9567_s22 + $0x528] sm:$0xff]  ;;  %v8127_v42 = vcombine.high %v408_v36, %v412_v37  ;;  %v8126_v48 = vcombine.low %v408_v36, %v412_v37 }
  0xa7   : > { %v8129_v43 = vcombine.high %v409_v38, %v413_v39  ;;  %v8128_v49 = vcombine.low %v409_v38, %v413_v39 }
  0xa8   : > { %6515 = vmatpush1.bf16.msra.mxu0 %v8062_v44  ;;  %6843 = vmatpush1.bf16.msra.mxu1 %v8064_v45  ;;  %v416_v44 = vld [vmem:[%s9567_s22 + $0x540] sm:$0xff] }
  0xa9   : > { %6516 = vmatprep.subr.bf16.mxu0 %v8071_v46  ;;  %6844 = vmatprep.subr.bf16.mxu1 %v8073_v47  ;;  %v420_v45 = vld [vmem:[%s9567_s22 + $0x560] sm:$0xff]  ;;  %v417_v46 = vld [vmem:[%s9567_s22 + $0x548] sm:$0xff] }
  0xaa   : > { %v421_v47 = vld [vmem:[%s9567_s22 + $0x568] sm:$0xff]  ;;  %v8135_v50 = vcombine.high %v416_v44, %v420_v45  ;;  %v8134_v58 = vcombine.low %v416_v44, %v420_v45 }
  0xab   : > { %v8137_v51 = vcombine.high %v417_v46, %v421_v47  ;;  %v8136_v59 = vcombine.low %v417_v46, %v421_v47 }
  0xac   : > { %6517 = vmatpush1.bf16.msra.mxu0 %v8070_v52  ;;  %6845 = vmatpush1.bf16.msra.mxu1 %v8072_v54  ;;  %v424_v52 = vld [vmem:[%s9567_s22 + $0x580] sm:$0xff] }
  0xad   : > { %6518 = vmatprep.subr.bf16.mxu0 %v8079_v55  ;;  %6846 = vmatprep.subr.bf16.mxu1 %v8081_v56  ;;  %v428_v54 = vld [vmem:[%s9567_s22 + $0x5a0] sm:$0xff]  ;;  %v425_v55 = vld [vmem:[%s9567_s22 + $0x588] sm:$0xff] }
  0xae   : > { %v429_v56 = vld [vmem:[%s9567_s22 + $0x5a8] sm:$0xff]  ;;  %v8143_v60 = vcombine.high %v424_v52, %v428_v54  ;;  %v8142_v2 = vcombine.low %v424_v52, %v428_v54 }
  0xaf   : > { %v8145_v61 = vcombine.high %v425_v55, %v429_v56  ;;  %v8144_v3 = vcombine.low %v425_v55, %v429_v56 }
  0xb0   : > { %6519 = vmatpush1.bf16.msra.mxu0 %v8078_v62  ;;  %6847 = vmatpush1.bf16.msra.mxu1 %v8080_v63  ;;  %v432_v62 = vld [vmem:[%s9567_s22 + $0x5c0] sm:$0xff] }
  0xb1   : > { %6520 = vmatprep.subr.bf16.mxu0 %v8087_v0  ;;  %6848 = vmatprep.subr.bf16.mxu1 %v8089_v1  ;;  %v436_v63 = vld [vmem:[%s9567_s22 + $0x5e0] sm:$0xff]  ;;  %v433_v0 = vld [vmem:[%s9567_s22 + $0x5c8] sm:$0xff] }
  0xb2   : > { %v437_v1 = vld [vmem:[%s9567_s22 + $0x5e8] sm:$0xff]  ;;  %v8151_v4 = vcombine.high %v432_v62, %v436_v63  ;;  %v8150_v10 = vcombine.low %v432_v62, %v436_v63 }
  0xb3   : > { %v8153_v5 = vcombine.high %v433_v0, %v437_v1  ;;  %v8152_v11 = vcombine.low %v433_v0, %v437_v1 }
  0xb4   : > { %6521 = vmatpush1.bf16.msra.mxu0 %v8086_v6  ;;  %6849 = vmatpush1.bf16.msra.mxu1 %v8088_v7  ;;  %v440_v6 = vld [vmem:[%s9567_s22 + $0x600] sm:$0xff] }
  0xb5   : > { %6531 = vmatprep.subr.bf16.mxu0 %v8095_v8  ;;  %6859 = vmatprep.subr.bf16.mxu1 %v8097_v9  ;;  %v444_v7 = vld [vmem:[%s9567_s22 + $0x620] sm:$0xff]  ;;  %v441_v8 = vld [vmem:[%s9567_s22 + $0x608] sm:$0xff] }
  0xb6   : > { %v445_v9 = vld [vmem:[%s9567_s22 + $0x628] sm:$0xff]  ;;  %v8159_v13 = vcombine.high %v440_v6, %v444_v7  ;;  %v8158_v20 = vcombine.low %v440_v6, %v444_v7 }
  0xb7   : > { %6523 = vmatmul.mubr.bf16.vlgmr.msra.gmra.mrb[0].mxu0 %v9653_v12  ;;  %6851 = vmatmul.mubr.bf16.vlgmr.msra.gmra.mrb[0].mxu1 %v9653_v12  ;;  %v8161_v14 = vcombine.high %v441_v8, %v445_v9  ;;  %v8160_v21 = vcombine.low %v441_v8, %v445_v9 }
  0xb8   : > { %6532 = vmatpush1.bf16.msra.mxu0 %v8094_v16  ;;  %6860 = vmatpush1.bf16.msra.mxu1 %v8096_v17  ;;  %v448_v16 = vld [vmem:[%s9567_s22 + $0x640] sm:$0xff] }
  0xb9   : > { %6533 = vmatprep.subr.bf16.mxu0 %v8103_v18  ;;  %6861 = vmatprep.subr.bf16.mxu1 %v8105_v19  ;;  %v452_v17 = vld [vmem:[%s9567_s22 + $0x660] sm:$0xff]  ;;  %v449_v18 = vld [vmem:[%s9567_s22 + $0x648] sm:$0xff] }
  0xba   : > { %6563 = vmatprep.mubr.bf16.mxu0 %v9663_v53  ;;  %6891 = vmatprep.mubr.bf16.mxu1 %v9663_v53  ;;  %v453_v19 = vld [vmem:[%s9567_s22 + $0x668] sm:$0xff]  ;;  %v8167_v22 = vcombine.high %v448_v16, %v452_v17  ;;  %v8166_v28 = vcombine.low %v448_v16, %v452_v17 }
  0xbb   : > { %v8169_v23 = vcombine.high %v449_v18, %v453_v19  ;;  %v8168_v29 = vcombine.low %v449_v18, %v453_v19 }
  0xbc   : > { %6534 = vmatpush1.bf16.msra.mxu0 %v8102_v24  ;;  %6862 = vmatpush1.bf16.msra.mxu1 %v8104_v25  ;;  %v456_v24 = vld [vmem:[%s9567_s22 + $0x680] sm:$0xff] }
  0xbd   : > { %6535 = vmatprep.subr.bf16.mxu0 %v8111_v26  ;;  %6863 = vmatprep.subr.bf16.mxu1 %v8113_v27  ;;  %v460_v25 = vld [vmem:[%s9567_s22 + $0x6a0] sm:$0xff]  ;;  %v457_v26 = vld [vmem:[%s9567_s22 + $0x688] sm:$0xff] }
  0xbe   : > { %v461_v27 = vld [vmem:[%s9567_s22 + $0x6a8] sm:$0xff]  ;;  %v8175_v30 = vcombine.high %v456_v24, %v460_v25  ;;  %v8174_v36 = vcombine.low %v456_v24, %v460_v25  ;;  %v9735_v25 = vld [vmem:[#allocation2 + $0x10] sm:$0xff] }
  0xbf   : > { %v8177_v31 = vcombine.high %v457_v26, %v461_v27  ;;  %v8176_v37 = vcombine.low %v457_v26, %v461_v27  ;;  %v517_v24 = vld [vmem:[%s9567_s22 + $0x868] sm:$0xff] }
  0xc0   : > { %6536 = vmatpush1.bf16.msra.mxu0 %v8110_v32  ;;  %6864 = vmatpush1.bf16.msra.mxu1 %v8112_v33  ;;  %v464_v32 = vld [vmem:[%s9567_s22 + $0x6c0] sm:$0xff] }
  0xc1   : > { %6537 = vmatprep.subr.bf16.mxu0 %v8119_v34  ;;  %6865 = vmatprep.subr.bf16.mxu1 %v8121_v35  ;;  %v468_v33 = vld [vmem:[%s9567_s22 + $0x6e0] sm:$0xff]  ;;  %v465_v34 = vld [vmem:[%s9567_s22 + $0x6c8] sm:$0xff] }
  0xc2   : > { %v469_v35 = vld [vmem:[%s9567_s22 + $0x6e8] sm:$0xff]  ;;  %v8183_v38 = vcombine.high %v464_v32, %v468_v33  ;;  %v8182_v44 = vcombine.low %v464_v32, %v468_v33 }
  0xc3   : > { %v8185_v39 = vcombine.high %v465_v34, %v469_v35  ;;  %v8184_v45 = vcombine.low %v465_v34, %v469_v35  ;;  %v521_v32 = vld [vmem:[%s9567_s22 + $0x888] sm:$0xff] }
  0xc4   : > { %6538 = vmatpush1.bf16.msra.mxu0 %v8118_v40  ;;  %6866 = vmatpush1.bf16.msra.mxu1 %v8120_v41  ;;  %v472_v40 = vld [vmem:[%s9567_s22 + $0x700] sm:$0xff]  ;;  %v525_v33 = vld [vmem:[%s9567_s22 + $0x8a8] sm:$0xff] }
  0xc5   : > { %6539 = vmatprep.subr.bf16.mxu0 %v8127_v42  ;;  %6867 = vmatprep.subr.bf16.mxu1 %v8129_v43  ;;  %v476_v41 = vld [vmem:[%s9567_s22 + $0x720] sm:$0xff]  ;;  %v473_v42 = vld [vmem:[%s9567_s22 + $0x708] sm:$0xff] }
  0xc6   : > { %v477_v43 = vld [vmem:[%s9567_s22 + $0x728] sm:$0xff]  ;;  %v8191_v46 = vcombine.high %v472_v40, %v476_v41  ;;  %v8190_v52 = vcombine.low %v472_v40, %v476_v41 }
  0xc7   : > { %v8193_v47 = vcombine.high %v473_v42, %v477_v43  ;;  %v8192_v54 = vcombine.low %v473_v42, %v477_v43  ;;  %v529_v40 = vld [vmem:[%s9567_s22 + $0x8c8] sm:$0xff]  ;;  %v8240_v43 = vcombine.low %v521_v32, %v525_v33 }
  0xc8   : > { %6540 = vmatpush1.bf16.msra.mxu0 %v8126_v48  ;;  %6868 = vmatpush1.bf16.msra.mxu1 %v8128_v49  ;;  %v480_v48 = vld [vmem:[%s9567_s22 + $0x740] sm:$0xff]  ;;  %v533_v41 = vld [vmem:[%s9567_s22 + $0x8e8] sm:$0xff] }
  0xc9   : > { %6541 = vmatprep.subr.bf16.mxu0 %v8135_v50  ;;  %6869 = vmatprep.subr.bf16.mxu1 %v8137_v51  ;;  %v484_v49 = vld [vmem:[%s9567_s22 + $0x760] sm:$0xff]  ;;  %v481_v50 = vld [vmem:[%s9567_s22 + $0x748] sm:$0xff] }
  0xca   : > { %v485_v51 = vld [vmem:[%s9567_s22 + $0x768] sm:$0xff]  ;;  %v8199_v55 = vcombine.high %v480_v48, %v484_v49  ;;  %v8198_v62 = vcombine.low %v480_v48, %v484_v49 }
  0xcb   : > { %v8201_v56 = vcombine.high %v481_v50, %v485_v51  ;;  %v8200_v63 = vcombine.low %v481_v50, %v485_v51  ;;  %v537_v48 = vld [vmem:[%s9567_s22 + $0x908] sm:$0xff]  ;;  %v8248_v51 = vcombine.low %v529_v40, %v533_v41 }
  0xcc   : > { %6542 = vmatpush1.bf16.msra.mxu0 %v8134_v58  ;;  %6870 = vmatpush1.bf16.msra.mxu1 %v8136_v59  ;;  %v488_v58 = vld [vmem:[%s9567_s22 + $0x780] sm:$0xff]  ;;  %v541_v49 = vld [vmem:[%s9567_s22 + $0x928] sm:$0xff] }
  0xcd   : > { %6543 = vmatprep.subr.bf16.mxu0 %v8143_v60  ;;  %6871 = vmatprep.subr.bf16.mxu1 %v8145_v61  ;;  %v492_v59 = vld [vmem:[%s9567_s22 + $0x7a0] sm:$0xff]  ;;  %v489_v60 = vld [vmem:[%s9567_s22 + $0x788] sm:$0xff] }
  0xce   : > { %v493_v61 = vld [vmem:[%s9567_s22 + $0x7a8] sm:$0xff]  ;;  %v8207_v0 = vcombine.high %v488_v58, %v492_v59  ;;  %v8206_v6 = vcombine.low %v488_v58, %v492_v59 }
  0xcf   : > { %v8209_v1 = vcombine.high %v489_v60, %v493_v61  ;;  %v8208_v7 = vcombine.low %v489_v60, %v493_v61  ;;  %v545_v58 = vld [vmem:[%s9567_s22 + $0x948] sm:$0xff]  ;;  %v8256_v61 = vcombine.low %v537_v48, %v541_v49 }
  0xd0   : > { %6544 = vmatpush1.bf16.msra.mxu0 %v8142_v2  ;;  %6872 = vmatpush1.bf16.msra.mxu1 %v8144_v3  ;;  %v496_v2 = vld [vmem:[%s9567_s22 + $0x7c0] sm:$0xff]  ;;  %v549_v59 = vld [vmem:[%s9567_s22 + $0x968] sm:$0xff] }
  0xd1   : > { %6545 = vmatprep.subr.bf16.mxu0 %v8151_v4  ;;  %6873 = vmatprep.subr.bf16.mxu1 %v8153_v5  ;;  %v500_v3 = vld [vmem:[%s9567_s22 + $0x7e0] sm:$0xff]  ;;  %v497_v4 = vld [vmem:[%s9567_s22 + $0x7c8] sm:$0xff] }
  0xd2   : > { %v501_v5 = vld [vmem:[%s9567_s22 + $0x7e8] sm:$0xff]  ;;  %v8215_v8 = vcombine.high %v496_v2, %v500_v3  ;;  %v8214_v16 = vcombine.low %v496_v2, %v500_v3 }
  0xd3   : > { %v8217_v9 = vcombine.high %v497_v4, %v501_v5  ;;  %v8216_v17 = vcombine.low %v497_v4, %v501_v5  ;;  %v553_v2 = vld [vmem:[%s9567_s22 + $0x988] sm:$0xff]  ;;  %v8264_v5 = vcombine.low %v545_v58, %v549_v59 }
  0xd4   : > { %6546 = vmatpush1.bf16.msra.mxu0 %v8150_v10  ;;  %6874 = vmatpush1.bf16.msra.mxu1 %v8152_v11  ;;  %v504_v10 = vld [vmem:[%s9567_s22 + $0x800] sm:$0xff]  ;;  %v557_v3 = vld [vmem:[%s9567_s22 + $0x9a8] sm:$0xff] }
  0xd5   : > { %6547 = vmatprep.subr.bf16.mxu0 %v8159_v13  ;;  %6875 = vmatprep.subr.bf16.mxu1 %v8161_v14  ;;  %v508_v11 = vld [vmem:[%s9567_s22 + $0x820] sm:$0xff]  ;;  %v505_v13 = vld [vmem:[%s9567_s22 + $0x808] sm:$0xff] }
  0xd6   : > { %v509_v14 = vld [vmem:[%s9567_s22 + $0x828] sm:$0xff]  ;;  %v8223_v18 = vcombine.high %v504_v10, %v508_v11  ;;  %v8222_v26 = vcombine.low %v504_v10, %v508_v11 }
  0xd7   : > { %v8225_v19 = vcombine.high %v505_v13, %v509_v14  ;;  %v8224_v27 = vcombine.low %v505_v13, %v509_v14  ;;  %v561_v10 = vld [vmem:[%s9567_s22 + $0x9c8] sm:$0xff]  ;;  %v8272_v14 = vcombine.low %v553_v2, %v557_v3 }
  0xd8   : > { %6548 = vmatpush1.bf16.msra.mxu0 %v8158_v20  ;;  %6876 = vmatpush1.bf16.msra.mxu1 %v8160_v21  ;;  %v512_v20 = vld [vmem:[%s9567_s22 + $0x840] sm:$0xff]  ;;  %v565_v11 = vld [vmem:[%s9567_s22 + $0x9e8] sm:$0xff] }
  0xd9   : > { %6549 = vmatprep.subr.bf16.mxu0 %v8167_v22  ;;  %6877 = vmatprep.subr.bf16.mxu1 %v8169_v23  ;;  %v516_v21 = vld [vmem:[%s9567_s22 + $0x860] sm:$0xff]  ;;  %v9731_v22 = vcombine.low %v9657_v15, %v9657_v15  ;;  %v513_v23 = vld [vmem:[%s9567_s22 + $0x848] sm:$0xff]  ;;  %v9741_v15 = vcombine.high %v9735_v25, %v9735_v25 }
  0xda   : > { %v8230_v34 = vcombine.low %v512_v20, %v516_v21  ;;  %v8232_v35 = vcombine.low %v513_v23, %v517_v24 }
  0xdc   : > { %6550 = vmatpush1.bf16.msra.mxu0 %v8166_v28  ;;  %6878 = vmatpush1.bf16.msra.mxu1 %v8168_v29  ;;  %v8231_v28 = vcombine.high %v512_v20, %v516_v21  ;;  %v8233_v29 = vcombine.high %v513_v23, %v517_v24  ;;  %v569_v20 = vld [vmem:[%s9567_s22 + $0xa08] sm:$0xff]  ;;  %v8280_v24 = vcombine.low %v561_v10, %v565_v11 }
  0xdd   : > { %6551 = vmatprep.subr.bf16.mxu0 %v8175_v30  ;;  %6879 = vmatprep.subr.bf16.mxu1 %v8177_v31  ;;  %v520_v30 = vld [vmem:[%s9567_s22 + $0x880] sm:$0xff]  ;;  %v573_v21 = vld [vmem:[%s9567_s22 + $0xa28] sm:$0xff] }
  0xde   : > { %v524_v31 = vld [vmem:[%s9567_s22 + $0x8a0] sm:$0xff] }
  0xdf   : > { %v8238_v42 = vcombine.low %v520_v30, %v524_v31 }
  0xe0   : > { %6552 = vmatpush1.bf16.msra.mxu0 %v8174_v36  ;;  %6880 = vmatpush1.bf16.msra.mxu1 %v8176_v37  ;;  %v8239_v36 = vcombine.high %v520_v30, %v524_v31  ;;  %v8241_v37 = vcombine.high %v521_v32, %v525_v33  ;;  %v577_v30 = vld [vmem:[%s9567_s22 + $0xa48] sm:$0xff]  ;;  %v8288_v33 = vcombine.low %v569_v20, %v573_v21 }
  0xe1   : > { %6553 = vmatprep.subr.bf16.mxu0 %v8183_v38  ;;  %6881 = vmatprep.subr.bf16.mxu1 %v8185_v39  ;;  %v528_v38 = vld [vmem:[%s9567_s22 + $0x8c0] sm:$0xff]  ;;  %v581_v31 = vld [vmem:[%s9567_s22 + $0xa68] sm:$0xff] }
  0xe2   : > { %v532_v39 = vld [vmem:[%s9567_s22 + $0x8e0] sm:$0xff] }
  0xe3   : > { %v8246_v50 = vcombine.low %v528_v38, %v532_v39 }
  0xe4   : > { %6554 = vmatpush1.bf16.msra.mxu0 %v8182_v44  ;;  %6882 = vmatpush1.bf16.msra.mxu1 %v8184_v45  ;;  %v8247_v44 = vcombine.high %v528_v38, %v532_v39  ;;  %v8249_v45 = vcombine.high %v529_v40, %v533_v41  ;;  %v585_v38 = vld [vmem:[%s9567_s22 + $0xa88] sm:$0xff]  ;;  %v8296_v41 = vcombine.low %v577_v30, %v581_v31 }
  0xe5   : > { %6555 = vmatprep.subr.bf16.mxu0 %v8191_v46  ;;  %6883 = vmatprep.subr.bf16.mxu1 %v8193_v47  ;;  %v536_v46 = vld [vmem:[%s9567_s22 + $0x900] sm:$0xff]  ;;  %v589_v39 = vld [vmem:[%s9567_s22 + $0xaa8] sm:$0xff] }
  0xe6   : > { %v540_v47 = vld [vmem:[%s9567_s22 + $0x920] sm:$0xff] }
  0xe7   : > { %v8254_v60 = vcombine.low %v536_v46, %v540_v47 }
  0xe8   : > { %6556 = vmatpush1.bf16.msra.mxu0 %v8190_v52  ;;  %6884 = vmatpush1.bf16.msra.mxu1 %v8192_v54  ;;  %v8255_v52 = vcombine.high %v536_v46, %v540_v47  ;;  %v8257_v54 = vcombine.high %v537_v48, %v541_v49  ;;  %v593_v46 = vld [vmem:[%s9567_s22 + $0xac8] sm:$0xff]  ;;  %v8304_v49 = vcombine.low %v585_v38, %v589_v39 }
  0xe9   : > { %6557 = vmatprep.subr.bf16.mxu0 %v8199_v55  ;;  %6885 = vmatprep.subr.bf16.mxu1 %v8201_v56  ;;  %v544_v55 = vld [vmem:[%s9567_s22 + $0x940] sm:$0xff]  ;;  %v597_v47 = vld [vmem:[%s9567_s22 + $0xae8] sm:$0xff] }
  0xea   : > { %v548_v56 = vld [vmem:[%s9567_s22 + $0x960] sm:$0xff] }
  0xeb   : > { %v8262_v4 = vcombine.low %v544_v55, %v548_v56 }
  0xec   : > { %6558 = vmatpush1.bf16.msra.mxu0 %v8198_v62  ;;  %6886 = vmatpush1.bf16.msra.mxu1 %v8200_v63  ;;  %v8263_v62 = vcombine.high %v544_v55, %v548_v56  ;;  %v8265_v63 = vcombine.high %v545_v58, %v549_v59  ;;  %v601_v55 = vld [vmem:[%s9567_s22 + $0xb08] sm:$0xff]  ;;  %v8312_v59 = vcombine.low %v593_v46, %v597_v47 }
  0xed   : > { %6559 = vmatprep.subr.bf16.mxu0 %v8207_v0  ;;  %6887 = vmatprep.subr.bf16.mxu1 %v8209_v1  ;;  %v552_v0 = vld [vmem:[%s9567_s22 + $0x980] sm:$0xff]  ;;  %v605_v56 = vld [vmem:[%s9567_s22 + $0xb28] sm:$0xff] }
  0xee   : > { %v556_v1 = vld [vmem:[%s9567_s22 + $0x9a0] sm:$0xff] }
  0xef   : > { %v8270_v13 = vcombine.low %v552_v0, %v556_v1 }
  0xf0   : > { %6560 = vmatpush1.bf16.msra.mxu0 %v8206_v6  ;;  %6888 = vmatpush1.bf16.msra.mxu1 %v8208_v7  ;;  %v8271_v6 = vcombine.high %v552_v0, %v556_v1  ;;  %v8273_v7 = vcombine.high %v553_v2, %v557_v3  ;;  %v609_v0 = vld [vmem:[%s9567_s22 + $0xb48] sm:$0xff]  ;;  %v8320_v3 = vcombine.low %v601_v55, %v605_v56 }
  0xf1   : > { %6561 = vmatprep.subr.bf16.mxu0 %v8215_v8  ;;  %6889 = vmatprep.subr.bf16.mxu1 %v8217_v9  ;;  %v560_v8 = vld [vmem:[%s9567_s22 + $0x9c0] sm:$0xff]  ;;  %v613_v1 = vld [vmem:[%s9567_s22 + $0xb68] sm:$0xff] }
  0xf2   : > { %v564_v9 = vld [vmem:[%s9567_s22 + $0x9e0] sm:$0xff] }
  0xf3   : > { %v8278_v23 = vcombine.low %v560_v8, %v564_v9 }
  0xf4   : > { %6562 = vmatpush1.bf16.msra.mxu0 %v8214_v16  ;;  %6890 = vmatpush1.bf16.msra.mxu1 %v8216_v17  ;;  %v8279_v16 = vcombine.high %v560_v8, %v564_v9  ;;  %v8281_v17 = vcombine.high %v561_v10, %v565_v11  ;;  %v617_v8 = vld [vmem:[%s9567_s22 + $0xb88] sm:$0xff]  ;;  %v8328_v11 = vcombine.low %v609_v0, %v613_v1 }
  0xf5   : > { %6572 = vmatprep.subr.bf16.mxu0 %v8223_v18  ;;  %6900 = vmatprep.subr.bf16.mxu1 %v8225_v19  ;;  %v568_v18 = vld [vmem:[%s9567_s22 + $0xa00] sm:$0xff]  ;;  %v621_v9 = vld [vmem:[%s9567_s22 + $0xba8] sm:$0xff] }
  0xf6   : > { %v572_v19 = vld [vmem:[%s9567_s22 + $0xa20] sm:$0xff] }
  0xf7   : > { %6564 = vmatmul.mubr.bf16.vlgmr.msra.gmra.mrb[0].mxu0 %v9731_v22  ;;  %6892 = vmatmul.mubr.bf16.vlgmr.msra.gmra.mrb[0].mxu1 %v9731_v22  ;;  %v8286_v32 = vcombine.low %v568_v18, %v572_v19 }
  0xf8   : > { %6573 = vmatpush1.bf16.msra.mxu0 %v8222_v26  ;;  %6901 = vmatpush1.bf16.msra.mxu1 %v8224_v27  ;;  %v8287_v26 = vcombine.high %v568_v18, %v572_v19  ;;  %v8289_v27 = vcombine.high %v569_v20, %v573_v21  ;;  %v625_v18 = vld [vmem:[%s9567_s22 + $0xbc8] sm:$0xff]  ;;  %v8336_v21 = vcombine.low %v617_v8, %v621_v9 }
  0xf9   : > { %6574 = vmatprep.subr.bf16.mxu0 %v8231_v28  ;;  %6902 = vmatprep.subr.bf16.mxu1 %v8233_v29  ;;  %v576_v28 = vld [vmem:[%s9567_s22 + $0xa40] sm:$0xff]  ;;  %v629_v19 = vld [vmem:[%s9567_s22 + $0xbe8] sm:$0xff] }
  0xfa   : > { %6604 = vmatprep.mubr.bf16.mxu0 %v9741_v15  ;;  %6932 = vmatprep.mubr.bf16.mxu1 %v9741_v15  ;;  %v580_v29 = vld [vmem:[%s9567_s22 + $0xa60] sm:$0xff] }
  0xfb   : > { %v8294_v40 = vcombine.low %v576_v28, %v580_v29 }
  0xfc   : > { %6575 = vmatpush1.bf16.msra.mxu0 %v8230_v34  ;;  %6903 = vmatpush1.bf16.msra.mxu1 %v8232_v35  ;;  %v8295_v34 = vcombine.high %v576_v28, %v580_v29  ;;  %v8297_v35 = vcombine.high %v577_v30, %v581_v31  ;;  %v633_v28 = vld [vmem:[%s9567_s22 + $0xc08] sm:$0xff]  ;;  %v8344_v31 = vcombine.low %v625_v18, %v629_v19 }
  0xfd   : > { %6576 = vmatprep.subr.bf16.mxu0 %v8239_v36  ;;  %6904 = vmatprep.subr.bf16.mxu1 %v8241_v37  ;;  %v584_v36 = vld [vmem:[%s9567_s22 + $0xa80] sm:$0xff]  ;;  %v637_v29 = vld [vmem:[%s9567_s22 + $0xc28] sm:$0xff] }
  0xfe   : > { %v588_v37 = vld [vmem:[%s9567_s22 + $0xaa0] sm:$0xff] }
  0xff   : > { %v8302_v48 = vcombine.low %v584_v36, %v588_v37 }
 0x100   : > { %6577 = vmatpush1.bf16.msra.mxu0 %v8238_v42  ;;  %6905 = vmatpush1.bf16.msra.mxu1 %v8240_v43  ;;  %v8303_v42 = vcombine.high %v584_v36, %v588_v37  ;;  %v8305_v43 = vcombine.high %v585_v38, %v589_v39  ;;  %v9809_v36 = vcombine.low %v9735_v25, %v9735_v25  ;;  %v641_v37 = vld [vmem:[%s9567_s22 + $0xc48] sm:$0xff]  ;;  %v9813_v39 = vld [vmem:[#allocation2 + $0x18] sm:$0xff] }
 0x101   : > { %6578 = vmatprep.subr.bf16.mxu0 %v8247_v44  ;;  %6906 = vmatprep.subr.bf16.mxu1 %v8249_v45  ;;  %v592_v44 = vld [vmem:[%s9567_s22 + $0xac0] sm:$0xff]  ;;  %v645_v38 = vld [vmem:[%s9567_s22 + $0xc68] sm:$0xff]  ;;  %v9819_v25 = vcombine.high %v9813_v39, %v9813_v39 }
 0x102   : > { %v596_v45 = vld [vmem:[%s9567_s22 + $0xae0] sm:$0xff] }
 0x103   : > { %v8310_v58 = vcombine.low %v592_v44, %v596_v45 }
 0x104   : > { %6579 = vmatpush1.bf16.msra.mxu0 %v8246_v50  ;;  %6907 = vmatpush1.bf16.msra.mxu1 %v8248_v51  ;;  %v8311_v50 = vcombine.high %v592_v44, %v596_v45  ;;  %v8313_v51 = vcombine.high %v593_v46, %v597_v47  ;;  %v648_v44 = vld [vmem:[%s9567_s22 + $0xc80] sm:$0xff]  ;;  %v649_v46 = vld [vmem:[%s9567_s22 + $0xc88] sm:$0xff] }
 0x105   : > { %6580 = vmatprep.subr.bf16.mxu0 %v8255_v52  ;;  %6908 = vmatprep.subr.bf16.mxu1 %v8257_v54  ;;  %v600_v52 = vld [vmem:[%s9567_s22 + $0xb00] sm:$0xff]  ;;  %v653_v47 = vld [vmem:[%s9567_s22 + $0xca8] sm:$0xff] }
 0x106   : > { %v604_v54 = vld [vmem:[%s9567_s22 + $0xb20] sm:$0xff] }
 0x107   : > { %v8318_v2 = vcombine.low %v600_v52, %v604_v54  ;;  %v652_v45 = vld [vmem:[%s9567_s22 + $0xca0] sm:$0xff] }
 0x108   : > { %6581 = vmatpush1.bf16.msra.mxu0 %v8254_v60  ;;  %6909 = vmatpush1.bf16.msra.mxu1 %v8256_v61  ;;  %v8319_v60 = vcombine.high %v600_v52, %v604_v54  ;;  %v8321_v61 = vcombine.high %v601_v55, %v605_v56  ;;  %v656_v52 = vld [vmem:[%s9567_s22 + $0xcc0] sm:$0xff]  ;;  %v657_v55 = vld [vmem:[%s9567_s22 + $0xcc8] sm:$0xff] }
 0x109   : > { %6582 = vmatprep.subr.bf16.mxu0 %v8263_v62  ;;  %6910 = vmatprep.subr.bf16.mxu1 %v8265_v63  ;;  %v608_v62 = vld [vmem:[%s9567_s22 + $0xb40] sm:$0xff]  ;;  %v661_v56 = vld [vmem:[%s9567_s22 + $0xce8] sm:$0xff] }
 0x10a   : > { %v612_v63 = vld [vmem:[%s9567_s22 + $0xb60] sm:$0xff] }
 0x10b   : > { %v8326_v10 = vcombine.low %v608_v62, %v612_v63  ;;  %v660_v54 = vld [vmem:[%s9567_s22 + $0xce0] sm:$0xff] }
 0x10c   : > { %6583 = vmatpush1.bf16.msra.mxu0 %v8262_v4  ;;  %6911 = vmatpush1.bf16.msra.mxu1 %v8264_v5  ;;  %v8327_v4 = vcombine.high %v608_v62, %v612_v63  ;;  %v8329_v5 = vcombine.high %v609_v0, %v613_v1  ;;  %v664_v62 = vld [vmem:[%s9567_s22 + $0xd00] sm:$0xff]  ;;  %v665_v0 = vld [vmem:[%s9567_s22 + $0xd08] sm:$0xff] }
 0x10d   : > { %6584 = vmatprep.subr.bf16.mxu0 %v8271_v6  ;;  %6912 = vmatprep.subr.bf16.mxu1 %v8273_v7  ;;  %v616_v6 = vld [vmem:[%s9567_s22 + $0xb80] sm:$0xff]  ;;  %v669_v1 = vld [vmem:[%s9567_s22 + $0xd28] sm:$0xff] }
 0x10e   : > { %v620_v7 = vld [vmem:[%s9567_s22 + $0xba0] sm:$0xff] }
 0x10f   : > { %v8334_v20 = vcombine.low %v616_v6, %v620_v7  ;;  %v668_v63 = vld [vmem:[%s9567_s22 + $0xd20] sm:$0xff] }
 0x110   : > { %6585 = vmatpush1.bf16.msra.mxu0 %v8270_v13  ;;  %6913 = vmatpush1.bf16.msra.mxu1 %v8272_v14  ;;  %v8335_v13 = vcombine.high %v616_v6, %v620_v7  ;;  %v8337_v14 = vcombine.high %v617_v8, %v621_v9  ;;  %v672_v6 = vld [vmem:[%s9567_s22 + $0xd40] sm:$0xff]  ;;  %v673_v8 = vld [vmem:[%s9567_s22 + $0xd48] sm:$0xff] }
 0x111   : > { %6586 = vmatprep.subr.bf16.mxu0 %v8279_v16  ;;  %6914 = vmatprep.subr.bf16.mxu1 %v8281_v17  ;;  %v624_v16 = vld [vmem:[%s9567_s22 + $0xbc0] sm:$0xff]  ;;  %v677_v9 = vld [vmem:[%s9567_s22 + $0xd68] sm:$0xff] }
 0x112   : > { %v628_v17 = vld [vmem:[%s9567_s22 + $0xbe0] sm:$0xff] }
 0x113   : > { %v8342_v30 = vcombine.low %v624_v16, %v628_v17  ;;  %v676_v7 = vld [vmem:[%s9567_s22 + $0xd60] sm:$0xff] }
 0x114   : > { %6587 = vmatpush1.bf16.msra.mxu0 %v8278_v23  ;;  %6915 = vmatpush1.bf16.msra.mxu1 %v8280_v24  ;;  %v8343_v23 = vcombine.high %v624_v16, %v628_v17  ;;  %v8345_v24 = vcombine.high %v625_v18, %v629_v19  ;;  %v680_v16 = vld [vmem:[%s9567_s22 + $0xd80] sm:$0xff]  ;;  %v681_v18 = vld [vmem:[%s9567_s22 + $0xd88] sm:$0xff] }
 0x115   : > { %6588 = vmatprep.subr.bf16.mxu0 %v8287_v26  ;;  %6916 = vmatprep.subr.bf16.mxu1 %v8289_v27  ;;  %v632_v26 = vld [vmem:[%s9567_s22 + $0xc00] sm:$0xff]  ;;  %v685_v19 = vld [vmem:[%s9567_s22 + $0xda8] sm:$0xff] }
 0x116   : > { %v636_v27 = vld [vmem:[%s9567_s22 + $0xc20] sm:$0xff] }
 0x117   : > { %v684_v17 = vld [vmem:[%s9567_s22 + $0xda0] sm:$0xff] }
 0x118   : > { %6589 = vmatpush1.bf16.msra.mxu0 %v8286_v32  ;;  %6917 = vmatpush1.bf16.msra.mxu1 %v8288_v33  ;;  %v8351_v32 = vcombine.high %v632_v26, %v636_v27  ;;  %v8353_v33 = vcombine.high %v633_v28, %v637_v29 }
 0x119   : > { %6590 = vmatprep.subr.bf16.mxu0 %v8295_v34  ;;  %6918 = vmatprep.subr.bf16.mxu1 %v8297_v35  ;;  %v640_v34 = vld [vmem:[%s9567_s22 + $0xc40] sm:$0xff] }
 0x11a   : > { %v644_v35 = vld [vmem:[%s9567_s22 + $0xc60] sm:$0xff] }
 0x11c   : > { %6591 = vmatpush1.bf16.msra.mxu0 %v8294_v40  ;;  %6919 = vmatpush1.bf16.msra.mxu1 %v8296_v41  ;;  %v8350_v40 = vcombine.low %v632_v26, %v636_v27  ;;  %v8352_v41 = vcombine.low %v633_v28, %v637_v29  ;;  %v688_v26 = vld [vmem:[%s9567_s22 + $0xdc0] sm:$0xff]  ;;  %v689_v28 = vld [vmem:[%s9567_s22 + $0xdc8] sm:$0xff] }
 0x11d   : > { %6592 = vmatprep.subr.bf16.mxu0 %v8303_v42  ;;  %6920 = vmatprep.subr.bf16.mxu1 %v8305_v43  ;;  %v8359_v42 = vcombine.high %v640_v34, %v644_v35  ;;  %v8361_v43 = vcombine.high %v641_v37, %v645_v38  ;;  %v692_v27 = vld [vmem:[%s9567_s22 + $0xde0] sm:$0xff]  ;;  %v693_v29 = vld [vmem:[%s9567_s22 + $0xde8] sm:$0xff] }
 0x120   : > { %6593 = vmatpush1.bf16.msra.mxu0 %v8302_v48  ;;  %6921 = vmatpush1.bf16.msra.mxu1 %v8304_v49  ;;  %v8358_v48 = vcombine.low %v640_v34, %v644_v35  ;;  %v8360_v49 = vcombine.low %v641_v37, %v645_v38  ;;  %v696_v34 = vld [vmem:[%s9567_s22 + $0xe00] sm:$0xff]  ;;  %v697_v37 = vld [vmem:[%s9567_s22 + $0xe08] sm:$0xff] }
 0x121   : > { %6594 = vmatprep.subr.bf16.mxu0 %v8311_v50  ;;  %6922 = vmatprep.subr.bf16.mxu1 %v8313_v51  ;;  %v8367_v50 = vcombine.high %v648_v44, %v652_v45  ;;  %v8369_v51 = vcombine.high %v649_v46, %v653_v47  ;;  %v700_v35 = vld [vmem:[%s9567_s22 + $0xe20] sm:$0xff]  ;;  %v701_v38 = vld [vmem:[%s9567_s22 + $0xe28] sm:$0xff] }
 0x124   : > { %6595 = vmatpush1.bf16.msra.mxu0 %v8310_v58  ;;  %6923 = vmatpush1.bf16.msra.mxu1 %v8312_v59  ;;  %v8366_v58 = vcombine.low %v648_v44, %v652_v45  ;;  %v8368_v59 = vcombine.low %v649_v46, %v653_v47  ;;  %v704_v44 = vld [vmem:[%s9567_s22 + $0xe40] sm:$0xff]  ;;  %v705_v46 = vld [vmem:[%s9567_s22 + $0xe48] sm:$0xff] }
 0x125   : > { %6596 = vmatprep.subr.bf16.mxu0 %v8319_v60  ;;  %6924 = vmatprep.subr.bf16.mxu1 %v8321_v61  ;;  %v8375_v60 = vcombine.high %v656_v52, %v660_v54  ;;  %v8377_v61 = vcombine.high %v657_v55, %v661_v56  ;;  %v708_v45 = vld [vmem:[%s9567_s22 + $0xe60] sm:$0xff]  ;;  %v709_v47 = vld [vmem:[%s9567_s22 + $0xe68] sm:$0xff] }
 0x128   : > { %6597 = vmatpush1.bf16.msra.mxu0 %v8318_v2  ;;  %6925 = vmatpush1.bf16.msra.mxu1 %v8320_v3  ;;  %v8374_v2 = vcombine.low %v656_v52, %v660_v54  ;;  %v8376_v3 = vcombine.low %v657_v55, %v661_v56  ;;  %v712_v52 = vld [vmem:[%s9567_s22 + $0xe80] sm:$0xff]  ;;  %v713_v55 = vld [vmem:[%s9567_s22 + $0xe88] sm:$0xff] }
 0x129   : > { %6598 = vmatprep.subr.bf16.mxu0 %v8327_v4  ;;  %6926 = vmatprep.subr.bf16.mxu1 %v8329_v5  ;;  %v8383_v4 = vcombine.high %v664_v62, %v668_v63  ;;  %v8385_v5 = vcombine.high %v665_v0, %v669_v1  ;;  %v716_v54 = vld [vmem:[%s9567_s22 + $0xea0] sm:$0xff]  ;;  %v717_v56 = vld [vmem:[%s9567_s22 + $0xea8] sm:$0xff] }
 0x12c   : > { %6599 = vmatpush1.bf16.msra.mxu0 %v8326_v10  ;;  %6927 = vmatpush1.bf16.msra.mxu1 %v8328_v11  ;;  %v8382_v10 = vcombine.low %v664_v62, %v668_v63  ;;  %v8384_v11 = vcombine.low %v665_v0, %v669_v1  ;;  %v720_v62 = vld [vmem:[%s9567_s22 + $0xec0] sm:$0xff]  ;;  %v721_v0 = vld [vmem:[%s9567_s22 + $0xec8] sm:$0xff] }
 0x12d   : > { %6600 = vmatprep.subr.bf16.mxu0 %v8335_v13  ;;  %6928 = vmatprep.subr.bf16.mxu1 %v8337_v14  ;;  %v8391_v13 = vcombine.high %v672_v6, %v676_v7  ;;  %v8393_v14 = vcombine.high %v673_v8, %v677_v9  ;;  %v724_v63 = vld [vmem:[%s9567_s22 + $0xee0] sm:$0xff]  ;;  %v725_v1 = vld [vmem:[%s9567_s22 + $0xee8] sm:$0xff] }
 0x130   : > { %6601 = vmatpush1.bf16.msra.mxu0 %v8334_v20  ;;  %6929 = vmatpush1.bf16.msra.mxu1 %v8336_v21  ;;  %v8390_v20 = vcombine.low %v672_v6, %v676_v7  ;;  %v8392_v21 = vcombine.low %v673_v8, %v677_v9  ;;  %v728_v6 = vld [vmem:[%s9567_s22 + $0xf00] sm:$0xff]  ;;  %v729_v8 = vld [vmem:[%s9567_s22 + $0xf08] sm:$0xff] }
 0x131   : > { %6602 = vmatprep.subr.bf16.mxu0 %v8343_v23  ;;  %6930 = vmatprep.subr.bf16.mxu1 %v8345_v24  ;;  %v8399_v23 = vcombine.high %v680_v16, %v684_v17  ;;  %v8401_v24 = vcombine.high %v681_v18, %v685_v19  ;;  %v732_v7 = vld [vmem:[%s9567_s22 + $0xf20] sm:$0xff]  ;;  %v733_v9 = vld [vmem:[%s9567_s22 + $0xf28] sm:$0xff] }
 0x134   : > { %6603 = vmatpush1.bf16.msra.mxu0 %v8342_v30  ;;  %6931 = vmatpush1.bf16.msra.mxu1 %v8344_v31  ;;  %v8398_v30 = vcombine.low %v680_v16, %v684_v17  ;;  %v8400_v31 = vcombine.low %v681_v18, %v685_v19  ;;  %v736_v16 = vld [vmem:[%s9567_s22 + $0xf40] sm:$0xff]  ;;  %v737_v18 = vld [vmem:[%s9567_s22 + $0xf48] sm:$0xff] }
 0x135   : > { %6613 = vmatprep.subr.bf16.mxu0 %v8351_v32  ;;  %6941 = vmatprep.subr.bf16.mxu1 %v8353_v33  ;;  %v8407_v32 = vcombine.high %v688_v26, %v692_v27  ;;  %v8409_v33 = vcombine.high %v689_v28, %v693_v29  ;;  %v740_v17 = vld [vmem:[%s9567_s22 + $0xf60] sm:$0xff]  ;;  %v741_v19 = vld [vmem:[%s9567_s22 + $0xf68] sm:$0xff] }
 0x137   : > { %6605 = vmatmul.mubr.bf16.vlgmr.msra.gmra.mrb[0].mxu0 %v9809_v36  ;;  %6933 = vmatmul.mubr.bf16.vlgmr.msra.gmra.mrb[0].mxu1 %v9809_v36 }
 0x138   : > { %6614 = vmatpush1.bf16.msra.mxu0 %v8350_v40  ;;  %6942 = vmatpush1.bf16.msra.mxu1 %v8352_v41  ;;  %v8406_v40 = vcombine.low %v688_v26, %v692_v27  ;;  %v8408_v41 = vcombine.low %v689_v28, %v693_v29  ;;  %v744_v26 = vld [vmem:[%s9567_s22 + $0xf80] sm:$0xff]  ;;  %v745_v28 = vld [vmem:[%s9567_s22 + $0xf88] sm:$0xff] }
 0x139   : > { %6615 = vmatprep.subr.bf16.mxu0 %v8359_v42  ;;  %6943 = vmatprep.subr.bf16.mxu1 %v8361_v43  ;;  %v8415_v42 = vcombine.high %v696_v34, %v700_v35  ;;  %v8417_v43 = vcombine.high %v697_v37, %v701_v38  ;;  %v748_v27 = vld [vmem:[%s9567_s22 + $0xfa0] sm:$0xff]  ;;  %v749_v29 = vld [vmem:[%s9567_s22 + $0xfa8] sm:$0xff] }
 0x13a   : > { %6645 = vmatprep.mubr.bf16.mxu0 %v9819_v25  ;;  %6973 = vmatprep.mubr.bf16.mxu1 %v9819_v25 }
 0x13c   : > { %6616 = vmatpush1.bf16.msra.mxu0 %v8358_v48  ;;  %6944 = vmatpush1.bf16.msra.mxu1 %v8360_v49  ;;  %v8414_v48 = vcombine.low %v696_v34, %v700_v35  ;;  %v8416_v49 = vcombine.low %v697_v37, %v701_v38  ;;  %v752_v34 = vld [vmem:[%s9567_s22 + $0xfc0] sm:$0xff]  ;;  %v753_v37 = vld [vmem:[%s9567_s22 + $0xfc8] sm:$0xff] }
 0x13d   : > { %6617 = vmatprep.subr.bf16.mxu0 %v8367_v50  ;;  %6945 = vmatprep.subr.bf16.mxu1 %v8369_v51  ;;  %v8423_v50 = vcombine.high %v704_v44, %v708_v45  ;;  %v8425_v51 = vcombine.high %v705_v46, %v709_v47  ;;  %v756_v35 = vld [vmem:[%s9567_s22 + $0xfe0] sm:$0xff]  ;;  %v757_v38 = vld [vmem:[%s9567_s22 + $0xfe8] sm:$0xff] }
 0x140   : > { %6618 = vmatpush1.bf16.msra.mxu0 %v8366_v58  ;;  %6946 = vmatpush1.bf16.msra.mxu1 %v8368_v59  ;;  %v8422_v58 = vcombine.low %v704_v44, %v708_v45  ;;  %v8424_v59 = vcombine.low %v705_v46, %v709_v47  ;;  %v760_v44 = vld [vmem:[%s9567_s22 + $0x1000] sm:$0xff]  ;;  %v761_v46 = vld [vmem:[%s9567_s22 + $0x1008] sm:$0xff] }
 0x141   : > { %6619 = vmatprep.subr.bf16.mxu0 %v8375_v60  ;;  %6947 = vmatprep.subr.bf16.mxu1 %v8377_v61  ;;  %v8431_v60 = vcombine.high %v712_v52, %v716_v54  ;;  %v8433_v61 = vcombine.high %v713_v55, %v717_v56  ;;  %v764_v45 = vld [vmem:[%s9567_s22 + $0x1020] sm:$0xff]  ;;  %v765_v47 = vld [vmem:[%s9567_s22 + $0x1028] sm:$0xff] }
 0x144   : > { %6620 = vmatpush1.bf16.msra.mxu0 %v8374_v2  ;;  %6948 = vmatpush1.bf16.msra.mxu1 %v8376_v3  ;;  %v8430_v2 = vcombine.low %v712_v52, %v716_v54  ;;  %v8432_v3 = vcombine.low %v713_v55, %v717_v56  ;;  %v768_v52 = vld [vmem:[%s9567_s22 + $0x1040] sm:$0xff]  ;;  %v9887_v55 = vcombine.low %v9813_v39, %v9813_v39  ;;  %v769_v56 = vld [vmem:[%s9567_s22 + $0x1048] sm:$0xff] }
 0x145   : > { %6621 = vmatprep.subr.bf16.mxu0 %v8383_v4  ;;  %6949 = vmatprep.subr.bf16.mxu1 %v8385_v5  ;;  %v8439_v4 = vcombine.high %v720_v62, %v724_v63  ;;  %v8441_v5 = vcombine.high %v721_v0, %v725_v1  ;;  %v772_v54 = vld [vmem:[%s9567_s22 + $0x1060] sm:$0xff] }
 0x148   : > { %6622 = vmatpush1.bf16.msra.mxu0 %v8382_v10  ;;  %6950 = vmatpush1.bf16.msra.mxu1 %v8384_v11  ;;  %v8438_v10 = vcombine.low %v720_v62, %v724_v63  ;;  %v8440_v11 = vcombine.low %v721_v0, %v725_v1  ;;  %v8487_v62 = vcombine.high %v768_v52, %v772_v54  ;;  %v776_v0 = vld [vmem:[%s9567_s22 + $0x1080] sm:$0xff] }
 0x149   : > { %6623 = vmatprep.subr.bf16.mxu0 %v8391_v13  ;;  %6951 = vmatprep.subr.bf16.mxu1 %v8393_v14  ;;  %v8447_v13 = vcombine.high %v728_v6, %v732_v7  ;;  %v8449_v14 = vcombine.high %v729_v8, %v733_v9  ;;  %v780_v1 = vld [vmem:[%s9567_s22 + $0x10a0] sm:$0xff] }
 0x14c   : > { %6624 = vmatpush1.bf16.msra.mxu0 %v8390_v20  ;;  %6952 = vmatpush1.bf16.msra.mxu1 %v8392_v21  ;;  %v8446_v20 = vcombine.low %v728_v6, %v732_v7  ;;  %v8448_v21 = vcombine.low %v729_v8, %v733_v9  ;;  %v8495_v6 = vcombine.high %v776_v0, %v780_v1  ;;  %v784_v8 = vld [vmem:[%s9567_s22 + $0x10c0] sm:$0xff] }
 0x14d   : > { %6625 = vmatprep.subr.bf16.mxu0 %v8399_v23  ;;  %6953 = vmatprep.subr.bf16.mxu1 %v8401_v24  ;;  %v8455_v23 = vcombine.high %v736_v16, %v740_v17  ;;  %v8457_v24 = vcombine.high %v737_v18, %v741_v19  ;;  %v788_v9 = vld [vmem:[%s9567_s22 + $0x10e0] sm:$0xff] }
 0x150   : > { %6626 = vmatpush1.bf16.msra.mxu0 %v8398_v30  ;;  %6954 = vmatpush1.bf16.msra.mxu1 %v8400_v31  ;;  %v8454_v30 = vcombine.low %v736_v16, %v740_v17  ;;  %v8456_v31 = vcombine.low %v737_v18, %v741_v19  ;;  %v8503_v16 = vcombine.high %v784_v8, %v788_v9  ;;  %v792_v18 = vld [vmem:[%s9567_s22 + $0x1100] sm:$0xff] }
 0x151   : > { %6627 = vmatprep.subr.bf16.mxu0 %v8407_v32  ;;  %6955 = vmatprep.subr.bf16.mxu1 %v8409_v33  ;;  %v8463_v32 = vcombine.high %v744_v26, %v748_v27  ;;  %v8465_v33 = vcombine.high %v745_v28, %v749_v29  ;;  %v796_v19 = vld [vmem:[%s9567_s22 + $0x1120] sm:$0xff] }
 0x154   : > { %6628 = vmatpush1.bf16.msra.mxu0 %v8406_v40  ;;  %6956 = vmatpush1.bf16.msra.mxu1 %v8408_v41  ;;  %v8462_v40 = vcombine.low %v744_v26, %v748_v27  ;;  %v8464_v41 = vcombine.low %v745_v28, %v749_v29  ;;  %v8511_v26 = vcombine.high %v792_v18, %v796_v19  ;;  %v800_v28 = vld [vmem:[%s9567_s22 + $0x1140] sm:$0xff] }
 0x155   : > { %6629 = vmatprep.subr.bf16.mxu0 %v8415_v42  ;;  %6957 = vmatprep.subr.bf16.mxu1 %v8417_v43  ;;  %v8471_v42 = vcombine.high %v752_v34, %v756_v35  ;;  %v8473_v43 = vcombine.high %v753_v37, %v757_v38  ;;  %v804_v29 = vld [vmem:[%s9567_s22 + $0x1160] sm:$0xff] }
 0x158   : > { %6630 = vmatpush1.bf16.msra.mxu0 %v8414_v48  ;;  %6958 = vmatpush1.bf16.msra.mxu1 %v8416_v49  ;;  %v8470_v48 = vcombine.low %v752_v34, %v756_v35  ;;  %v8472_v49 = vcombine.low %v753_v37, %v757_v38  ;;  %v8519_v34 = vcombine.high %v800_v28, %v804_v29  ;;  %v808_v37 = vld [vmem:[%s9567_s22 + $0x1180] sm:$0xff] }
 0x159   : > { %6631 = vmatprep.subr.bf16.mxu0 %v8423_v50  ;;  %6959 = vmatprep.subr.bf16.mxu1 %v8425_v51  ;;  %v8479_v50 = vcombine.high %v760_v44, %v764_v45  ;;  %v8481_v51 = vcombine.high %v761_v46, %v765_v47  ;;  %v812_v38 = vld [vmem:[%s9567_s22 + $0x11a0] sm:$0xff] }
 0x15c   : > { %6632 = vmatpush1.bf16.msra.mxu0 %v8422_v58  ;;  %6960 = vmatpush1.bf16.msra.mxu1 %v8424_v59  ;;  %v773_v58 = vld [vmem:[%s9567_s22 + $0x1068] sm:$0xff]  ;;  %v9891_v59 = vld [vmem:[#allocation2 + $0x20] sm:$0xff] }
 0x15d   : > { %6633 = vmatprep.subr.bf16.mxu0 %v8431_v60  ;;  %6961 = vmatprep.subr.bf16.mxu1 %v8433_v61  ;;  %v8478_v60 = vcombine.low %v760_v44, %v764_v45  ;;  %v8480_v61 = vcombine.low %v761_v46, %v765_v47  ;;  %v8489_v63 = vcombine.high %v769_v56, %v773_v58  ;;  %v816_v46 = vld [vmem:[%s9567_s22 + $0x11c0] sm:$0xff] }
 0x15e   : > { %v9897_v39 = vcombine.high %v9891_v59, %v9891_v59  ;;  %v8527_v44 = vcombine.high %v808_v37, %v812_v38  ;;  %v820_v47 = vld [vmem:[%s9567_s22 + $0x11e0] sm:$0xff] }
 0x160   : > { %6634 = vmatpush1.bf16.msra.mxu0 %v8430_v2  ;;  %6962 = vmatpush1.bf16.msra.mxu1 %v8432_v3  ;;  %v777_v2 = vld [vmem:[%s9567_s22 + $0x1088] sm:$0xff] }
 0x161   : > { %6635 = vmatprep.subr.bf16.mxu0 %v8439_v4  ;;  %6963 = vmatprep.subr.bf16.mxu1 %v8441_v5  ;;  %v781_v3 = vld [vmem:[%s9567_s22 + $0x10a8] sm:$0xff]  ;;  %v8486_v4 = vcombine.low %v768_v52, %v772_v54  ;;  %v8488_v5 = vcombine.low %v769_v56, %v773_v58  ;;  %v8535_v52 = vcombine.high %v816_v46, %v820_v47  ;;  %v824_v56 = vld [vmem:[%s9567_s22 + $0x1200] sm:$0xff] }
 0x162   : > { %v8497_v7 = vcombine.high %v777_v2, %v781_v3  ;;  %v828_v58 = vld [vmem:[%s9567_s22 + $0x1220] sm:$0xff] }
 0x164   : > { %6636 = vmatpush1.bf16.msra.mxu0 %v8438_v10  ;;  %6964 = vmatpush1.bf16.msra.mxu1 %v8440_v11  ;;  %v785_v10 = vld [vmem:[%s9567_s22 + $0x10c8] sm:$0xff] }
 0x165   : > { %6637 = vmatprep.subr.bf16.mxu0 %v8447_v13  ;;  %6965 = vmatprep.subr.bf16.mxu1 %v8449_v14  ;;  %v789_v11 = vld [vmem:[%s9567_s22 + $0x10e8] sm:$0xff]  ;;  %v8494_v13 = vcombine.low %v776_v0, %v780_v1  ;;  %v8496_v14 = vcombine.low %v777_v2, %v781_v3  ;;  %v8543_v0 = vcombine.high %v824_v56, %v828_v58  ;;  %v832_v2 = vld [vmem:[%s9567_s22 + $0x1240] sm:$0xff] }
 0x166   : > { %v8505_v17 = vcombine.high %v785_v10, %v789_v11  ;;  %v836_v3 = vld [vmem:[%s9567_s22 + $0x1260] sm:$0xff] }
 0x168   : > { %6638 = vmatpush1.bf16.msra.mxu0 %v8446_v20  ;;  %6966 = vmatpush1.bf16.msra.mxu1 %v8448_v21  ;;  %v793_v20 = vld [vmem:[%s9567_s22 + $0x1108] sm:$0xff] }
 0x169   : > { %6639 = vmatprep.subr.bf16.mxu0 %v8455_v23  ;;  %6967 = vmatprep.subr.bf16.mxu1 %v8457_v24  ;;  %v797_v21 = vld [vmem:[%s9567_s22 + $0x1128] sm:$0xff]  ;;  %v8502_v23 = vcombine.low %v784_v8, %v788_v9  ;;  %v8504_v24 = vcombine.low %v785_v10, %v789_v11  ;;  %v8551_v8 = vcombine.high %v832_v2, %v836_v3  ;;  %v840_v10 = vld [vmem:[%s9567_s22 + $0x1280] sm:$0xff] }
 0x16a   : > { %v8513_v27 = vcombine.high %v793_v20, %v797_v21  ;;  %v844_v11 = vld [vmem:[%s9567_s22 + $0x12a0] sm:$0xff] }
 0x16c   : > { %6640 = vmatpush1.bf16.msra.mxu0 %v8454_v30  ;;  %6968 = vmatpush1.bf16.msra.mxu1 %v8456_v31  ;;  %v801_v30 = vld [vmem:[%s9567_s22 + $0x1148] sm:$0xff] }
 0x16d   : > { %6641 = vmatprep.subr.bf16.mxu0 %v8463_v32  ;;  %6969 = vmatprep.subr.bf16.mxu1 %v8465_v33  ;;  %v805_v31 = vld [vmem:[%s9567_s22 + $0x1168] sm:$0xff]  ;;  %v8510_v32 = vcombine.low %v792_v18, %v796_v19  ;;  %v8512_v33 = vcombine.low %v793_v20, %v797_v21  ;;  %v8559_v18 = vcombine.high %v840_v10, %v844_v11  ;;  %v848_v20 = vld [vmem:[%s9567_s22 + $0x12c0] sm:$0xff] }
 0x16e   : > { %v8521_v35 = vcombine.high %v801_v30, %v805_v31  ;;  %v852_v21 = vld [vmem:[%s9567_s22 + $0x12e0] sm:$0xff] }
 0x170   : > { %6642 = vmatpush1.bf16.msra.mxu0 %v8462_v40  ;;  %6970 = vmatpush1.bf16.msra.mxu1 %v8464_v41  ;;  %v809_v40 = vld [vmem:[%s9567_s22 + $0x1188] sm:$0xff] }
 0x171   : > { %6643 = vmatprep.subr.bf16.mxu0 %v8471_v42  ;;  %6971 = vmatprep.subr.bf16.mxu1 %v8473_v43  ;;  %v813_v41 = vld [vmem:[%s9567_s22 + $0x11a8] sm:$0xff]  ;;  %v8518_v42 = vcombine.low %v800_v28, %v804_v29  ;;  %v8520_v43 = vcombine.low %v801_v30, %v805_v31  ;;  %v8567_v28 = vcombine.high %v848_v20, %v852_v21  ;;  %v856_v30 = vld [vmem:[%s9567_s22 + $0x1300] sm:$0xff] }
 0x172   : > { %v8529_v45 = vcombine.high %v809_v40, %v813_v41  ;;  %v860_v31 = vld [vmem:[%s9567_s22 + $0x1320] sm:$0xff] }
 0x174   : > { %6644 = vmatpush1.bf16.msra.mxu0 %v8470_v48  ;;  %6972 = vmatpush1.bf16.msra.mxu1 %v8472_v49  ;;  %v817_v48 = vld [vmem:[%s9567_s22 + $0x11c8] sm:$0xff] }
 0x175   : > { %6654 = vmatprep.subr.bf16.mxu0 %v8479_v50  ;;  %6982 = vmatprep.subr.bf16.mxu1 %v8481_v51  ;;  %v821_v49 = vld [vmem:[%s9567_s22 + $0x11e8] sm:$0xff]  ;;  %v8526_v50 = vcombine.low %v808_v37, %v812_v38  ;;  %v8528_v51 = vcombine.low %v809_v40, %v813_v41  ;;  %v8575_v37 = vcombine.high %v856_v30, %v860_v31  ;;  %v864_v40 = vld [vmem:[%s9567_s22 + $0x1340] sm:$0xff] }
 0x176   : > { %v8537_v54 = vcombine.high %v817_v48, %v821_v49  ;;  %v868_v41 = vld [vmem:[%s9567_s22 + $0x1360] sm:$0xff] }
 0x177   : > { %6646 = vmatmul.mubr.bf16.vlgmr.msra.gmra.mrb[0].mxu0 %v9887_v55  ;;  %6974 = vmatmul.mubr.bf16.vlgmr.msra.gmra.mrb[0].mxu1 %v9887_v55 }
 0x178   : > { %6655 = vmatpush1.bf16.msra.mxu0 %v8478_v60  ;;  %6983 = vmatpush1.bf16.msra.mxu1 %v8480_v61  ;;  %v825_v60 = vld [vmem:[%s9567_s22 + $0x1208] sm:$0xff] }
 0x179   : > { %6656 = vmatprep.subr.bf16.mxu0 %v8487_v62  ;;  %6984 = vmatprep.subr.bf16.mxu1 %v8489_v63  ;;  %v829_v61 = vld [vmem:[%s9567_s22 + $0x1228] sm:$0xff]  ;;  %v8534_v62 = vcombine.low %v816_v46, %v820_v47  ;;  %v8536_v63 = vcombine.low %v817_v48, %v821_v49  ;;  %v8583_v46 = vcombine.high %v864_v40, %v868_v41  ;;  %v872_v48 = vld [vmem:[%s9567_s22 + $0x1380] sm:$0xff] }
 0x17a   : > { %6686 = vmatprep.mubr.bf16.mxu0 %v9897_v39  ;;  %7014 = vmatprep.mubr.bf16.mxu1 %v9897_v39  ;;  %v8545_v1 = vcombine.high %v825_v60, %v829_v61  ;;  %v876_v49 = vld [vmem:[%s9567_s22 + $0x13a0] sm:$0xff] }
 0x17c   : > { %6657 = vmatpush1.bf16.msra.mxu0 %v8486_v4  ;;  %6985 = vmatpush1.bf16.msra.mxu1 %v8488_v5  ;;  %v833_v4 = vld [vmem:[%s9567_s22 + $0x1248] sm:$0xff] }
 0x17d   : > { %6658 = vmatprep.subr.bf16.mxu0 %v8495_v6  ;;  %6986 = vmatprep.subr.bf16.mxu1 %v8497_v7  ;;  %v837_v5 = vld [vmem:[%s9567_s22 + $0x1268] sm:$0xff]  ;;  %v8542_v6 = vcombine.low %v824_v56, %v828_v58  ;;  %v8544_v7 = vcombine.low %v825_v60, %v829_v61  ;;  %v8591_v56 = vcombine.high %v872_v48, %v876_v49  ;;  %v880_v60 = vld [vmem:[%s9567_s22 + $0x13c0] sm:$0xff] }
 0x17e   : > { %v8553_v9 = vcombine.high %v833_v4, %v837_v5  ;;  %v884_v61 = vld [vmem:[%s9567_s22 + $0x13e0] sm:$0xff] }
 0x180   : > { %6659 = vmatpush1.bf16.msra.mxu0 %v8494_v13  ;;  %6987 = vmatpush1.bf16.msra.mxu1 %v8496_v14  ;;  %v841_v13 = vld [vmem:[%s9567_s22 + $0x1288] sm:$0xff] }
 0x181   : > { %6660 = vmatprep.subr.bf16.mxu0 %v8503_v16  ;;  %6988 = vmatprep.subr.bf16.mxu1 %v8505_v17  ;;  %v845_v14 = vld [vmem:[%s9567_s22 + $0x12a8] sm:$0xff]  ;;  %v8550_v16 = vcombine.low %v832_v2, %v836_v3  ;;  %v8552_v17 = vcombine.low %v833_v4, %v837_v5  ;;  %v8599_v2 = vcombine.high %v880_v60, %v884_v61  ;;  %v888_v4 = vld [vmem:[%s9567_s22 + $0x1400] sm:$0xff] }
 0x182   : > { %v8561_v19 = vcombine.high %v841_v13, %v845_v14  ;;  %v892_v5 = vld [vmem:[%s9567_s22 + $0x1420] sm:$0xff] }
 0x184   : > { %6661 = vmatpush1.bf16.msra.mxu0 %v8502_v23  ;;  %6989 = vmatpush1.bf16.msra.mxu1 %v8504_v24  ;;  %v849_v23 = vld [vmem:[%s9567_s22 + $0x12c8] sm:$0xff] }
 0x185   : > { %6662 = vmatprep.subr.bf16.mxu0 %v8511_v26  ;;  %6990 = vmatprep.subr.bf16.mxu1 %v8513_v27  ;;  %v853_v24 = vld [vmem:[%s9567_s22 + $0x12e8] sm:$0xff]  ;;  %v8558_v26 = vcombine.low %v840_v10, %v844_v11  ;;  %v8560_v27 = vcombine.low %v841_v13, %v845_v14  ;;  %v8607_v10 = vcombine.high %v888_v4, %v892_v5  ;;  %v896_v13 = vld [vmem:[%s9567_s22 + $0x1440] sm:$0xff] }
 0x186   : > { %v8569_v29 = vcombine.high %v849_v23, %v853_v24  ;;  %v900_v14 = vld [vmem:[%s9567_s22 + $0x1460] sm:$0xff] }
 0x188   : > { %6663 = vmatpush1.bf16.msra.mxu0 %v8510_v32  ;;  %6991 = vmatpush1.bf16.msra.mxu1 %v8512_v33  ;;  %v857_v32 = vld [vmem:[%s9567_s22 + $0x1308] sm:$0xff] }
 0x189   : > { %6664 = vmatprep.subr.bf16.mxu0 %v8519_v34  ;;  %6992 = vmatprep.subr.bf16.mxu1 %v8521_v35  ;;  %v861_v33 = vld [vmem:[%s9567_s22 + $0x1328] sm:$0xff]  ;;  %v8566_v34 = vcombine.low %v848_v20, %v852_v21  ;;  %v8568_v35 = vcombine.low %v849_v23, %v853_v24  ;;  %v8606_v20 = vcombine.low %v888_v4, %v892_v5 }
 0x18a   : > { %v8577_v38 = vcombine.high %v857_v32, %v861_v33  ;;  %v8615_v23 = vcombine.high %v896_v13, %v900_v14 }
 0x18c   : > { %6665 = vmatpush1.bf16.msra.mxu0 %v8518_v42  ;;  %6993 = vmatpush1.bf16.msra.mxu1 %v8520_v43  ;;  %v865_v42 = vld [vmem:[%s9567_s22 + $0x1348] sm:$0xff] }
 0x18d   : > { %6666 = vmatprep.subr.bf16.mxu0 %v8527_v44  ;;  %6994 = vmatprep.subr.bf16.mxu1 %v8529_v45  ;;  %v869_v43 = vld [vmem:[%s9567_s22 + $0x1368] sm:$0xff]  ;;  %v8574_v44 = vcombine.low %v856_v30, %v860_v31  ;;  %v8576_v45 = vcombine.low %v857_v32, %v861_v33  ;;  %v8614_v30 = vcombine.low %v896_v13, %v900_v14 }
 0x18e   : > { %v8585_v47 = vcombine.high %v865_v42, %v869_v43 }
 0x190   : > { %6667 = vmatpush1.bf16.msra.mxu0 %v8526_v50  ;;  %6995 = vmatpush1.bf16.msra.mxu1 %v8528_v51  ;;  %v873_v50 = vld [vmem:[%s9567_s22 + $0x1388] sm:$0xff] }
 0x191   : > { %6668 = vmatprep.subr.bf16.mxu0 %v8535_v52  ;;  %6996 = vmatprep.subr.bf16.mxu1 %v8537_v54  ;;  %v877_v51 = vld [vmem:[%s9567_s22 + $0x13a8] sm:$0xff]  ;;  %v8582_v52 = vcombine.low %v864_v40, %v868_v41  ;;  %v8584_v54 = vcombine.low %v865_v42, %v869_v43 }
 0x192   : > { %v8593_v58 = vcombine.high %v873_v50, %v877_v51 }
 0x194   : > { %6669 = vmatpush1.bf16.msra.mxu0 %v8534_v62  ;;  %6997 = vmatpush1.bf16.msra.mxu1 %v8536_v63  ;;  %v881_v62 = vld [vmem:[%s9567_s22 + $0x13c8] sm:$0xff] }
 0x195   : > { %6670 = vmatprep.subr.bf16.mxu0 %v8543_v0  ;;  %6998 = vmatprep.subr.bf16.mxu1 %v8545_v1  ;;  %v885_v63 = vld [vmem:[%s9567_s22 + $0x13e8] sm:$0xff]  ;;  %v8590_v0 = vcombine.low %v872_v48, %v876_v49  ;;  %v8592_v1 = vcombine.low %v873_v50, %v877_v51 }
 0x196   : > { %v8601_v3 = vcombine.high %v881_v62, %v885_v63 }
 0x198   : > { %6671 = vmatpush1.bf16.msra.mxu0 %v8542_v6  ;;  %6999 = vmatpush1.bf16.msra.mxu1 %v8544_v7  ;;  %v889_v6 = vld [vmem:[%s9567_s22 + $0x1408] sm:$0xff] }
 0x199   : > { %6672 = vmatprep.subr.bf16.mxu0 %v8551_v8  ;;  %7000 = vmatprep.subr.bf16.mxu1 %v8553_v9  ;;  %v893_v7 = vld [vmem:[%s9567_s22 + $0x1428] sm:$0xff]  ;;  %v8598_v8 = vcombine.low %v880_v60, %v884_v61  ;;  %v8600_v9 = vcombine.low %v881_v62, %v885_v63 }
 0x19a   : > { %v8609_v11 = vcombine.high %v889_v6, %v893_v7  ;;  %v8608_v21 = vcombine.low %v889_v6, %v893_v7 }
 0x19c   : > { %6673 = vmatpush1.bf16.msra.mxu0 %v8550_v16  ;;  %7001 = vmatpush1.bf16.msra.mxu1 %v8552_v17  ;;  %v9965_v16 = vcombine.low %v9891_v59, %v9891_v59  ;;  %v897_v17 = vld [vmem:[%s9567_s22 + $0x1448] sm:$0xff] }
 0x19d   : > { %6674 = vmatprep.subr.bf16.mxu0 %v8559_v18  ;;  %7002 = vmatprep.subr.bf16.mxu1 %v8561_v19  ;;  %v901_v18 = vld [vmem:[%s9567_s22 + $0x1468] sm:$0xff] }
 0x19e   : > { %v9969_v19 = vld [vmem:[#allocation2 + $0x28] sm:$0xff]  ;;  %v8617_v24 = vcombine.high %v897_v17, %v901_v18  ;;  %v8616_v31 = vcombine.low %v897_v17, %v901_v18 }
 0x19f   : > { %v9975_v59 = vcombine.high %v9969_v19, %v9969_v19 }
 0x1a0   : > { %6675 = vmatpush1.bf16.msra.mxu0 %v8558_v26  ;;  %7003 = vmatpush1.bf16.msra.mxu1 %v8560_v27  ;;  %v904_v26 = vld [vmem:[%s9567_s22 + $0x1480] sm:$0xff] }
 0x1a1   : > { %6676 = vmatprep.subr.bf16.mxu0 %v8567_v28  ;;  %7004 = vmatprep.subr.bf16.mxu1 %v8569_v29  ;;  %v908_v27 = vld [vmem:[%s9567_s22 + $0x14a0] sm:$0xff]  ;;  %v905_v28 = vld [vmem:[%s9567_s22 + $0x1488] sm:$0xff] }
 0x1a2   : > { %v909_v29 = vld [vmem:[%s9567_s22 + $0x14a8] sm:$0xff]  ;;  %v8623_v32 = vcombine.high %v904_v26, %v908_v27  ;;  %v8622_v40 = vcombine.low %v904_v26, %v908_v27 }
 0x1a3   : > { %v8625_v33 = vcombine.high %v905_v28, %v909_v29  ;;  %v8624_v41 = vcombine.low %v905_v28, %v909_v29 }
 0x1a4   : > { %6677 = vmatpush1.bf16.msra.mxu0 %v8566_v34  ;;  %7005 = vmatpush1.bf16.msra.mxu1 %v8568_v35  ;;  %v912_v34 = vld [vmem:[%s9567_s22 + $0x14c0] sm:$0xff] }
 0x1a5   : > { %6678 = vmatprep.subr.bf16.mxu0 %v8575_v37  ;;  %7006 = vmatprep.subr.bf16.mxu1 %v8577_v38  ;;  %v916_v35 = vld [vmem:[%s9567_s22 + $0x14e0] sm:$0xff]  ;;  %v913_v37 = vld [vmem:[%s9567_s22 + $0x14c8] sm:$0xff] }
 0x1a6   : > { %v917_v38 = vld [vmem:[%s9567_s22 + $0x14e8] sm:$0xff]  ;;  %v8631_v42 = vcombine.high %v912_v34, %v916_v35  ;;  %v8630_v48 = vcombine.low %v912_v34, %v916_v35 }
 0x1a7   : > { %v8633_v43 = vcombine.high %v913_v37, %v917_v38  ;;  %v8632_v49 = vcombine.low %v913_v37, %v917_v38 }
 0x1a8   : > { %6679 = vmatpush1.bf16.msra.mxu0 %v8574_v44  ;;  %7007 = vmatpush1.bf16.msra.mxu1 %v8576_v45  ;;  %v920_v44 = vld [vmem:[%s9567_s22 + $0x1500] sm:$0xff] }
 0x1a9   : > { %6680 = vmatprep.subr.bf16.mxu0 %v8583_v46  ;;  %7008 = vmatprep.subr.bf16.mxu1 %v8585_v47  ;;  %v924_v45 = vld [vmem:[%s9567_s22 + $0x1520] sm:$0xff]  ;;  %v921_v46 = vld [vmem:[%s9567_s22 + $0x1508] sm:$0xff] }
 0x1aa   : > { %v925_v47 = vld [vmem:[%s9567_s22 + $0x1528] sm:$0xff]  ;;  %v8639_v50 = vcombine.high %v920_v44, %v924_v45  ;;  %v8638_v60 = vcombine.low %v920_v44, %v924_v45 }
 0x1ab   : > { %v8641_v51 = vcombine.high %v921_v46, %v925_v47  ;;  %v8640_v61 = vcombine.low %v921_v46, %v925_v47 }
 0x1ac   : > { %6681 = vmatpush1.bf16.msra.mxu0 %v8582_v52  ;;  %7009 = vmatpush1.bf16.msra.mxu1 %v8584_v54  ;;  %v928_v52 = vld [vmem:[%s9567_s22 + $0x1540] sm:$0xff] }
 0x1ad   : > { %6682 = vmatprep.subr.bf16.mxu0 %v8591_v56  ;;  %7010 = vmatprep.subr.bf16.mxu1 %v8593_v58  ;;  %v932_v54 = vld [vmem:[%s9567_s22 + $0x1560] sm:$0xff]  ;;  %v929_v56 = vld [vmem:[%s9567_s22 + $0x1548] sm:$0xff] }
 0x1ae   : > { %v933_v58 = vld [vmem:[%s9567_s22 + $0x1568] sm:$0xff]  ;;  %v8647_v62 = vcombine.high %v928_v52, %v932_v54  ;;  %v8646_v4 = vcombine.low %v928_v52, %v932_v54 }
 0x1af   : > { %v8649_v63 = vcombine.high %v929_v56, %v933_v58  ;;  %v8648_v5 = vcombine.low %v929_v56, %v933_v58 }
 0x1b0   : > { %6683 = vmatpush1.bf16.msra.mxu0 %v8590_v0  ;;  %7011 = vmatpush1.bf16.msra.mxu1 %v8592_v1  ;;  %v936_v0 = vld [vmem:[%s9567_s22 + $0x1580] sm:$0xff] }
 0x1b1   : > { %6684 = vmatprep.subr.bf16.mxu0 %v8599_v2  ;;  %7012 = vmatprep.subr.bf16.mxu1 %v8601_v3  ;;  %v940_v1 = vld [vmem:[%s9567_s22 + $0x15a0] sm:$0xff]  ;;  %v937_v2 = vld [vmem:[%s9567_s22 + $0x1588] sm:$0xff] }
 0x1b2   : > { %v941_v3 = vld [vmem:[%s9567_s22 + $0x15a8] sm:$0xff]  ;;  %v8655_v6 = vcombine.high %v936_v0, %v940_v1  ;;  %v8654_v13 = vcombine.low %v936_v0, %v940_v1 }
 0x1b3   : > { %v8657_v7 = vcombine.high %v937_v2, %v941_v3  ;;  %v8656_v14 = vcombine.low %v937_v2, %v941_v3 }
 0x1b4   : > { %6685 = vmatpush1.bf16.msra.mxu0 %v8598_v8  ;;  %7013 = vmatpush1.bf16.msra.mxu1 %v8600_v9  ;;  %v944_v8 = vld [vmem:[%s9567_s22 + $0x15c0] sm:$0xff] }
 0x1b5   : > { %6695 = vmatprep.subr.bf16.mxu0 %v8607_v10  ;;  %7023 = vmatprep.subr.bf16.mxu1 %v8609_v11  ;;  %v948_v9 = vld [vmem:[%s9567_s22 + $0x15e0] sm:$0xff]  ;;  %v945_v10 = vld [vmem:[%s9567_s22 + $0x15c8] sm:$0xff] }
 0x1b6   : > { %v949_v11 = vld [vmem:[%s9567_s22 + $0x15e8] sm:$0xff]  ;;  %v8663_v17 = vcombine.high %v944_v8, %v948_v9  ;;  %v8662_v26 = vcombine.low %v944_v8, %v948_v9 }
 0x1b7   : > { %6687 = vmatmul.mubr.bf16.vlgmr.msra.gmra.mrb[0].mxu0 %v9965_v16  ;;  %7015 = vmatmul.mubr.bf16.vlgmr.msra.gmra.mrb[0].mxu1 %v9965_v16  ;;  %v8665_v18 = vcombine.high %v945_v10, %v949_v11  ;;  %v8664_v27 = vcombine.low %v945_v10, %v949_v11 }
 0x1b8   : > { %6696 = vmatpush1.bf16.msra.mxu0 %v8606_v20  ;;  %7024 = vmatpush1.bf16.msra.mxu1 %v8608_v21  ;;  %v952_v20 = vld [vmem:[%s9567_s22 + $0x1600] sm:$0xff] }
 0x1b9   : > { %6697 = vmatprep.subr.bf16.mxu0 %v8615_v23  ;;  %7025 = vmatprep.subr.bf16.mxu1 %v8617_v24  ;;  %v956_v21 = vld [vmem:[%s9567_s22 + $0x1620] sm:$0xff]  ;;  %v953_v23 = vld [vmem:[%s9567_s22 + $0x1608] sm:$0xff] }
 0x1ba   : > { %6727 = vmatprep.mubr.bf16.mxu0 %v9975_v59  ;;  %7055 = vmatprep.mubr.bf16.mxu1 %v9975_v59  ;;  %v957_v24 = vld [vmem:[%s9567_s22 + $0x1628] sm:$0xff]  ;;  %v8671_v28 = vcombine.high %v952_v20, %v956_v21  ;;  %v8670_v34 = vcombine.low %v952_v20, %v956_v21 }
 0x1bb   : > { %v8673_v29 = vcombine.high %v953_v23, %v957_v24  ;;  %v8672_v35 = vcombine.low %v953_v23, %v957_v24 }
 0x1bc   : > { %6698 = vmatpush1.bf16.msra.mxu0 %v8614_v30  ;;  %7026 = vmatpush1.bf16.msra.mxu1 %v8616_v31  ;;  %v960_v30 = vld [vmem:[%s9567_s22 + $0x1640] sm:$0xff] }
 0x1bd   : > { %6699 = vmatprep.subr.bf16.mxu0 %v8623_v32  ;;  %7027 = vmatprep.subr.bf16.mxu1 %v8625_v33  ;;  %v964_v31 = vld [vmem:[%s9567_s22 + $0x1660] sm:$0xff]  ;;  %v961_v32 = vld [vmem:[%s9567_s22 + $0x1648] sm:$0xff] }
 0x1be   : > { %v965_v33 = vld [vmem:[%s9567_s22 + $0x1668] sm:$0xff]  ;;  %v8679_v37 = vcombine.high %v960_v30, %v964_v31  ;;  %v8678_v44 = vcombine.low %v960_v30, %v964_v31 }
 0x1bf   : > { %v8681_v38 = vcombine.high %v961_v32, %v965_v33  ;;  %v8680_v45 = vcombine.low %v961_v32, %v965_v33 }
 0x1c0   : > { %6700 = vmatpush1.bf16.msra.mxu0 %v8622_v40  ;;  %7028 = vmatpush1.bf16.msra.mxu1 %v8624_v41  ;;  %v968_v40 = vld [vmem:[%s9567_s22 + $0x1680] sm:$0xff] }
 0x1c1   : > { %6701 = vmatprep.subr.bf16.mxu0 %v8631_v42  ;;  %7029 = vmatprep.subr.bf16.mxu1 %v8633_v43  ;;  %v972_v41 = vld [vmem:[%s9567_s22 + $0x16a0] sm:$0xff]  ;;  %v969_v42 = vld [vmem:[%s9567_s22 + $0x1688] sm:$0xff] }
 0x1c2   : > { %v973_v43 = vld [vmem:[%s9567_s22 + $0x16a8] sm:$0xff]  ;;  %v8687_v46 = vcombine.high %v968_v40, %v972_v41  ;;  %v8686_v52 = vcombine.low %v968_v40, %v972_v41 }
 0x1c3   : > { %v8689_v47 = vcombine.high %v969_v42, %v973_v43  ;;  %v8688_v54 = vcombine.low %v969_v42, %v973_v43 }
 0x1c4   : > { %6702 = vmatpush1.bf16.msra.mxu0 %v8630_v48  ;;  %7030 = vmatpush1.bf16.msra.mxu1 %v8632_v49  ;;  %v976_v48 = vld [vmem:[%s9567_s22 + $0x16c0] sm:$0xff] }
 0x1c5   : > { %6703 = vmatprep.subr.bf16.mxu0 %v8639_v50  ;;  %7031 = vmatprep.subr.bf16.mxu1 %v8641_v51  ;;  %v980_v49 = vld [vmem:[%s9567_s22 + $0x16e0] sm:$0xff]  ;;  %v977_v50 = vld [vmem:[%s9567_s22 + $0x16c8] sm:$0xff] }
 0x1c6   : > { %v981_v51 = vld [vmem:[%s9567_s22 + $0x16e8] sm:$0xff]  ;;  %v8695_v56 = vcombine.high %v976_v48, %v980_v49  ;;  %v8694_v0 = vcombine.low %v976_v48, %v980_v49  ;;  %v10047_v49 = vld [vmem:[#allocation2 + $0x30] sm:$0xff] }
 0x1c7   : > { %v8697_v58 = vcombine.high %v977_v50, %v981_v51  ;;  %v8696_v1 = vcombine.low %v977_v50, %v981_v51  ;;  %v1029_v48 = vld [vmem:[%s9567_s22 + $0x1868] sm:$0xff] }
 0x1c8   : > { %6704 = vmatpush1.bf16.msra.mxu0 %v8638_v60  ;;  %7032 = vmatpush1.bf16.msra.mxu1 %v8640_v61  ;;  %v984_v60 = vld [vmem:[%s9567_s22 + $0x1700] sm:$0xff] }
 0x1c9   : > { %6705 = vmatprep.subr.bf16.mxu0 %v8647_v62  ;;  %7033 = vmatprep.subr.bf16.mxu1 %v8649_v63  ;;  %v988_v61 = vld [vmem:[%s9567_s22 + $0x1720] sm:$0xff]  ;;  %v985_v62 = vld [vmem:[%s9567_s22 + $0x1708] sm:$0xff] }
 0x1ca   : > { %v989_v63 = vld [vmem:[%s9567_s22 + $0x1728] sm:$0xff]  ;;  %v8703_v2 = vcombine.high %v984_v60, %v988_v61  ;;  %v8702_v8 = vcombine.low %v984_v60, %v988_v61 }
 0x1cb   : > { %v8705_v3 = vcombine.high %v985_v62, %v989_v63  ;;  %v8704_v9 = vcombine.low %v985_v62, %v989_v63  ;;  %v1033_v60 = vld [vmem:[%s9567_s22 + $0x1888] sm:$0xff] }
 0x1cc   : > { %6706 = vmatpush1.bf16.msra.mxu0 %v8646_v4  ;;  %7034 = vmatpush1.bf16.msra.mxu1 %v8648_v5  ;;  %v992_v4 = vld [vmem:[%s9567_s22 + $0x1740] sm:$0xff]  ;;  %v1037_v61 = vld [vmem:[%s9567_s22 + $0x18a8] sm:$0xff] }
 0x1cd   : > { %6707 = vmatprep.subr.bf16.mxu0 %v8655_v6  ;;  %7035 = vmatprep.subr.bf16.mxu1 %v8657_v7  ;;  %v996_v5 = vld [vmem:[%s9567_s22 + $0x1760] sm:$0xff]  ;;  %v993_v6 = vld [vmem:[%s9567_s22 + $0x1748] sm:$0xff] }
 0x1ce   : > { %v997_v7 = vld [vmem:[%s9567_s22 + $0x1768] sm:$0xff]  ;;  %v8711_v10 = vcombine.high %v992_v4, %v996_v5  ;;  %v8710_v20 = vcombine.low %v992_v4, %v996_v5 }
 0x1cf   : > { %v8713_v11 = vcombine.high %v993_v6, %v997_v7  ;;  %v8712_v21 = vcombine.low %v993_v6, %v997_v7  ;;  %v1041_v4 = vld [vmem:[%s9567_s22 + $0x18c8] sm:$0xff]  ;;  %v8752_v7 = vcombine.low %v1033_v60, %v1037_v61 }
 0x1d0   : > { %6708 = vmatpush1.bf16.msra.mxu0 %v8654_v13  ;;  %7036 = vmatpush1.bf16.msra.mxu1 %v8656_v14  ;;  %v1000_v13 = vld [vmem:[%s9567_s22 + $0x1780] sm:$0xff]  ;;  %v1045_v5 = vld [vmem:[%s9567_s22 + $0x18e8] sm:$0xff] }
 0x1d1   : > { %6709 = vmatprep.subr.bf16.mxu0 %v8663_v17  ;;  %7037 = vmatprep.subr.bf16.mxu1 %v8665_v18  ;;  %v1004_v14 = vld [vmem:[%s9567_s22 + $0x17a0] sm:$0xff]  ;;  %v1001_v17 = vld [vmem:[%s9567_s22 + $0x1788] sm:$0xff] }
 0x1d2   : > { %v1005_v18 = vld [vmem:[%s9567_s22 + $0x17a8] sm:$0xff]  ;;  %v8719_v23 = vcombine.high %v1000_v13, %v1004_v14  ;;  %v8718_v30 = vcombine.low %v1000_v13, %v1004_v14 }
 0x1d3   : > { %v8721_v24 = vcombine.high %v1001_v17, %v1005_v18  ;;  %v8720_v31 = vcombine.low %v1001_v17, %v1005_v18  ;;  %v1049_v13 = vld [vmem:[%s9567_s22 + $0x1908] sm:$0xff]  ;;  %v8760_v18 = vcombine.low %v1041_v4, %v1045_v5 }
 0x1d4   : > { %6710 = vmatpush1.bf16.msra.mxu0 %v8662_v26  ;;  %7038 = vmatpush1.bf16.msra.mxu1 %v8664_v27  ;;  %v1008_v26 = vld [vmem:[%s9567_s22 + $0x17c0] sm:$0xff]  ;;  %v1053_v14 = vld [vmem:[%s9567_s22 + $0x1928] sm:$0xff] }
 0x1d5   : > { %6711 = vmatprep.subr.bf16.mxu0 %v8671_v28  ;;  %7039 = vmatprep.subr.bf16.mxu1 %v8673_v29  ;;  %v1012_v27 = vld [vmem:[%s9567_s22 + $0x17e0] sm:$0xff]  ;;  %v1009_v28 = vld [vmem:[%s9567_s22 + $0x17c8] sm:$0xff] }
 0x1d6   : > { %v1013_v29 = vld [vmem:[%s9567_s22 + $0x17e8] sm:$0xff]  ;;  %v8727_v32 = vcombine.high %v1008_v26, %v1012_v27  ;;  %v8726_v40 = vcombine.low %v1008_v26, %v1012_v27 }
 0x1d7   : > { %v8729_v33 = vcombine.high %v1009_v28, %v1013_v29  ;;  %v8728_v41 = vcombine.low %v1009_v28, %v1013_v29  ;;  %v1057_v26 = vld [vmem:[%s9567_s22 + $0x1948] sm:$0xff]  ;;  %v8768_v29 = vcombine.low %v1049_v13, %v1053_v14 }
 0x1d8   : > { %6712 = vmatpush1.bf16.msra.mxu0 %v8670_v34  ;;  %7040 = vmatpush1.bf16.msra.mxu1 %v8672_v35  ;;  %v1016_v34 = vld [vmem:[%s9567_s22 + $0x1800] sm:$0xff]  ;;  %v1061_v27 = vld [vmem:[%s9567_s22 + $0x1968] sm:$0xff] }
 0x1d9   : > { %6713 = vmatprep.subr.bf16.mxu0 %v8679_v37  ;;  %7041 = vmatprep.subr.bf16.mxu1 %v8681_v38  ;;  %v1020_v35 = vld [vmem:[%s9567_s22 + $0x1820] sm:$0xff]  ;;  %v1017_v37 = vld [vmem:[%s9567_s22 + $0x1808] sm:$0xff] }
 0x1da   : > { %v1021_v38 = vld [vmem:[%s9567_s22 + $0x1828] sm:$0xff]  ;;  %v8735_v42 = vcombine.high %v1016_v34, %v1020_v35  ;;  %v8734_v50 = vcombine.low %v1016_v34, %v1020_v35 }
 0x1db   : > { %v8737_v43 = vcombine.high %v1017_v37, %v1021_v38  ;;  %v8736_v51 = vcombine.low %v1017_v37, %v1021_v38  ;;  %v1065_v34 = vld [vmem:[%s9567_s22 + $0x1988] sm:$0xff]  ;;  %v8776_v38 = vcombine.low %v1057_v26, %v1061_v27 }
 0x1dc   : > { %6714 = vmatpush1.bf16.msra.mxu0 %v8678_v44  ;;  %7042 = vmatpush1.bf16.msra.mxu1 %v8680_v45  ;;  %v1024_v44 = vld [vmem:[%s9567_s22 + $0x1840] sm:$0xff]  ;;  %v1069_v35 = vld [vmem:[%s9567_s22 + $0x19a8] sm:$0xff] }
 0x1dd   : > { %6715 = vmatprep.subr.bf16.mxu0 %v8687_v46  ;;  %7043 = vmatprep.subr.bf16.mxu1 %v8689_v47  ;;  %v1028_v45 = vld [vmem:[%s9567_s22 + $0x1860] sm:$0xff]  ;;  %v10043_v46 = vcombine.low %v9969_v19, %v9969_v19  ;;  %v1025_v47 = vld [vmem:[%s9567_s22 + $0x1848] sm:$0xff]  ;;  %v10053_v19 = vcombine.high %v10047_v49, %v10047_v49 }
 0x1de   : > { %v8742_v62 = vcombine.low %v1024_v44, %v1028_v45  ;;  %v8744_v63 = vcombine.low %v1025_v47, %v1029_v48 }
 0x1e0   : > { %6716 = vmatpush1.bf16.msra.mxu0 %v8686_v52  ;;  %7044 = vmatpush1.bf16.msra.mxu1 %v8688_v54  ;;  %v8743_v52 = vcombine.high %v1024_v44, %v1028_v45  ;;  %v8745_v54 = vcombine.high %v1025_v47, %v1029_v48  ;;  %v1073_v44 = vld [vmem:[%s9567_s22 + $0x19c8] sm:$0xff]  ;;  %v8784_v48 = vcombine.low %v1065_v34, %v1069_v35 }
 0x1e1   : > { %6717 = vmatprep.subr.bf16.mxu0 %v8695_v56  ;;  %7045 = vmatprep.subr.bf16.mxu1 %v8697_v58  ;;  %v1032_v56 = vld [vmem:[%s9567_s22 + $0x1880] sm:$0xff]  ;;  %v1077_v45 = vld [vmem:[%s9567_s22 + $0x19e8] sm:$0xff] }
 0x1e2   : > { %v1036_v58 = vld [vmem:[%s9567_s22 + $0x18a0] sm:$0xff] }
 0x1e3   : > { %v8750_v6 = vcombine.low %v1032_v56, %v1036_v58 }
 0x1e4   : > { %6718 = vmatpush1.bf16.msra.mxu0 %v8694_v0  ;;  %7046 = vmatpush1.bf16.msra.mxu1 %v8696_v1  ;;  %v8751_v0 = vcombine.high %v1032_v56, %v1036_v58  ;;  %v8753_v1 = vcombine.high %v1033_v60, %v1037_v61  ;;  %v1081_v56 = vld [vmem:[%s9567_s22 + $0x1a08] sm:$0xff]  ;;  %v8792_v61 = vcombine.low %v1073_v44, %v1077_v45 }
 0x1e5   : > { %6719 = vmatprep.subr.bf16.mxu0 %v8703_v2  ;;  %7047 = vmatprep.subr.bf16.mxu1 %v8705_v3  ;;  %v1040_v2 = vld [vmem:[%s9567_s22 + $0x18c0] sm:$0xff]  ;;  %v1085_v58 = vld [vmem:[%s9567_s22 + $0x1a28] sm:$0xff] }
 0x1e6   : > { %v1044_v3 = vld [vmem:[%s9567_s22 + $0x18e0] sm:$0xff] }
 0x1e7   : > { %v8758_v17 = vcombine.low %v1040_v2, %v1044_v3 }
 0x1e8   : > { %6720 = vmatpush1.bf16.msra.mxu0 %v8702_v8  ;;  %7048 = vmatpush1.bf16.msra.mxu1 %v8704_v9  ;;  %v8759_v8 = vcombine.high %v1040_v2, %v1044_v3  ;;  %v8761_v9 = vcombine.high %v1041_v4, %v1045_v5  ;;  %v1089_v2 = vld [vmem:[%s9567_s22 + $0x1a48] sm:$0xff]  ;;  %v8800_v5 = vcombine.low %v1081_v56, %v1085_v58 }
 0x1e9   : > { %6721 = vmatprep.subr.bf16.mxu0 %v8711_v10  ;;  %7049 = vmatprep.subr.bf16.mxu1 %v8713_v11  ;;  %v1048_v10 = vld [vmem:[%s9567_s22 + $0x1900] sm:$0xff]  ;;  %v1093_v3 = vld [vmem:[%s9567_s22 + $0x1a68] sm:$0xff] }
 0x1ea   : > { %v1052_v11 = vld [vmem:[%s9567_s22 + $0x1920] sm:$0xff] }
 0x1eb   : > { %v8766_v28 = vcombine.low %v1048_v10, %v1052_v11 }
 0x1ec   : > { %6722 = vmatpush1.bf16.msra.mxu0 %v8710_v20  ;;  %7050 = vmatpush1.bf16.msra.mxu1 %v8712_v21  ;;  %v8767_v20 = vcombine.high %v1048_v10, %v1052_v11  ;;  %v8769_v21 = vcombine.high %v1049_v13, %v1053_v14  ;;  %v1097_v10 = vld [vmem:[%s9567_s22 + $0x1a88] sm:$0xff]  ;;  %v8808_v14 = vcombine.low %v1089_v2, %v1093_v3 }
 0x1ed   : > { %6723 = vmatprep.subr.bf16.mxu0 %v8719_v23  ;;  %7051 = vmatprep.subr.bf16.mxu1 %v8721_v24  ;;  %v1056_v23 = vld [vmem:[%s9567_s22 + $0x1940] sm:$0xff]  ;;  %v1101_v11 = vld [vmem:[%s9567_s22 + $0x1aa8] sm:$0xff] }
 0x1ee   : > { %v1060_v24 = vld [vmem:[%s9567_s22 + $0x1960] sm:$0xff] }
 0x1ef   : > { %v8774_v37 = vcombine.low %v1056_v23, %v1060_v24 }
 0x1f0   : > { %6724 = vmatpush1.bf16.msra.mxu0 %v8718_v30  ;;  %7052 = vmatpush1.bf16.msra.mxu1 %v8720_v31  ;;  %v8775_v30 = vcombine.high %v1056_v23, %v1060_v24  ;;  %v8777_v31 = vcombine.high %v1057_v26, %v1061_v27  ;;  %v1105_v23 = vld [vmem:[%s9567_s22 + $0x1ac8] sm:$0xff]  ;;  %v8816_v27 = vcombine.low %v1097_v10, %v1101_v11 }
 0x1f1   : > { %6725 = vmatprep.subr.bf16.mxu0 %v8727_v32  ;;  %7053 = vmatprep.subr.bf16.mxu1 %v8729_v33  ;;  %v1064_v32 = vld [vmem:[%s9567_s22 + $0x1980] sm:$0xff]  ;;  %v1109_v24 = vld [vmem:[%s9567_s22 + $0x1ae8] sm:$0xff] }
 0x1f2   : > { %v1068_v33 = vld [vmem:[%s9567_s22 + $0x19a0] sm:$0xff] }
 0x1f3   : > { %v8782_v47 = vcombine.low %v1064_v32, %v1068_v33 }
 0x1f4   : > { %6726 = vmatpush1.bf16.msra.mxu0 %v8726_v40  ;;  %7054 = vmatpush1.bf16.msra.mxu1 %v8728_v41  ;;  %v8783_v40 = vcombine.high %v1064_v32, %v1068_v33  ;;  %v8785_v41 = vcombine.high %v1065_v34, %v1069_v35  ;;  %v1113_v32 = vld [vmem:[%s9567_s22 + $0x1b08] sm:$0xff]  ;;  %v8824_v35 = vcombine.low %v1105_v23, %v1109_v24 }
 0x1f5   : > { %6736 = vmatprep.subr.bf16.mxu0 %v8735_v42  ;;  %7064 = vmatprep.subr.bf16.mxu1 %v8737_v43  ;;  %v1072_v42 = vld [vmem:[%s9567_s22 + $0x19c0] sm:$0xff]  ;;  %v1117_v33 = vld [vmem:[%s9567_s22 + $0x1b28] sm:$0xff] }
 0x1f6   : > { %v1076_v43 = vld [vmem:[%s9567_s22 + $0x19e0] sm:$0xff] }
 0x1f7   : > { %6728 = vmatmul.mubr.bf16.vlgmr.msra.gmra.mrb[0].mxu0 %v10043_v46  ;;  %7056 = vmatmul.mubr.bf16.vlgmr.msra.gmra.mrb[0].mxu1 %v10043_v46  ;;  %v8790_v60 = vcombine.low %v1072_v42, %v1076_v43 }
 0x1f8   : > { %6737 = vmatpush1.bf16.msra.mxu0 %v8734_v50  ;;  %7065 = vmatpush1.bf16.msra.mxu1 %v8736_v51  ;;  %v8791_v50 = vcombine.high %v1072_v42, %v1076_v43  ;;  %v8793_v51 = vcombine.high %v1073_v44, %v1077_v45  ;;  %v1121_v42 = vld [vmem:[%s9567_s22 + $0x1b48] sm:$0xff]  ;;  %v8832_v45 = vcombine.low %v1113_v32, %v1117_v33 }
 0x1f9   : > { %6738 = vmatprep.subr.bf16.mxu0 %v8743_v52  ;;  %7066 = vmatprep.subr.bf16.mxu1 %v8745_v54  ;;  %v1080_v52 = vld [vmem:[%s9567_s22 + $0x1a00] sm:$0xff]  ;;  %v1125_v43 = vld [vmem:[%s9567_s22 + $0x1b68] sm:$0xff] }
 0x1fa   : > { %6768 = vmatprep.mubr.bf16.mxu0 %v10053_v19  ;;  %7096 = vmatprep.mubr.bf16.mxu1 %v10053_v19  ;;  %v1084_v54 = vld [vmem:[%s9567_s22 + $0x1a20] sm:$0xff] }
 0x1fb   : > { %v8798_v4 = vcombine.low %v1080_v52, %v1084_v54 }
 0x1fc   : > { %6739 = vmatpush1.bf16.msra.mxu0 %v8742_v62  ;;  %7067 = vmatpush1.bf16.msra.mxu1 %v8744_v63  ;;  %v8799_v62 = vcombine.high %v1080_v52, %v1084_v54  ;;  %v8801_v63 = vcombine.high %v1081_v56, %v1085_v58  ;;  %v1129_v52 = vld [vmem:[%s9567_s22 + $0x1b88] sm:$0xff]  ;;  %v8840_v58 = vcombine.low %v1121_v42, %v1125_v43 }
 0x1fd   : > { %6740 = vmatprep.subr.bf16.mxu0 %v8751_v0  ;;  %7068 = vmatprep.subr.bf16.mxu1 %v8753_v1  ;;  %v1088_v0 = vld [vmem:[%s9567_s22 + $0x1a40] sm:$0xff]  ;;  %v1133_v54 = vld [vmem:[%s9567_s22 + $0x1ba8] sm:$0xff] }
 0x1fe   : > { %v1092_v1 = vld [vmem:[%s9567_s22 + $0x1a60] sm:$0xff] }
 0x1ff   : > { %v8806_v13 = vcombine.low %v1088_v0, %v1092_v1 }
 0x200   : > { %6741 = vmatpush1.bf16.msra.mxu0 %v8750_v6  ;;  %7069 = vmatpush1.bf16.msra.mxu1 %v8752_v7  ;;  %v8807_v6 = vcombine.high %v1088_v0, %v1092_v1  ;;  %v8809_v7 = vcombine.high %v1089_v2, %v1093_v3  ;;  %v1137_v0 = vld [vmem:[%s9567_s22 + $0x1bc8] sm:$0xff]  ;;  %v8848_v3 = vcombine.low %v1129_v52, %v1133_v54 }
 0x201   : > { %6742 = vmatprep.subr.bf16.mxu0 %v8759_v8  ;;  %7070 = vmatprep.subr.bf16.mxu1 %v8761_v9  ;;  %v1096_v8 = vld [vmem:[%s9567_s22 + $0x1a80] sm:$0xff]  ;;  %v1141_v1 = vld [vmem:[%s9567_s22 + $0x1be8] sm:$0xff] }
 0x202   : > { %v1100_v9 = vld [vmem:[%s9567_s22 + $0x1aa0] sm:$0xff] }
 0x203   : > { %v8814_v26 = vcombine.low %v1096_v8, %v1100_v9 }
 0x204   : > { %6743 = vmatpush1.bf16.msra.mxu0 %v8758_v17  ;;  %7071 = vmatpush1.bf16.msra.mxu1 %v8760_v18  ;;  %v8815_v17 = vcombine.high %v1096_v8, %v1100_v9  ;;  %v8817_v18 = vcombine.high %v1097_v10, %v1101_v11  ;;  %v1145_v8 = vld [vmem:[%s9567_s22 + $0x1c08] sm:$0xff]  ;;  %v8856_v11 = vcombine.low %v1137_v0, %v1141_v1 }
 0x205   : > { %6744 = vmatprep.subr.bf16.mxu0 %v8767_v20  ;;  %7072 = vmatprep.subr.bf16.mxu1 %v8769_v21  ;;  %v1104_v20 = vld [vmem:[%s9567_s22 + $0x1ac0] sm:$0xff]  ;;  %v1149_v9 = vld [vmem:[%s9567_s22 + $0x1c28] sm:$0xff] }
 0x206   : > { %v1108_v21 = vld [vmem:[%s9567_s22 + $0x1ae0] sm:$0xff] }
 0x207   : > { %v8822_v34 = vcombine.low %v1104_v20, %v1108_v21 }
 0x208   : > { %6745 = vmatpush1.bf16.msra.mxu0 %v8766_v28  ;;  %7073 = vmatpush1.bf16.msra.mxu1 %v8768_v29  ;;  %v8823_v28 = vcombine.high %v1104_v20, %v1108_v21  ;;  %v8825_v29 = vcombine.high %v1105_v23, %v1109_v24  ;;  %v10121_v20 = vcombine.low %v10047_v49, %v10047_v49  ;;  %v1153_v21 = vld [vmem:[%s9567_s22 + $0x1c48] sm:$0xff]  ;;  %v10125_v24 = vld [vmem:[#allocation2 + $0x38] sm:$0xff] }
 0x209   : > { %6746 = vmatprep.subr.bf16.mxu0 %v8775_v30  ;;  %7074 = vmatprep.subr.bf16.mxu1 %v8777_v31  ;;  %v1112_v30 = vld [vmem:[%s9567_s22 + $0x1b00] sm:$0xff]  ;;  %v1157_v23 = vld [vmem:[%s9567_s22 + $0x1c68] sm:$0xff]  ;;  %v10131_v49 = vcombine.high %v10125_v24, %v10125_v24 }
 0x20a   : > { %v1116_v31 = vld [vmem:[%s9567_s22 + $0x1b20] sm:$0xff] }
 0x20b   : > { %v8830_v44 = vcombine.low %v1112_v30, %v1116_v31 }
 0x20c   : > { %6747 = vmatpush1.bf16.msra.mxu0 %v8774_v37  ;;  %7075 = vmatpush1.bf16.msra.mxu1 %v8776_v38  ;;  %v8831_v37 = vcombine.high %v1112_v30, %v1116_v31  ;;  %v8833_v38 = vcombine.high %v1113_v32, %v1117_v33  ;;  %v1160_v30 = vld [vmem:[%s9567_s22 + $0x1c80] sm:$0xff]  ;;  %v1161_v32 = vld [vmem:[%s9567_s22 + $0x1c88] sm:$0xff] }
 0x20d   : > { %6748 = vmatprep.subr.bf16.mxu0 %v8783_v40  ;;  %7076 = vmatprep.subr.bf16.mxu1 %v8785_v41  ;;  %v1120_v40 = vld [vmem:[%s9567_s22 + $0x1b40] sm:$0xff]  ;;  %v1165_v33 = vld [vmem:[%s9567_s22 + $0x1ca8] sm:$0xff] }
 0x20e   : > { %v1124_v41 = vld [vmem:[%s9567_s22 + $0x1b60] sm:$0xff] }
 0x20f   : > { %v8838_v56 = vcombine.low %v1120_v40, %v1124_v41  ;;  %v1164_v31 = vld [vmem:[%s9567_s22 + $0x1ca0] sm:$0xff] }
 0x210   : > { %6749 = vmatpush1.bf16.msra.mxu0 %v8782_v47  ;;  %7077 = vmatpush1.bf16.msra.mxu1 %v8784_v48  ;;  %v8839_v47 = vcombine.high %v1120_v40, %v1124_v41  ;;  %v8841_v48 = vcombine.high %v1121_v42, %v1125_v43  ;;  %v1168_v40 = vld [vmem:[%s9567_s22 + $0x1cc0] sm:$0xff]  ;;  %v1169_v42 = vld [vmem:[%s9567_s22 + $0x1cc8] sm:$0xff] }
 0x211   : > { %6750 = vmatprep.subr.bf16.mxu0 %v8791_v50  ;;  %7078 = vmatprep.subr.bf16.mxu1 %v8793_v51  ;;  %v1128_v50 = vld [vmem:[%s9567_s22 + $0x1b80] sm:$0xff]  ;;  %v1173_v43 = vld [vmem:[%s9567_s22 + $0x1ce8] sm:$0xff] }
 0x212   : > { %v1132_v51 = vld [vmem:[%s9567_s22 + $0x1ba0] sm:$0xff] }
 0x213   : > { %v8846_v2 = vcombine.low %v1128_v50, %v1132_v51  ;;  %v1172_v41 = vld [vmem:[%s9567_s22 + $0x1ce0] sm:$0xff] }
 0x214   : > { %6751 = vmatpush1.bf16.msra.mxu0 %v8790_v60  ;;  %7079 = vmatpush1.bf16.msra.mxu1 %v8792_v61  ;;  %v8847_v60 = vcombine.high %v1128_v50, %v1132_v51  ;;  %v8849_v61 = vcombine.high %v1129_v52, %v1133_v54  ;;  %v1176_v50 = vld [vmem:[%s9567_s22 + $0x1d00] sm:$0xff]  ;;  %v1177_v52 = vld [vmem:[%s9567_s22 + $0x1d08] sm:$0xff] }
 0x215   : > { %6752 = vmatprep.subr.bf16.mxu0 %v8799_v62  ;;  %7080 = vmatprep.subr.bf16.mxu1 %v8801_v63  ;;  %v1136_v62 = vld [vmem:[%s9567_s22 + $0x1bc0] sm:$0xff]  ;;  %v1181_v54 = vld [vmem:[%s9567_s22 + $0x1d28] sm:$0xff] }
 0x216   : > { %v1140_v63 = vld [vmem:[%s9567_s22 + $0x1be0] sm:$0xff] }
 0x217   : > { %v8854_v10 = vcombine.low %v1136_v62, %v1140_v63  ;;  %v1180_v51 = vld [vmem:[%s9567_s22 + $0x1d20] sm:$0xff] }
 0x218   : > { %6753 = vmatpush1.bf16.msra.mxu0 %v8798_v4  ;;  %7081 = vmatpush1.bf16.msra.mxu1 %v8800_v5  ;;  %v8855_v4 = vcombine.high %v1136_v62, %v1140_v63  ;;  %v8857_v5 = vcombine.high %v1137_v0, %v1141_v1  ;;  %v1184_v62 = vld [vmem:[%s9567_s22 + $0x1d40] sm:$0xff]  ;;  %v1185_v0 = vld [vmem:[%s9567_s22 + $0x1d48] sm:$0xff] }
 0x219   : > { %6754 = vmatprep.subr.bf16.mxu0 %v8807_v6  ;;  %7082 = vmatprep.subr.bf16.mxu1 %v8809_v7  ;;  %v1144_v6 = vld [vmem:[%s9567_s22 + $0x1c00] sm:$0xff]  ;;  %v1189_v1 = vld [vmem:[%s9567_s22 + $0x1d68] sm:$0xff] }
 0x21a   : > { %v1148_v7 = vld [vmem:[%s9567_s22 + $0x1c20] sm:$0xff] }
 0x21b   : > { %v1188_v63 = vld [vmem:[%s9567_s22 + $0x1d60] sm:$0xff] }
 0x21c   : > { %6755 = vmatpush1.bf16.msra.mxu0 %v8806_v13  ;;  %7083 = vmatpush1.bf16.msra.mxu1 %v8808_v14  ;;  %v8863_v13 = vcombine.high %v1144_v6, %v1148_v7  ;;  %v8865_v14 = vcombine.high %v1145_v8, %v1149_v9 }
 0x21d   : > { %6756 = vmatprep.subr.bf16.mxu0 %v8815_v17  ;;  %7084 = vmatprep.subr.bf16.mxu1 %v8817_v18  ;;  %v1152_v17 = vld [vmem:[%s9567_s22 + $0x1c40] sm:$0xff] }
 0x21e   : > { %v1156_v18 = vld [vmem:[%s9567_s22 + $0x1c60] sm:$0xff] }
 0x220   : > { %6757 = vmatpush1.bf16.msra.mxu0 %v8814_v26  ;;  %7085 = vmatpush1.bf16.msra.mxu1 %v8816_v27  ;;  %v8862_v26 = vcombine.low %v1144_v6, %v1148_v7  ;;  %v8864_v27 = vcombine.low %v1145_v8, %v1149_v9  ;;  %v1192_v6 = vld [vmem:[%s9567_s22 + $0x1d80] sm:$0xff]  ;;  %v1193_v8 = vld [vmem:[%s9567_s22 + $0x1d88] sm:$0xff] }
 0x221   : > { %6758 = vmatprep.subr.bf16.mxu0 %v8823_v28  ;;  %7086 = vmatprep.subr.bf16.mxu1 %v8825_v29  ;;  %v8871_v28 = vcombine.high %v1152_v17, %v1156_v18  ;;  %v8873_v29 = vcombine.high %v1153_v21, %v1157_v23  ;;  %v1196_v7 = vld [vmem:[%s9567_s22 + $0x1da0] sm:$0xff]  ;;  %v1197_v9 = vld [vmem:[%s9567_s22 + $0x1da8] sm:$0xff] }
 0x224   : > { %6759 = vmatpush1.bf16.msra.mxu0 %v8822_v34  ;;  %7087 = vmatpush1.bf16.msra.mxu1 %v8824_v35  ;;  %v8870_v34 = vcombine.low %v1152_v17, %v1156_v18  ;;  %v8872_v35 = vcombine.low %v1153_v21, %v1157_v23  ;;  %v1200_v17 = vld [vmem:[%s9567_s22 + $0x1dc0] sm:$0xff]  ;;  %v1201_v21 = vld [vmem:[%s9567_s22 + $0x1dc8] sm:$0xff] }
 0x225   : > { %6760 = vmatprep.subr.bf16.mxu0 %v8831_v37  ;;  %7088 = vmatprep.subr.bf16.mxu1 %v8833_v38  ;;  %v8879_v37 = vcombine.high %v1160_v30, %v1164_v31  ;;  %v8881_v38 = vcombine.high %v1161_v32, %v1165_v33  ;;  %v1204_v18 = vld [vmem:[%s9567_s22 + $0x1de0] sm:$0xff]  ;;  %v1205_v23 = vld [vmem:[%s9567_s22 + $0x1de8] sm:$0xff] }
 0x228   : > { %6761 = vmatpush1.bf16.msra.mxu0 %v8830_v44  ;;  %7089 = vmatpush1.bf16.msra.mxu1 %v8832_v45  ;;  %v8878_v44 = vcombine.low %v1160_v30, %v1164_v31  ;;  %v8880_v45 = vcombine.low %v1161_v32, %v1165_v33  ;;  %v1208_v30 = vld [vmem:[%s9567_s22 + $0x1e00] sm:$0xff]  ;;  %v1209_v32 = vld [vmem:[%s9567_s22 + $0x1e08] sm:$0xff] }
 0x229   : > { %6762 = vmatprep.subr.bf16.mxu0 %v8839_v47  ;;  %7090 = vmatprep.subr.bf16.mxu1 %v8841_v48  ;;  %v8887_v47 = vcombine.high %v1168_v40, %v1172_v41  ;;  %v8889_v48 = vcombine.high %v1169_v42, %v1173_v43  ;;  %v1212_v31 = vld [vmem:[%s9567_s22 + $0x1e20] sm:$0xff]  ;;  %v1213_v33 = vld [vmem:[%s9567_s22 + $0x1e28] sm:$0xff] }
 0x22c   : > { %6763 = vmatpush1.bf16.msra.mxu0 %v8838_v56  ;;  %7091 = vmatpush1.bf16.msra.mxu1 %v8840_v58  ;;  %v8886_v56 = vcombine.low %v1168_v40, %v1172_v41  ;;  %v8888_v58 = vcombine.low %v1169_v42, %v1173_v43  ;;  %v1216_v40 = vld [vmem:[%s9567_s22 + $0x1e40] sm:$0xff]  ;;  %v1217_v42 = vld [vmem:[%s9567_s22 + $0x1e48] sm:$0xff] }
 0x22d   : > { %6764 = vmatprep.subr.bf16.mxu0 %v8847_v60  ;;  %7092 = vmatprep.subr.bf16.mxu1 %v8849_v61  ;;  %v8895_v60 = vcombine.high %v1176_v50, %v1180_v51  ;;  %v8897_v61 = vcombine.high %v1177_v52, %v1181_v54  ;;  %v1220_v41 = vld [vmem:[%s9567_s22 + $0x1e60] sm:$0xff]  ;;  %v1221_v43 = vld [vmem:[%s9567_s22 + $0x1e68] sm:$0xff] }
 0x230   : > { %6765 = vmatpush1.bf16.msra.mxu0 %v8846_v2  ;;  %7093 = vmatpush1.bf16.msra.mxu1 %v8848_v3  ;;  %v8894_v2 = vcombine.low %v1176_v50, %v1180_v51  ;;  %v8896_v3 = vcombine.low %v1177_v52, %v1181_v54  ;;  %v1224_v50 = vld [vmem:[%s9567_s22 + $0x1e80] sm:$0xff]  ;;  %v1225_v52 = vld [vmem:[%s9567_s22 + $0x1e88] sm:$0xff] }
 0x231   : > { %6766 = vmatprep.subr.bf16.mxu0 %v8855_v4  ;;  %7094 = vmatprep.subr.bf16.mxu1 %v8857_v5  ;;  %v8903_v4 = vcombine.high %v1184_v62, %v1188_v63  ;;  %v8905_v5 = vcombine.high %v1185_v0, %v1189_v1  ;;  %v1228_v51 = vld [vmem:[%s9567_s22 + $0x1ea0] sm:$0xff]  ;;  %v1229_v54 = vld [vmem:[%s9567_s22 + $0x1ea8] sm:$0xff] }
 0x234   : > { %6767 = vmatpush1.bf16.msra.mxu0 %v8854_v10  ;;  %7095 = vmatpush1.bf16.msra.mxu1 %v8856_v11  ;;  %v8902_v10 = vcombine.low %v1184_v62, %v1188_v63  ;;  %v8904_v11 = vcombine.low %v1185_v0, %v1189_v1  ;;  %v1232_v62 = vld [vmem:[%s9567_s22 + $0x1ec0] sm:$0xff]  ;;  %v1233_v0 = vld [vmem:[%s9567_s22 + $0x1ec8] sm:$0xff] }
 0x235   : > { %6777 = vmatprep.subr.bf16.mxu0 %v8863_v13  ;;  %7105 = vmatprep.subr.bf16.mxu1 %v8865_v14  ;;  %v8911_v13 = vcombine.high %v1192_v6, %v1196_v7  ;;  %v8913_v14 = vcombine.high %v1193_v8, %v1197_v9  ;;  %v1236_v63 = vld [vmem:[%s9567_s22 + $0x1ee0] sm:$0xff]  ;;  %v1237_v1 = vld [vmem:[%s9567_s22 + $0x1ee8] sm:$0xff] }
 0x237   : > { %6769 = vmatmul.mubr.bf16.vlgmr.msra.gmra.mrb[0].mxu0 %v10121_v20  ;;  %7097 = vmatmul.mubr.bf16.vlgmr.msra.gmra.mrb[0].mxu1 %v10121_v20 }
 0x238   : > { %6778 = vmatpush1.bf16.msra.mxu0 %v8862_v26  ;;  %7106 = vmatpush1.bf16.msra.mxu1 %v8864_v27  ;;  %v8910_v26 = vcombine.low %v1192_v6, %v1196_v7  ;;  %v8912_v27 = vcombine.low %v1193_v8, %v1197_v9  ;;  %v1240_v6 = vld [vmem:[%s9567_s22 + $0x1f00] sm:$0xff]  ;;  %v1241_v8 = vld [vmem:[%s9567_s22 + $0x1f08] sm:$0xff] }
 0x239   : > { %6779 = vmatprep.subr.bf16.mxu0 %v8871_v28  ;;  %7107 = vmatprep.subr.bf16.mxu1 %v8873_v29  ;;  %v8919_v28 = vcombine.high %v1200_v17, %v1204_v18  ;;  %v8921_v29 = vcombine.high %v1201_v21, %v1205_v23  ;;  %v1244_v7 = vld [vmem:[%s9567_s22 + $0x1f20] sm:$0xff]  ;;  %v1245_v9 = vld [vmem:[%s9567_s22 + $0x1f28] sm:$0xff] }
 0x23a   : > { %6809 = vmatprep.mubr.bf16.mxu0 %v10131_v49  ;;  %7137 = vmatprep.mubr.bf16.mxu1 %v10131_v49 }
 0x23c   : > { %6780 = vmatpush1.bf16.msra.mxu0 %v8870_v34  ;;  %7108 = vmatpush1.bf16.msra.mxu1 %v8872_v35  ;;  %v8918_v34 = vcombine.low %v1200_v17, %v1204_v18  ;;  %v8920_v35 = vcombine.low %v1201_v21, %v1205_v23  ;;  %v1248_v17 = vld [vmem:[%s9567_s22 + $0x1f40] sm:$0xff]  ;;  %v1249_v21 = vld [vmem:[%s9567_s22 + $0x1f48] sm:$0xff] }
 0x23d   : > { %6781 = vmatprep.subr.bf16.mxu0 %v8879_v37  ;;  %7109 = vmatprep.subr.bf16.mxu1 %v8881_v38  ;;  %v8927_v37 = vcombine.high %v1208_v30, %v1212_v31  ;;  %v8929_v38 = vcombine.high %v1209_v32, %v1213_v33  ;;  %v1252_v18 = vld [vmem:[%s9567_s22 + $0x1f60] sm:$0xff]  ;;  %v1253_v23 = vld [vmem:[%s9567_s22 + $0x1f68] sm:$0xff] }
 0x240   : > { %6782 = vmatpush1.bf16.msra.mxu0 %v8878_v44  ;;  %7110 = vmatpush1.bf16.msra.mxu1 %v8880_v45  ;;  %v8926_v44 = vcombine.low %v1208_v30, %v1212_v31  ;;  %v8928_v45 = vcombine.low %v1209_v32, %v1213_v33  ;;  %v1256_v30 = vld [vmem:[%s9567_s22 + $0x1f80] sm:$0xff]  ;;  %v1257_v32 = vld [vmem:[%s9567_s22 + $0x1f88] sm:$0xff] }
 0x241   : > { %6783 = vmatprep.subr.bf16.mxu0 %v8887_v47  ;;  %7111 = vmatprep.subr.bf16.mxu1 %v8889_v48  ;;  %v8935_v47 = vcombine.high %v1216_v40, %v1220_v41  ;;  %v8937_v48 = vcombine.high %v1217_v42, %v1221_v43  ;;  %v1260_v31 = vld [vmem:[%s9567_s22 + $0x1fa0] sm:$0xff]  ;;  %v1261_v33 = vld [vmem:[%s9567_s22 + $0x1fa8] sm:$0xff] }
 0x244   : > { %6784 = vmatpush1.bf16.msra.mxu0 %v8886_v56  ;;  %7112 = vmatpush1.bf16.msra.mxu1 %v8888_v58  ;;  %v8934_v56 = vcombine.low %v1216_v40, %v1220_v41  ;;  %v8936_v58 = vcombine.low %v1217_v42, %v1221_v43  ;;  %v1264_v40 = vld [vmem:[%s9567_s22 + $0x1fc0] sm:$0xff]  ;;  %v1265_v42 = vld [vmem:[%s9567_s22 + $0x1fc8] sm:$0xff] }
 0x245   : > { %6785 = vmatprep.subr.bf16.mxu0 %v8895_v60  ;;  %7113 = vmatprep.subr.bf16.mxu1 %v8897_v61  ;;  %v8943_v60 = vcombine.high %v1224_v50, %v1228_v51  ;;  %v8945_v61 = vcombine.high %v1225_v52, %v1229_v54  ;;  %v1268_v41 = vld [vmem:[%s9567_s22 + $0x1fe0] sm:$0xff]  ;;  %v1269_v43 = vld [vmem:[%s9567_s22 + $0x1fe8] sm:$0xff] }
 0x248   : > { %6786 = vmatpush1.bf16.msra.mxu0 %v8894_v2  ;;  %7114 = vmatpush1.bf16.msra.mxu1 %v8896_v3  ;;  %v8942_v2 = vcombine.low %v1224_v50, %v1228_v51  ;;  %v8944_v3 = vcombine.low %v1225_v52, %v1229_v54  ;;  %v250_v50 = vld [vmem:[%s9567_s22 + $0x10] sm:$0xff]  ;;  %v251_v52 = vld [vmem:[%s9567_s22 + $0x18] sm:$0xff] }
 0x249   : > { %6787 = vmatprep.subr.bf16.mxu0 %v8903_v4  ;;  %7115 = vmatprep.subr.bf16.mxu1 %v8905_v5  ;;  %v8951_v4 = vcombine.high %v1232_v62, %v1236_v63  ;;  %v8953_v5 = vcombine.high %v1233_v0, %v1237_v1  ;;  %v254_v51 = vld [vmem:[%s9567_s22 + $0x30] sm:$0xff]  ;;  %v255_v54 = vld [vmem:[%s9567_s22 + $0x38] sm:$0xff] }
 0x24c   : > { %6788 = vmatpush1.bf16.msra.mxu0 %v8902_v10  ;;  %7116 = vmatpush1.bf16.msra.mxu1 %v8904_v11  ;;  %v8950_v10 = vcombine.low %v1232_v62, %v1236_v63  ;;  %v8952_v11 = vcombine.low %v1233_v0, %v1237_v1  ;;  %v258_v62 = vld [vmem:[%s9567_s22 + $0x50] sm:$0xff]  ;;  %v10199_v0 = vcombine.low %v10125_v24, %v10125_v24  ;;  %v259_v1 = vld [vmem:[%s9567_s22 + $0x58] sm:$0xff] }
 0x24d   : > { %6789 = vmatprep.subr.bf16.mxu0 %v8911_v13  ;;  %7117 = vmatprep.subr.bf16.mxu1 %v8913_v14  ;;  %v8959_v13 = vcombine.high %v1240_v6, %v1244_v7  ;;  %v8961_v14 = vcombine.high %v1241_v8, %v1245_v9  ;;  %v262_v63 = vld [vmem:[%s9567_s22 + $0x70] sm:$0xff]  ;;  %v267_v24 = vld [vmem:[%s9567_s22 + $0x98] sm:$0xff] }
 0x250   : > { %6790 = vmatpush1.bf16.msra.mxu0 %v8910_v26  ;;  %7118 = vmatpush1.bf16.msra.mxu1 %v8912_v27  ;;  %v8958_v26 = vcombine.low %v1240_v6, %v1244_v7  ;;  %v8960_v27 = vcombine.low %v1241_v8, %v1245_v9  ;;  %v266_v7 = vld [vmem:[%s9567_s22 + $0x90] sm:$0xff]  ;;  %v271_v9 = vld [vmem:[%s9567_s22 + $0xb8] sm:$0xff] }
 0x251   : > { %6791 = vmatprep.subr.bf16.mxu0 %v8919_v28  ;;  %7119 = vmatprep.subr.bf16.mxu1 %v8921_v29  ;;  %v8967_v28 = vcombine.high %v1248_v17, %v1252_v18  ;;  %v8969_v29 = vcombine.high %v1249_v21, %v1253_v23  ;;  %v270_v8 = vld [vmem:[%s9567_s22 + $0xb0] sm:$0xff] }
 0x254   : > { %6792 = vmatpush1.bf16.msra.mxu0 %v8918_v34  ;;  %7120 = vmatpush1.bf16.msra.mxu1 %v8920_v35  ;;  %v8966_v34 = vcombine.low %v1248_v17, %v1252_v18  ;;  %v8968_v35 = vcombine.low %v1249_v21, %v1253_v23  ;;  %v274_v17 = vld [vmem:[%s9567_s22 + $0xd0] sm:$0xff]  ;;  %v275_v21 = vld [vmem:[%s9567_s22 + $0xd8] sm:$0xff] }
 0x255   : > { %6793 = vmatprep.subr.bf16.mxu0 %v8927_v37  ;;  %7121 = vmatprep.subr.bf16.mxu1 %v8929_v38  ;;  %v8975_v37 = vcombine.high %v1256_v30, %v1260_v31  ;;  %v8977_v38 = vcombine.high %v1257_v32, %v1261_v33  ;;  %v278_v18 = vld [vmem:[%s9567_s22 + $0xf0] sm:$0xff]  ;;  %v279_v23 = vld [vmem:[%s9567_s22 + $0xf8] sm:$0xff] }
 0x258   : > { %6794 = vmatpush1.bf16.msra.mxu0 %v8926_v44  ;;  %7122 = vmatpush1.bf16.msra.mxu1 %v8928_v45  ;;  %v8974_v44 = vcombine.low %v1256_v30, %v1260_v31  ;;  %v8976_v45 = vcombine.low %v1257_v32, %v1261_v33  ;;  %v282_v30 = vld [vmem:[%s9567_s22 + $0x110] sm:$0xff]  ;;  %v283_v32 = vld [vmem:[%s9567_s22 + $0x118] sm:$0xff] }
 0x259   : > { %6795 = vmatprep.subr.bf16.mxu0 %v8935_v47  ;;  %7123 = vmatprep.subr.bf16.mxu1 %v8937_v48  ;;  %v8983_v47 = vcombine.high %v1264_v40, %v1268_v41  ;;  %v8985_v48 = vcombine.high %v1265_v42, %v1269_v43  ;;  %v286_v31 = vld [vmem:[%s9567_s22 + $0x130] sm:$0xff]  ;;  %v287_v33 = vld [vmem:[%s9567_s22 + $0x138] sm:$0xff] }
 0x25c   : > { %6796 = vmatpush1.bf16.msra.mxu0 %v8934_v56  ;;  %7124 = vmatpush1.bf16.msra.mxu1 %v8936_v58  ;;  %v8982_v56 = vcombine.low %v1264_v40, %v1268_v41  ;;  %v8984_v58 = vcombine.low %v1265_v42, %v1269_v43  ;;  %v294_v40 = vld [vmem:[%s9567_s22 + $0x170] sm:$0xff]  ;;  %v291_v41 = vld [vmem:[%s9567_s22 + $0x158] sm:$0xff]  ;;  %v8002_v43 = vcombine.low %v282_v30, %v286_v31 }
 0x25d   : > { %6797 = vmatprep.subr.bf16.mxu0 %v8943_v60  ;;  %7125 = vmatprep.subr.bf16.mxu1 %v8945_v61  ;;  %v7971_v60 = vcombine.high %v250_v50, %v254_v51  ;;  %v7973_v61 = vcombine.high %v251_v52, %v255_v54  ;;  %v295_v42 = vld [vmem:[%s9567_s22 + $0x178] sm:$0xff] }
 0x260   : > { %6798 = vmatpush1.bf16.msra.mxu0 %v8942_v2  ;;  %7126 = vmatpush1.bf16.msra.mxu1 %v8944_v3  ;;  %v263_v2 = vld [vmem:[%s9567_s22 + $0x78] sm:$0xff]  ;;  %v7970_v3 = vcombine.low %v250_v50, %v254_v51  ;;  %v302_v50 = vld [vmem:[%s9567_s22 + $0x1b0] sm:$0xff] }
 0x261   : > { %6799 = vmatprep.subr.bf16.mxu0 %v8951_v4  ;;  %7127 = vmatprep.subr.bf16.mxu1 %v8953_v5  ;;  %v7972_v4 = vcombine.low %v251_v52, %v255_v54  ;;  %v7979_v5 = vcombine.high %v258_v62, %v262_v63  ;;  %v7981_v6 = vcombine.high %v259_v1, %v263_v2  ;;  %v299_v51 = vld [vmem:[%s9567_s22 + $0x198] sm:$0xff] }
 0x262   : > { %v303_v52 = vld [vmem:[%s9567_s22 + $0x1b8] sm:$0xff] }
 0x264   : > { %6800 = vmatpush1.bf16.msra.mxu0 %v8950_v10  ;;  %7128 = vmatpush1.bf16.msra.mxu1 %v8952_v11  ;;  %v7978_v10 = vcombine.low %v258_v62, %v262_v63  ;;  %v7980_v11 = vcombine.low %v259_v1, %v263_v2  ;;  %v310_v62 = vld [vmem:[%s9567_s22 + $0x1f0] sm:$0xff]  ;;  %v307_v63 = vld [vmem:[%s9567_s22 + $0x1d8] sm:$0xff] }
 0x265   : > { %6801 = vmatprep.subr.bf16.mxu0 %v8959_v13  ;;  %7129 = vmatprep.subr.bf16.mxu1 %v8961_v14  ;;  %v7987_v13 = vcombine.high %v266_v7, %v270_v8  ;;  %v7989_v14 = vcombine.high %v267_v24, %v271_v9  ;;  %v311_v1 = vld [vmem:[%s9567_s22 + $0x1f8] sm:$0xff] }
 0x268   : > { %6802 = vmatpush1.bf16.msra.mxu0 %v8958_v26  ;;  %7130 = vmatpush1.bf16.msra.mxu1 %v8960_v27  ;;  %v7986_v26 = vcombine.low %v266_v7, %v270_v8  ;;  %v7988_v27 = vcombine.low %v267_v24, %v271_v9  ;;  %v318_v7 = vld [vmem:[%s9567_s22 + $0x230] sm:$0xff]  ;;  %v315_v8 = vld [vmem:[%s9567_s22 + $0x218] sm:$0xff] }
 0x269   : > { %6803 = vmatprep.subr.bf16.mxu0 %v8967_v28  ;;  %7131 = vmatprep.subr.bf16.mxu1 %v8969_v29  ;;  %v7995_v28 = vcombine.high %v274_v17, %v278_v18  ;;  %v7997_v29 = vcombine.high %v275_v21, %v279_v23  ;;  %v319_v24 = vld [vmem:[%s9567_s22 + $0x238] sm:$0xff] }
 0x26c   : > { %6804 = vmatpush1.bf16.msra.mxu0 %v8966_v34  ;;  %7132 = vmatpush1.bf16.msra.mxu1 %v8968_v35  ;;  %v7994_v34 = vcombine.low %v274_v17, %v278_v18  ;;  %v8003_v35 = vcombine.high %v282_v30, %v286_v31  ;;  %v326_v17 = vld [vmem:[%s9567_s22 + $0x270] sm:$0xff]  ;;  %v323_v18 = vld [vmem:[%s9567_s22 + $0x258] sm:$0xff] }
 0x26d   : > { %6805 = vmatprep.subr.bf16.mxu0 %v8975_v37  ;;  %7133 = vmatprep.subr.bf16.mxu1 %v8977_v38  ;;  %v8005_v37 = vcombine.high %v283_v32, %v287_v33  ;;  %v290_v38 = vld [vmem:[%s9567_s22 + $0x150] sm:$0xff]  ;;  %v331_v31 = vld [vmem:[%s9567_s22 + $0x298] sm:$0xff] }
 0x26e   : > { %v8010_v54 = vcombine.low %v290_v38, %v294_v40  ;;  %v334_v30 = vld [vmem:[%s9567_s22 + $0x2b0] sm:$0xff] }
 0x270   : > { %6806 = vmatpush1.bf16.msra.mxu0 %v8974_v44  ;;  %7134 = vmatpush1.bf16.msra.mxu1 %v8976_v45  ;;  %v8004_v44 = vcombine.low %v283_v32, %v287_v33  ;;  %v8011_v45 = vcombine.high %v290_v38, %v294_v40  ;;  %v335_v32 = vld [vmem:[%s9567_s22 + $0x2b8] sm:$0xff]  ;;  %v342_v38 = vld [vmem:[%s9567_s22 + $0x2f0] sm:$0xff] }
 0x271   : > { %6807 = vmatprep.subr.bf16.mxu0 %v8983_v47  ;;  %7135 = vmatprep.subr.bf16.mxu1 %v8985_v48  ;;  %v8013_v47 = vcombine.high %v291_v41, %v295_v42  ;;  %v298_v48 = vld [vmem:[%s9567_s22 + $0x190] sm:$0xff]  ;;  %v339_v40 = vld [vmem:[%s9567_s22 + $0x2d8] sm:$0xff] }
 0x272   : > { %v8018_v2 = vcombine.low %v298_v48, %v302_v50 }
 0x274   : > { %6808 = vmatpush1.bf16.msra.mxu0 %v8982_v56  ;;  %7136 = vmatpush1.bf16.msra.mxu1 %v8984_v58  ;;  %v8012_v56 = vcombine.low %v291_v41, %v295_v42  ;;  %v8019_v58 = vcombine.high %v298_v48, %v302_v50  ;;  %v343_v41 = vld [vmem:[%s9567_s22 + $0x2f8] sm:$0xff]  ;;  %v350_v48 = vld [vmem:[%s9567_s22 + $0x330] sm:$0xff] }
 0x275   : > { %7146 = vmatprep.subr.bf16.mxu0 %v7971_v60  ;;  %7474 = vmatprep.subr.bf16.mxu1 %v7973_v61  ;;  %v8021_v60 = vcombine.high %v299_v51, %v303_v52  ;;  %v306_v61 = vld [vmem:[%s9567_s22 + $0x1d0] sm:$0xff]  ;;  %v347_v50 = vld [vmem:[%s9567_s22 + $0x318] sm:$0xff] }
 0x276   : > { %v8026_v9 = vcombine.low %v306_v61, %v310_v62 }
 0x277   : > { %6810 = vmatmul.mubr.bf16.vlgmr.msra.gmra.mrb[0].mxu0 %v10199_v0  ;;  %7138 = vmatmul.mubr.bf16.vlgmr.msra.gmra.mrb[0].mxu1 %v10199_v0 }
 0x278   : > { %7147 = vmatpush1.bf16.msra.mxu0 %v7970_v3  ;;  %7475 = vmatpush1.bf16.msra.mxu1 %v7972_v4  ;;  %v8020_v3 = vcombine.low %v299_v51, %v303_v52  ;;  %v8027_v4 = vcombine.high %v306_v61, %v310_v62  ;;  %v351_v51 = vld [vmem:[%s9567_s22 + $0x338] sm:$0xff]  ;;  %v358_v61 = vld [vmem:[%s9567_s22 + $0x370] sm:$0xff] }
 0x279   : > { %7148 = vmatprep.subr.bf16.mxu0 %v7979_v5  ;;  %7476 = vmatprep.subr.bf16.mxu1 %v7981_v6  ;;  %v8029_v5 = vcombine.high %v307_v63, %v311_v1  ;;  %v314_v6 = vld [vmem:[%s9567_s22 + $0x210] sm:$0xff]  ;;  %v355_v62 = vld [vmem:[%s9567_s22 + $0x358] sm:$0xff] }
 0x27a   : > { %7178 = vmatprep.mubr.bf16.mxu0 %v9607_v57  ;;  %7506 = vmatprep.mubr.bf16.mxu1 %v9607_v57  ;;  %v7996_v57 = vcombine.low %v275_v21, %v279_v23  ;;  %v327_v21 = vld [vmem:[%s9567_s22 + $0x278] sm:$0xff]  ;;  %v8034_v23 = vcombine.low %v314_v6, %v318_v7 }
 0x27c   : > { %7149 = vmatpush1.bf16.msra.mxu0 %v7978_v10  ;;  %7477 = vmatpush1.bf16.msra.mxu1 %v7980_v11  ;;  %v8028_v10 = vcombine.low %v307_v63, %v311_v1  ;;  %v8035_v11 = vcombine.high %v314_v6, %v318_v7  ;;  %v359_v63 = vld [vmem:[%s9567_s22 + $0x378] sm:$0xff]  ;;  %v366_v6 = vld [vmem:[%s9567_s22 + $0x3b0] sm:$0xff] }
 0x27d   : > { %7150 = vmatprep.subr.bf16.mxu0 %v7987_v13  ;;  %7478 = vmatprep.subr.bf16.mxu1 %v7989_v14  ;;  %v8037_v13 = vcombine.high %v315_v8, %v319_v24  ;;  %v322_v14 = vld [vmem:[%s9567_s22 + $0x250] sm:$0xff]  ;;  %v363_v7 = vld [vmem:[%s9567_s22 + $0x398] sm:$0xff] }
 0x27e   : > { %v8042_v33 = vcombine.low %v322_v14, %v326_v17 }
 0x280   : > { %7151 = vmatpush1.bf16.msra.mxu0 %v7986_v26  ;;  %7479 = vmatpush1.bf16.msra.mxu1 %v7988_v27  ;;  %v8036_v26 = vcombine.low %v315_v8, %v319_v24  ;;  %v8043_v27 = vcombine.high %v322_v14, %v326_v17  ;;  %v367_v8 = vld [vmem:[%s9567_s22 + $0x3b8] sm:$0xff]  ;;  %v374_v14 = vld [vmem:[%s9567_s22 + $0x3f0] sm:$0xff] }
 0x281   : > { %7152 = vmatprep.subr.bf16.mxu0 %v7995_v28  ;;  %7480 = vmatprep.subr.bf16.mxu1 %v7997_v29  ;;  %v8045_v28 = vcombine.high %v323_v18, %v327_v21  ;;  %v330_v29 = vld [vmem:[%s9567_s22 + $0x290] sm:$0xff]  ;;  %v371_v17 = vld [vmem:[%s9567_s22 + $0x3d8] sm:$0xff] }
 0x282   : > { %v8050_v42 = vcombine.low %v330_v29, %v334_v30 }
 0x284   : > { %7153 = vmatpush1.bf16.msra.mxu0 %v7994_v34  ;;  %7481 = vmatpush1.bf16.msra.mxu1 %v7996_v57  ;;  %v8044_v34 = vcombine.low %v323_v18, %v327_v21  ;;  %v8051_v57 = vcombine.high %v330_v29, %v334_v30  ;;  %v375_v18 = vld [vmem:[%s9567_s22 + $0x3f8] sm:$0xff]  ;;  %v382_v29 = vld [vmem:[%s9567_s22 + $0x430] sm:$0xff] }
 0x285   : > { %7154 = vmatprep.subr.bf16.mxu0 %v8003_v35  ;;  %7482 = vmatprep.subr.bf16.mxu1 %v8005_v37  ;;  %v8053_v35 = vcombine.high %v331_v31, %v335_v32  ;;  %v338_v37 = vld [vmem:[%s9567_s22 + $0x2d0] sm:$0xff]  ;;  %v379_v30 = vld [vmem:[%s9567_s22 + $0x418] sm:$0xff] }
 0x286   : > { %v8058_v52 = vcombine.low %v338_v37, %v342_v38 }
 0x288   : > { %7155 = vmatpush1.bf16.msra.mxu0 %v8002_v43  ;;  %7483 = vmatpush1.bf16.msra.mxu1 %v8004_v44  ;;  %v8052_v43 = vcombine.low %v331_v31, %v335_v32  ;;  %v8059_v44 = vcombine.high %v338_v37, %v342_v38  ;;  %v383_v31 = vld [vmem:[%s9567_s22 + $0x438] sm:$0xff]  ;;  %v390_v37 = vld [vmem:[%s9567_s22 + $0x470] sm:$0xff] }
 0x289   : > { %7156 = vmatprep.subr.bf16.mxu0 %v8011_v45  ;;  %7484 = vmatprep.subr.bf16.mxu1 %v8013_v47  ;;  %v8061_v45 = vcombine.high %v339_v40, %v343_v41  ;;  %v346_v47 = vld [vmem:[%s9567_s22 + $0x310] sm:$0xff]  ;;  %v387_v38 = vld [vmem:[%s9567_s22 + $0x458] sm:$0xff] }
 0x28a   : > { %v8066_v1 = vcombine.low %v346_v47, %v350_v48 }
 0x28c   : > { %7157 = vmatpush1.bf16.msra.mxu0 %v8010_v54  ;;  %7485 = vmatpush1.bf16.msra.mxu1 %v8012_v56  ;;  %v8060_v54 = vcombine.low %v339_v40, %v343_v41  ;;  %v8067_v56 = vcombine.high %v346_v47, %v350_v48  ;;  %v391_v40 = vld [vmem:[%s9567_s22 + $0x478] sm:$0xff]  ;;  %v398_v47 = vld [vmem:[%s9567_s22 + $0x4b0] sm:$0xff] }
 0x28d   : > { %7158 = vmatprep.subr.bf16.mxu0 %v8019_v58  ;;  %7486 = vmatprep.subr.bf16.mxu1 %v8021_v60  ;;  %v8069_v58 = vcombine.high %v347_v50, %v351_v51  ;;  %v354_v60 = vld [vmem:[%s9567_s22 + $0x350] sm:$0xff]  ;;  %v395_v48 = vld [vmem:[%s9567_s22 + $0x498] sm:$0xff] }
 0x28e   : > { %v8074_v24 = vcombine.low %v354_v60, %v358_v61 }
 0x290   : > { %7159 = vmatpush1.bf16.msra.mxu0 %v8018_v2  ;;  %7487 = vmatpush1.bf16.msra.mxu1 %v8020_v3  ;;  %v8068_v2 = vcombine.low %v347_v50, %v351_v51  ;;  %v8075_v3 = vcombine.high %v354_v60, %v358_v61  ;;  %v399_v50 = vld [vmem:[%s9567_s22 + $0x4b8] sm:$0xff]  ;;  %v406_v60 = vld [vmem:[%s9567_s22 + $0x4f0] sm:$0xff] }
 0x291   : > { %7160 = vmatprep.subr.bf16.mxu0 %v8027_v4  ;;  %7488 = vmatprep.subr.bf16.mxu1 %v8029_v5  ;;  %v8077_v4 = vcombine.high %v355_v62, %v359_v63  ;;  %v362_v5 = vld [vmem:[%s9567_s22 + $0x390] sm:$0xff]  ;;  %v403_v61 = vld [vmem:[%s9567_s22 + $0x4d8] sm:$0xff] }
 0x292   : > { %v8082_v21 = vcombine.low %v362_v5, %v366_v6 }
 0x294   : > { %7161 = vmatpush1.bf16.msra.mxu0 %v8026_v9  ;;  %7489 = vmatpush1.bf16.msra.mxu1 %v8028_v10  ;;  %v8076_v9 = vcombine.low %v355_v62, %v359_v63  ;;  %v8083_v10 = vcombine.high %v362_v5, %v366_v6  ;;  %v407_v62 = vld [vmem:[%s9567_s22 + $0x4f8] sm:$0xff]  ;;  %v8116_v63 = vcombine.low %v395_v48, %v399_v50 }
 0x295   : > { %7162 = vmatprep.subr.bf16.mxu0 %v8035_v11  ;;  %7490 = vmatprep.subr.bf16.mxu1 %v8037_v13  ;;  %v8085_v11 = vcombine.high %v363_v7, %v367_v8  ;;  %v370_v13 = vld [vmem:[%s9567_s22 + $0x3d0] sm:$0xff]  ;;  %v411_v5 = vld [vmem:[%s9567_s22 + $0x518] sm:$0xff] }
 0x296   : > { %v8090_v32 = vcombine.low %v370_v13, %v374_v14  ;;  %v415_v6 = vld [vmem:[%s9567_s22 + $0x538] sm:$0xff] }
 0x298   : > { %7163 = vmatpush1.bf16.msra.mxu0 %v8034_v23  ;;  %7491 = vmatpush1.bf16.msra.mxu1 %v8036_v26  ;;  %v8084_v23 = vcombine.low %v363_v7, %v367_v8  ;;  %v8091_v26 = vcombine.high %v370_v13, %v374_v14  ;;  %v423_v13 = vld [vmem:[%s9567_s22 + $0x578] sm:$0xff] }
 0x299   : > { %7164 = vmatprep.subr.bf16.mxu0 %v8043_v27  ;;  %7492 = vmatprep.subr.bf16.mxu1 %v8045_v28  ;;  %v8093_v27 = vcombine.high %v371_v17, %v375_v18  ;;  %v378_v28 = vld [vmem:[%s9567_s22 + $0x410] sm:$0xff] }
 0x29a   : > { %v8098_v41 = vcombine.low %v378_v28, %v382_v29 }
 0x29c   : > { %7165 = vmatpush1.bf16.msra.mxu0 %v8042_v33  ;;  %7493 = vmatpush1.bf16.msra.mxu1 %v8044_v34  ;;  %v8092_v33 = vcombine.low %v371_v17, %v375_v18  ;;  %v8099_v34 = vcombine.high %v378_v28, %v382_v29  ;;  %v8132_v17 = vcombine.low %v411_v5, %v415_v6  ;;  %v431_v28 = vld [vmem:[%s9567_s22 + $0x5b8] sm:$0xff] }
 0x29d   : > { %7166 = vmatprep.subr.bf16.mxu0 %v8051_v57  ;;  %7494 = vmatprep.subr.bf16.mxu1 %v8053_v35  ;;  %v8101_v57 = vcombine.high %v379_v30, %v383_v31  ;;  %v386_v35 = vld [vmem:[%s9567_s22 + $0x450] sm:$0xff] }
 0x29e   : > { %v8106_v51 = vcombine.low %v386_v35, %v390_v37 }
 0x2a0   : > { %7167 = vmatpush1.bf16.msra.mxu0 %v8050_v42  ;;  %7495 = vmatpush1.bf16.msra.mxu1 %v8052_v43  ;;  %v8100_v42 = vcombine.low %v379_v30, %v383_v31  ;;  %v8107_v43 = vcombine.high %v386_v35, %v390_v37  ;;  %v439_v35 = vld [vmem:[%s9567_s22 + $0x5f8] sm:$0xff] }
 0x2a1   : > { %7168 = vmatprep.subr.bf16.mxu0 %v8059_v44  ;;  %7496 = vmatprep.subr.bf16.mxu1 %v8061_v45  ;;  %v8109_v44 = vcombine.high %v387_v38, %v391_v40  ;;  %v394_v45 = vld [vmem:[%s9567_s22 + $0x490] sm:$0xff] }
 0x2a4   : > { %7169 = vmatpush1.bf16.msra.mxu0 %v8058_v52  ;;  %7497 = vmatpush1.bf16.msra.mxu1 %v8060_v54  ;;  %v8108_v52 = vcombine.low %v387_v38, %v391_v40  ;;  %v8115_v54 = vcombine.high %v394_v45, %v398_v47 }
 0x2a5   : > { %7170 = vmatprep.subr.bf16.mxu0 %v8067_v56  ;;  %7498 = vmatprep.subr.bf16.mxu1 %v8069_v58  ;;  %v8117_v56 = vcombine.high %v395_v48, %v399_v50  ;;  %v402_v58 = vld [vmem:[%s9567_s22 + $0x4d0] sm:$0xff] }
 0x2a6   : > { %v8122_v7 = vcombine.low %v402_v58, %v406_v60 }
 0x2a8   : > { %7171 = vmatpush1.bf16.msra.mxu0 %v8066_v1  ;;  %7499 = vmatpush1.bf16.msra.mxu1 %v8068_v2  ;;  %v8123_v1 = vcombine.high %v402_v58, %v406_v60  ;;  %v8125_v2 = vcombine.high %v403_v61, %v407_v62  ;;  %v455_v58 = vld [vmem:[%s9567_s22 + $0x678] sm:$0xff] }
 0x2a9   : > { %7172 = vmatprep.subr.bf16.mxu0 %v8075_v3  ;;  %7500 = vmatprep.subr.bf16.mxu1 %v8077_v4  ;;  %v410_v3 = vld [vmem:[%s9567_s22 + $0x510] sm:$0xff] }
 0x2aa   : > { %v414_v4 = vld [vmem:[%s9567_s22 + $0x530] sm:$0xff] }
 0x2ab   : > { %v8131_v8 = vcombine.high %v410_v3, %v414_v4  ;;  %v8130_v14 = vcombine.low %v410_v3, %v414_v4  ;;  %v463_v3 = vld [vmem:[%s9567_s22 + $0x6b8] sm:$0xff] }
 0x2ac   : > { %7173 = vmatpush1.bf16.msra.mxu0 %v8074_v24  ;;  %7501 = vmatpush1.bf16.msra.mxu1 %v8076_v9  ;;  %v8133_v24 = vcombine.high %v411_v5, %v415_v6  ;;  %v418_v9 = vld [vmem:[%s9567_s22 + $0x550] sm:$0xff] }
 0x2ad   : > { %7174 = vmatprep.subr.bf16.mxu0 %v8083_v10  ;;  %7502 = vmatprep.subr.bf16.mxu1 %v8085_v11  ;;  %v422_v10 = vld [vmem:[%s9567_s22 + $0x570] sm:$0xff]  ;;  %v419_v11 = vld [vmem:[%s9567_s22 + $0x558] sm:$0xff] }
 0x2ae   : > { %v8139_v18 = vcombine.high %v418_v9, %v422_v10  ;;  %v8138_v29 = vcombine.low %v418_v9, %v422_v10  ;;  %v8140_v30 = vcombine.low %v419_v11, %v423_v13  ;;  %v471_v9 = vld [vmem:[%s9567_s22 + $0x6f8] sm:$0xff] }
 0x2b0   : > { %7175 = vmatpush1.bf16.msra.mxu0 %v8082_v21  ;;  %7503 = vmatpush1.bf16.msra.mxu1 %v8084_v23  ;;  %v8141_v21 = vcombine.high %v419_v11, %v423_v13  ;;  %v426_v23 = vld [vmem:[%s9567_s22 + $0x590] sm:$0xff] }
 0x2b1   : > { %7176 = vmatprep.subr.bf16.mxu0 %v8091_v26  ;;  %7504 = vmatprep.subr.bf16.mxu1 %v8093_v27  ;;  %v430_v26 = vld [vmem:[%s9567_s22 + $0x5b0] sm:$0xff]  ;;  %v427_v27 = vld [vmem:[%s9567_s22 + $0x598] sm:$0xff] }
 0x2b2   : > { %v8147_v31 = vcombine.high %v426_v23, %v430_v26  ;;  %v8146_v37 = vcombine.low %v426_v23, %v430_v26  ;;  %v8148_v38 = vcombine.low %v427_v27, %v431_v28  ;;  %v479_v23 = vld [vmem:[%s9567_s22 + $0x738] sm:$0xff] }
 0x2b4   : > { %7177 = vmatpush1.bf16.msra.mxu0 %v8090_v32  ;;  %7505 = vmatpush1.bf16.msra.mxu1 %v8092_v33  ;;  %v8149_v32 = vcombine.high %v427_v27, %v431_v28  ;;  %v434_v33 = vld [vmem:[%s9567_s22 + $0x5d0] sm:$0xff] }
 0x2b5   : > { %7187 = vmatprep.subr.bf16.mxu0 %v8099_v34  ;;  %7515 = vmatprep.subr.bf16.mxu1 %v8101_v57  ;;  %v438_v34 = vld [vmem:[%s9567_s22 + $0x5f0] sm:$0xff]  ;;  %v435_v57 = vld [vmem:[%s9567_s22 + $0x5d8] sm:$0xff] }
 0x2b6   : > { %v8155_v40 = vcombine.high %v434_v33, %v438_v34  ;;  %v8156_v48 = vcombine.low %v435_v57, %v439_v35 }
 0x2b7   : > { %7179 = vmatmul.mubr.bf16.vlgmr.msra.gmra.mrb[4].mxu0 %v9653_v12  ;;  %7507 = vmatmul.mubr.bf16.vlgmr.msra.gmra.mrb[4].mxu1 %v9653_v12  ;;  %v8114_v12 = vcombine.low %v394_v45, %v398_v47  ;;  %v447_v45 = vld [vmem:[%s9567_s22 + $0x638] sm:$0xff]  ;;  %v8154_v47 = vcombine.low %v434_v33, %v438_v34 }
 0x2b8   : > { %7188 = vmatpush1.bf16.msra.mxu0 %v8098_v41  ;;  %7516 = vmatpush1.bf16.msra.mxu1 %v8100_v42  ;;  %v8157_v41 = vcombine.high %v435_v57, %v439_v35  ;;  %v442_v42 = vld [vmem:[%s9567_s22 + $0x610] sm:$0xff]  ;;  %v487_v33 = vld [vmem:[%s9567_s22 + $0x778] sm:$0xff] }
 0x2b9   : > { %7189 = vmatprep.subr.bf16.mxu0 %v8107_v43  ;;  %7517 = vmatprep.subr.bf16.mxu1 %v8109_v44  ;;  %v446_v43 = vld [vmem:[%s9567_s22 + $0x630] sm:$0xff]  ;;  %v443_v44 = vld [vmem:[%s9567_s22 + $0x618] sm:$0xff] }
 0x2ba   : > { %7219 = vmatprep.mubr.bf16.mxu0 %v9663_v53  ;;  %7547 = vmatprep.mubr.bf16.mxu1 %v9663_v53  ;;  %v8124_v53 = vcombine.low %v403_v61, %v407_v62  ;;  %v8163_v50 = vcombine.high %v442_v42, %v446_v43  ;;  %v8162_v60 = vcombine.low %v442_v42, %v446_v43  ;;  %v495_v42 = vld [vmem:[%s9567_s22 + $0x7b8] sm:$0xff] }
 0x2bb   : > { %v8164_v61 = vcombine.low %v443_v44, %v447_v45 }
 0x2bc   : > { %7190 = vmatpush1.bf16.msra.mxu0 %v8106_v51  ;;  %7518 = vmatpush1.bf16.msra.mxu1 %v8108_v52  ;;  %v8165_v51 = vcombine.high %v443_v44, %v447_v45  ;;  %v450_v52 = vld [vmem:[%s9567_s22 + $0x650] sm:$0xff] }
 0x2bd   : > { %7191 = vmatprep.subr.bf16.mxu0 %v8115_v54  ;;  %7519 = vmatprep.subr.bf16.mxu1 %v8117_v56  ;;  %v454_v54 = vld [vmem:[%s9567_s22 + $0x670] sm:$0xff]  ;;  %v451_v56 = vld [vmem:[%s9567_s22 + $0x658] sm:$0xff] }
 0x2be   : > { %v8171_v62 = vcombine.high %v450_v52, %v454_v54  ;;  %v8170_v4 = vcombine.low %v450_v52, %v454_v54  ;;  %v8172_v5 = vcombine.low %v451_v56, %v455_v58  ;;  %v503_v52 = vld [vmem:[%s9567_s22 + $0x7f8] sm:$0xff] }
 0x2c0   : > { %7192 = vmatpush1.bf16.msra.mxu0 %v8114_v12  ;;  %7520 = vmatpush1.bf16.msra.mxu1 %v8116_v63  ;;  %v8173_v12 = vcombine.high %v451_v56, %v455_v58  ;;  %v458_v63 = vld [vmem:[%s9567_s22 + $0x690] sm:$0xff] }
 0x2c1   : > { %7193 = vmatprep.subr.bf16.mxu0 %v8123_v1  ;;  %7521 = vmatprep.subr.bf16.mxu1 %v8125_v2  ;;  %v462_v1 = vld [vmem:[%s9567_s22 + $0x6b0] sm:$0xff]  ;;  %v459_v2 = vld [vmem:[%s9567_s22 + $0x698] sm:$0xff] }
 0x2c2   : > { %v8179_v6 = vcombine.high %v458_v63, %v462_v1  ;;  %v8178_v10 = vcombine.low %v458_v63, %v462_v1  ;;  %v8180_v11 = vcombine.low %v459_v2, %v463_v3  ;;  %v511_v63 = vld [vmem:[%s9567_s22 + $0x838] sm:$0xff] }
 0x2c4   : > { %7194 = vmatpush1.bf16.msra.mxu0 %v8122_v7  ;;  %7522 = vmatpush1.bf16.msra.mxu1 %v8124_v53  ;;  %v8181_v7 = vcombine.high %v459_v2, %v463_v3  ;;  %v466_v53 = vld [vmem:[%s9567_s22 + $0x6d0] sm:$0xff] }
 0x2c5   : > { %7195 = vmatprep.subr.bf16.mxu0 %v8131_v8  ;;  %7523 = vmatprep.subr.bf16.mxu1 %v8133_v24  ;;  %v470_v8 = vld [vmem:[%s9567_s22 + $0x6f0] sm:$0xff]  ;;  %v467_v24 = vld [vmem:[%s9567_s22 + $0x6d8] sm:$0xff] }
 0x2c6   : > { %v8187_v13 = vcombine.high %v466_v53, %v470_v8  ;;  %v8186_v26 = vcombine.low %v466_v53, %v470_v8  ;;  %v8188_v27 = vcombine.low %v467_v24, %v471_v9  ;;  %v519_v53 = vld [vmem:[%s9567_s22 + $0x878] sm:$0xff] }
 0x2c8   : > { %7196 = vmatpush1.bf16.msra.mxu0 %v8130_v14  ;;  %7524 = vmatpush1.bf16.msra.mxu1 %v8132_v17  ;;  %v8189_v14 = vcombine.high %v467_v24, %v471_v9  ;;  %v474_v17 = vld [vmem:[%s9567_s22 + $0x710] sm:$0xff] }
 0x2c9   : > { %7197 = vmatprep.subr.bf16.mxu0 %v8139_v18  ;;  %7525 = vmatprep.subr.bf16.mxu1 %v8141_v21  ;;  %v478_v18 = vld [vmem:[%s9567_s22 + $0x730] sm:$0xff]  ;;  %v475_v21 = vld [vmem:[%s9567_s22 + $0x718] sm:$0xff] }
 0x2ca   : > { %v8195_v28 = vcombine.high %v474_v17, %v478_v18  ;;  %v8194_v34 = vcombine.low %v474_v17, %v478_v18  ;;  %v8196_v57 = vcombine.low %v475_v21, %v479_v23  ;;  %v527_v17 = vld [vmem:[%s9567_s22 + $0x8b8] sm:$0xff] }
 0x2cc   : > { %7198 = vmatpush1.bf16.msra.mxu0 %v8138_v29  ;;  %7526 = vmatpush1.bf16.msra.mxu1 %v8140_v30  ;;  %v8197_v29 = vcombine.high %v475_v21, %v479_v23  ;;  %v482_v30 = vld [vmem:[%s9567_s22 + $0x750] sm:$0xff] }
 0x2cd   : > { %7199 = vmatprep.subr.bf16.mxu0 %v8147_v31  ;;  %7527 = vmatprep.subr.bf16.mxu1 %v8149_v32  ;;  %v486_v31 = vld [vmem:[%s9567_s22 + $0x770] sm:$0xff]  ;;  %v483_v32 = vld [vmem:[%s9567_s22 + $0x758] sm:$0xff] }
 0x2ce   : > { %v8203_v35 = vcombine.high %v482_v30, %v486_v31  ;;  %v8202_v43 = vcombine.low %v482_v30, %v486_v31  ;;  %v8204_v44 = vcombine.low %v483_v32, %v487_v33  ;;  %v535_v30 = vld [vmem:[%s9567_s22 + $0x8f8] sm:$0xff] }
 0x2d0   : > { %7200 = vmatpush1.bf16.msra.mxu0 %v8146_v37  ;;  %7528 = vmatpush1.bf16.msra.mxu1 %v8148_v38  ;;  %v8205_v37 = vcombine.high %v483_v32, %v487_v33  ;;  %v490_v38 = vld [vmem:[%s9567_s22 + $0x790] sm:$0xff] }
 0x2d1   : > { %7201 = vmatprep.subr.bf16.mxu0 %v8155_v40  ;;  %7529 = vmatprep.subr.bf16.mxu1 %v8157_v41  ;;  %v494_v40 = vld [vmem:[%s9567_s22 + $0x7b0] sm:$0xff]  ;;  %v491_v41 = vld [vmem:[%s9567_s22 + $0x798] sm:$0xff] }
 0x2d2   : > { %v8211_v45 = vcombine.high %v490_v38, %v494_v40  ;;  %v8210_v54 = vcombine.low %v490_v38, %v494_v40  ;;  %v8212_v56 = vcombine.low %v491_v41, %v495_v42 }
 0x2d4   : > { %7202 = vmatpush1.bf16.msra.mxu0 %v8154_v47  ;;  %7530 = vmatpush1.bf16.msra.mxu1 %v8156_v48  ;;  %v8213_v47 = vcombine.high %v491_v41, %v495_v42  ;;  %v498_v48 = vld [vmem:[%s9567_s22 + $0x7d0] sm:$0xff] }
 0x2d5   : > { %7203 = vmatprep.subr.bf16.mxu0 %v8163_v50  ;;  %7531 = vmatprep.subr.bf16.mxu1 %v8165_v51  ;;  %v502_v50 = vld [vmem:[%s9567_s22 + $0x7f0] sm:$0xff]  ;;  %v499_v51 = vld [vmem:[%s9567_s22 + $0x7d8] sm:$0xff] }
 0x2d6   : > { %v8219_v58 = vcombine.high %v498_v48, %v502_v50  ;;  %v8218_v1 = vcombine.low %v498_v48, %v502_v50  ;;  %v8220_v2 = vcombine.low %v499_v51, %v503_v52  ;;  %v546_v42 = vld [vmem:[%s9567_s22 + $0x950] sm:$0xff] }
 0x2d8   : > { %7204 = vmatpush1.bf16.msra.mxu0 %v8162_v60  ;;  %7532 = vmatpush1.bf16.msra.mxu1 %v8164_v61  ;;  %v8221_v60 = vcombine.high %v499_v51, %v503_v52  ;;  %v506_v61 = vld [vmem:[%s9567_s22 + $0x810] sm:$0xff] }
 0x2d9   : > { %7205 = vmatprep.subr.bf16.mxu0 %v8171_v62  ;;  %7533 = vmatprep.subr.bf16.mxu1 %v8173_v12  ;;  %v510_v62 = vld [vmem:[%s9567_s22 + $0x830] sm:$0xff]  ;;  %v507_v12 = vld [vmem:[%s9567_s22 + $0x818] sm:$0xff] }
 0x2da   : > { %v8227_v3 = vcombine.high %v506_v61, %v510_v62  ;;  %v8226_v8 = vcombine.low %v506_v61, %v510_v62  ;;  %v8228_v24 = vcombine.low %v507_v12, %v511_v63  ;;  %v554_v52 = vld [vmem:[%s9567_s22 + $0x990] sm:$0xff] }
 0x2dc   : > { %7206 = vmatpush1.bf16.msra.mxu0 %v8170_v4  ;;  %7534 = vmatpush1.bf16.msra.mxu1 %v8172_v5  ;;  %v8229_v4 = vcombine.high %v507_v12, %v511_v63  ;;  %v514_v5 = vld [vmem:[%s9567_s22 + $0x850] sm:$0xff] }
 0x2dd   : > { %7207 = vmatprep.subr.bf16.mxu0 %v8179_v6  ;;  %7535 = vmatprep.subr.bf16.mxu1 %v8181_v7  ;;  %v518_v6 = vld [vmem:[%s9567_s22 + $0x870] sm:$0xff]  ;;  %v515_v7 = vld [vmem:[%s9567_s22 + $0x858] sm:$0xff] }
 0x2de   : > { %v8235_v9 = vcombine.high %v514_v5, %v518_v6  ;;  %v8234_v18 = vcombine.low %v514_v5, %v518_v6  ;;  %v8236_v21 = vcombine.low %v515_v7, %v519_v53  ;;  %v562_v63 = vld [vmem:[%s9567_s22 + $0x9d0] sm:$0xff] }
 0x2e0   : > { %7208 = vmatpush1.bf16.msra.mxu0 %v8178_v10  ;;  %7536 = vmatpush1.bf16.msra.mxu1 %v8180_v11  ;;  %v8237_v10 = vcombine.high %v515_v7, %v519_v53  ;;  %v522_v11 = vld [vmem:[%s9567_s22 + $0x890] sm:$0xff] }
 0x2e1   : > { %7209 = vmatprep.subr.bf16.mxu0 %v8187_v13  ;;  %7537 = vmatprep.subr.bf16.mxu1 %v8189_v14  ;;  %v526_v13 = vld [vmem:[%s9567_s22 + $0x8b0] sm:$0xff]  ;;  %v523_v14 = vld [vmem:[%s9567_s22 + $0x898] sm:$0xff] }
 0x2e2   : > { %v8243_v23 = vcombine.high %v522_v11, %v526_v13  ;;  %v8244_v31 = vcombine.low %v523_v14, %v527_v17  ;;  %v570_v53 = vld [vmem:[%s9567_s22 + $0xa10] sm:$0xff] }
 0x2e4   : > { %7210 = vmatpush1.bf16.msra.mxu0 %v8186_v26  ;;  %7538 = vmatpush1.bf16.msra.mxu1 %v8188_v27  ;;  %v8245_v26 = vcombine.high %v523_v14, %v527_v17  ;;  %v530_v27 = vld [vmem:[%s9567_s22 + $0x8d0] sm:$0xff] }
 0x2e5   : > { %7211 = vmatprep.subr.bf16.mxu0 %v8195_v28  ;;  %7539 = vmatprep.subr.bf16.mxu1 %v8197_v29  ;;  %v534_v28 = vld [vmem:[%s9567_s22 + $0x8f0] sm:$0xff]  ;;  %v531_v29 = vld [vmem:[%s9567_s22 + $0x8d8] sm:$0xff] }
 0x2e6   : > { %v8251_v32 = vcombine.high %v530_v27, %v534_v28  ;;  %v8253_v33 = vcombine.high %v531_v29, %v535_v30  ;;  %v8250_v38 = vcombine.low %v530_v27, %v534_v28  ;;  %v578_v17 = vld [vmem:[%s9567_s22 + $0xa50] sm:$0xff] }
 0x2e8   : > { %7212 = vmatpush1.bf16.msra.mxu0 %v8194_v34  ;;  %7540 = vmatpush1.bf16.msra.mxu1 %v8196_v57  ;;  %v538_v34 = vld [vmem:[%s9567_s22 + $0x910] sm:$0xff] }
 0x2e9   : > { %7213 = vmatprep.subr.bf16.mxu0 %v8203_v35  ;;  %7541 = vmatprep.subr.bf16.mxu1 %v8205_v37  ;;  %v542_v57 = vld [vmem:[%s9567_s22 + $0x930] sm:$0xff]  ;;  %v539_v35 = vld [vmem:[%s9567_s22 + $0x918] sm:$0xff] }
 0x2ea   : > { %v543_v37 = vld [vmem:[%s9567_s22 + $0x938] sm:$0xff]  ;;  %v8259_v40 = vcombine.high %v538_v34, %v542_v57 }
 0x2eb   : > { %v8261_v41 = vcombine.high %v539_v35, %v543_v37  ;;  %v8260_v48 = vcombine.low %v539_v35, %v543_v37  ;;  %v594_v37 = vld [vmem:[%s9567_s22 + $0xad0] sm:$0xff] }
 0x2ec   : > { %7214 = vmatpush1.bf16.msra.mxu0 %v8202_v43  ;;  %7542 = vmatpush1.bf16.msra.mxu1 %v8204_v44  ;;  %v550_v43 = vld [vmem:[%s9567_s22 + $0x970] sm:$0xff]  ;;  %v547_v44 = vld [vmem:[%s9567_s22 + $0x958] sm:$0xff] }
 0x2ed   : > { %7215 = vmatprep.subr.bf16.mxu0 %v8211_v45  ;;  %7543 = vmatprep.subr.bf16.mxu1 %v8213_v47  ;;  %v551_v45 = vld [vmem:[%s9567_s22 + $0x978] sm:$0xff]  ;;  %v8258_v47 = vcombine.low %v538_v34, %v542_v57  ;;  %v8267_v50 = vcombine.high %v546_v42, %v550_v43 }
 0x2ee   : > { %v8269_v51 = vcombine.high %v547_v44, %v551_v45  ;;  %v8268_v61 = vcombine.low %v547_v44, %v551_v45  ;;  %v602_v45 = vld [vmem:[%s9567_s22 + $0xb10] sm:$0xff] }
 0x2f0   : > { %7216 = vmatpush1.bf16.msra.mxu0 %v8210_v54  ;;  %7544 = vmatpush1.bf16.msra.mxu1 %v8212_v56  ;;  %v558_v54 = vld [vmem:[%s9567_s22 + $0x9b0] sm:$0xff]  ;;  %v555_v56 = vld [vmem:[%s9567_s22 + $0x998] sm:$0xff] }
 0x2f1   : > { %7217 = vmatprep.subr.bf16.mxu0 %v8219_v58  ;;  %7545 = vmatprep.subr.bf16.mxu1 %v8221_v60  ;;  %v559_v58 = vld [vmem:[%s9567_s22 + $0x9b8] sm:$0xff]  ;;  %v8266_v60 = vcombine.low %v546_v42, %v550_v43  ;;  %v8275_v62 = vcombine.high %v554_v52, %v558_v54 }
 0x2f2   : > { %v8277_v12 = vcombine.high %v555_v56, %v559_v58  ;;  %v8276_v5 = vcombine.low %v555_v56, %v559_v58  ;;  %v610_v58 = vld [vmem:[%s9567_s22 + $0xb50] sm:$0xff] }
 0x2f4   : > { %7218 = vmatpush1.bf16.msra.mxu0 %v8218_v1  ;;  %7546 = vmatpush1.bf16.msra.mxu1 %v8220_v2  ;;  %v566_v1 = vld [vmem:[%s9567_s22 + $0x9f0] sm:$0xff]  ;;  %v563_v2 = vld [vmem:[%s9567_s22 + $0x9d8] sm:$0xff] }
 0x2f5   : > { %7228 = vmatprep.subr.bf16.mxu0 %v8227_v3  ;;  %7556 = vmatprep.subr.bf16.mxu1 %v8229_v4  ;;  %v567_v3 = vld [vmem:[%s9567_s22 + $0x9f8] sm:$0xff]  ;;  %v8274_v4 = vcombine.low %v554_v52, %v558_v54  ;;  %v8283_v6 = vcombine.high %v562_v63, %v566_v1 }
 0x2f6   : > { %v8285_v7 = vcombine.high %v563_v2, %v567_v3 }
 0x2f7   : > { %7220 = vmatmul.mubr.bf16.vlgmr.msra.gmra.mrb[4].mxu0 %v9731_v22  ;;  %7548 = vmatmul.mubr.bf16.vlgmr.msra.gmra.mrb[4].mxu1 %v9731_v22  ;;  %v8242_v22 = vcombine.low %v522_v11, %v526_v13  ;;  %v8284_v11 = vcombine.low %v563_v2, %v567_v3  ;;  %v618_v3 = vld [vmem:[%s9567_s22 + $0xb90] sm:$0xff] }
 0x2f8   : > { %7229 = vmatpush1.bf16.msra.mxu0 %v8226_v8  ;;  %7557 = vmatpush1.bf16.msra.mxu1 %v8228_v24  ;;  %v574_v8 = vld [vmem:[%s9567_s22 + $0xa30] sm:$0xff]  ;;  %v571_v24 = vld [vmem:[%s9567_s22 + $0xa18] sm:$0xff] }
 0x2f9   : > { %7230 = vmatprep.subr.bf16.mxu0 %v8235_v9  ;;  %7558 = vmatprep.subr.bf16.mxu1 %v8237_v10  ;;  %v575_v9 = vld [vmem:[%s9567_s22 + $0xa38] sm:$0xff]  ;;  %v8282_v10 = vcombine.low %v562_v63, %v566_v1  ;;  %v8291_v13 = vcombine.high %v570_v53, %v574_v8 }
 0x2fa   : > { %7260 = vmatprep.mubr.bf16.mxu0 %v9741_v15  ;;  %7588 = vmatprep.mubr.bf16.mxu1 %v9741_v15  ;;  %v8252_v15 = vcombine.low %v531_v29, %v535_v30  ;;  %v8293_v14 = vcombine.high %v571_v24, %v575_v9  ;;  %v8292_v27 = vcombine.low %v571_v24, %v575_v9  ;;  %v586_v30 = vld [vmem:[%s9567_s22 + $0xa90] sm:$0xff] }
 0x2fb   : > { %v626_v9 = vld [vmem:[%s9567_s22 + $0xbd0] sm:$0xff] }
 0x2fc   : > { %7231 = vmatpush1.bf16.msra.mxu0 %v8234_v18  ;;  %7559 = vmatpush1.bf16.msra.mxu1 %v8236_v21  ;;  %v582_v18 = vld [vmem:[%s9567_s22 + $0xa70] sm:$0xff]  ;;  %v579_v21 = vld [vmem:[%s9567_s22 + $0xa58] sm:$0xff] }
 0x2fd   : > { %7232 = vmatprep.subr.bf16.mxu0 %v8243_v23  ;;  %7560 = vmatprep.subr.bf16.mxu1 %v8245_v26  ;;  %v583_v23 = vld [vmem:[%s9567_s22 + $0xa78] sm:$0xff]  ;;  %v8290_v26 = vcombine.low %v570_v53, %v574_v8  ;;  %v8299_v28 = vcombine.high %v578_v17, %v582_v18 }
 0x2fe   : > { %v8301_v29 = vcombine.high %v579_v21, %v583_v23  ;;  %v8300_v34 = vcombine.low %v579_v21, %v583_v23  ;;  %v634_v23 = vld [vmem:[%s9567_s22 + $0xc10] sm:$0xff] }
 0x300   : > { %7233 = vmatpush1.bf16.msra.mxu0 %v8242_v22  ;;  %7561 = vmatpush1.bf16.msra.mxu1 %v8244_v31  ;;  %v590_v22 = vld [vmem:[%s9567_s22 + $0xab0] sm:$0xff]  ;;  %v587_v31 = vld [vmem:[%s9567_s22 + $0xa98] sm:$0xff] }
 0x301   : > { %7234 = vmatprep.subr.bf16.mxu0 %v8251_v32  ;;  %7562 = vmatprep.subr.bf16.mxu1 %v8253_v33  ;;  %v591_v32 = vld [vmem:[%s9567_s22 + $0xab8] sm:$0xff]  ;;  %v8298_v33 = vcombine.low %v578_v17, %v582_v18  ;;  %v8307_v57 = vcombine.high %v586_v30, %v590_v22 }
 0x302   : > { %v8309_v35 = vcombine.high %v587_v31, %v591_v32  ;;  %v8308_v42 = vcombine.low %v587_v31, %v591_v32  ;;  %v642_v32 = vld [vmem:[%s9567_s22 + $0xc50] sm:$0xff] }
 0x304   : > { %7235 = vmatpush1.bf16.msra.mxu0 %v8250_v38  ;;  %7563 = vmatpush1.bf16.msra.mxu1 %v8252_v15  ;;  %v598_v38 = vld [vmem:[%s9567_s22 + $0xaf0] sm:$0xff]  ;;  %v595_v15 = vld [vmem:[%s9567_s22 + $0xad8] sm:$0xff] }
 0x305   : > { %7236 = vmatprep.subr.bf16.mxu0 %v8259_v40  ;;  %7564 = vmatprep.subr.bf16.mxu1 %v8261_v41  ;;  %v599_v40 = vld [vmem:[%s9567_s22 + $0xaf8] sm:$0xff]  ;;  %v8306_v41 = vcombine.low %v586_v30, %v590_v22  ;;  %v8315_v43 = vcombine.high %v594_v37, %v598_v38 }
 0x306   : > { %v8317_v44 = vcombine.high %v595_v15, %v599_v40  ;;  %v8316_v52 = vcombine.low %v595_v15, %v599_v40  ;;  %v650_v40 = vld [vmem:[%s9567_s22 + $0xc90] sm:$0xff] }
 0x308   : > { %7237 = vmatpush1.bf16.msra.mxu0 %v8258_v47  ;;  %7565 = vmatpush1.bf16.msra.mxu1 %v8260_v48  ;;  %v606_v47 = vld [vmem:[%s9567_s22 + $0xb30] sm:$0xff]  ;;  %v603_v48 = vld [vmem:[%s9567_s22 + $0xb18] sm:$0xff] }
 0x309   : > { %7238 = vmatprep.subr.bf16.mxu0 %v8267_v50  ;;  %7566 = vmatprep.subr.bf16.mxu1 %v8269_v51  ;;  %v607_v50 = vld [vmem:[%s9567_s22 + $0xb38] sm:$0xff]  ;;  %v8314_v51 = vcombine.low %v594_v37, %v598_v38  ;;  %v8323_v54 = vcombine.high %v602_v45, %v606_v47 }
 0x30a   : > { %v8325_v56 = vcombine.high %v603_v48, %v607_v50  ;;  %v8324_v63 = vcombine.low %v603_v48, %v607_v50  ;;  %v658_v50 = vld [vmem:[%s9567_s22 + $0xcd0] sm:$0xff] }
 0x30c   : > { %7239 = vmatpush1.bf16.msra.mxu0 %v8266_v60  ;;  %7567 = vmatpush1.bf16.msra.mxu1 %v8268_v61  ;;  %v614_v60 = vld [vmem:[%s9567_s22 + $0xb70] sm:$0xff]  ;;  %v611_v61 = vld [vmem:[%s9567_s22 + $0xb58] sm:$0xff] }
 0x30d   : > { %7240 = vmatprep.subr.bf16.mxu0 %v8275_v62  ;;  %7568 = vmatprep.subr.bf16.mxu1 %v8277_v12  ;;  %v615_v62 = vld [vmem:[%s9567_s22 + $0xb78] sm:$0xff]  ;;  %v8322_v12 = vcombine.low %v602_v45, %v606_v47  ;;  %v8331_v1 = vcombine.high %v610_v58, %v614_v60 }
 0x30e   : > { %v8333_v2 = vcombine.high %v611_v61, %v615_v62  ;;  %v8332_v53 = vcombine.low %v611_v61, %v615_v62  ;;  %v666_v62 = vld [vmem:[%s9567_s22 + $0xd10] sm:$0xff] }
 0x310   : > { %7241 = vmatpush1.bf16.msra.mxu0 %v8274_v4  ;;  %7569 = vmatpush1.bf16.msra.mxu1 %v8276_v5  ;;  %v622_v4 = vld [vmem:[%s9567_s22 + $0xbb0] sm:$0xff]  ;;  %v619_v5 = vld [vmem:[%s9567_s22 + $0xb98] sm:$0xff] }
 0x311   : > { %7242 = vmatprep.subr.bf16.mxu0 %v8283_v6  ;;  %7570 = vmatprep.subr.bf16.mxu1 %v8285_v7  ;;  %v623_v6 = vld [vmem:[%s9567_s22 + $0xbb8] sm:$0xff]  ;;  %v8330_v7 = vcombine.low %v610_v58, %v614_v60  ;;  %v8339_v8 = vcombine.high %v618_v3, %v622_v4 }
 0x312   : > { %v8341_v24 = vcombine.high %v619_v5, %v623_v6  ;;  %v8340_v17 = vcombine.low %v619_v5, %v623_v6  ;;  %v674_v6 = vld [vmem:[%s9567_s22 + $0xd50] sm:$0xff] }
 0x314   : > { %7243 = vmatpush1.bf16.msra.mxu0 %v8282_v10  ;;  %7571 = vmatpush1.bf16.msra.mxu1 %v8284_v11  ;;  %v630_v10 = vld [vmem:[%s9567_s22 + $0xbf0] sm:$0xff]  ;;  %v627_v11 = vld [vmem:[%s9567_s22 + $0xbd8] sm:$0xff] }
 0x315   : > { %7244 = vmatprep.subr.bf16.mxu0 %v8291_v13  ;;  %7572 = vmatprep.subr.bf16.mxu1 %v8293_v14  ;;  %v631_v13 = vld [vmem:[%s9567_s22 + $0xbf8] sm:$0xff]  ;;  %v8338_v14 = vcombine.low %v618_v3, %v622_v4  ;;  %v8347_v18 = vcombine.high %v626_v9, %v630_v10 }
 0x316   : > { %v8349_v21 = vcombine.high %v627_v11, %v631_v13  ;;  %v8348_v30 = vcombine.low %v627_v11, %v631_v13 }
 0x318   : > { %7245 = vmatpush1.bf16.msra.mxu0 %v8290_v26  ;;  %7573 = vmatpush1.bf16.msra.mxu1 %v8292_v27  ;;  %v638_v26 = vld [vmem:[%s9567_s22 + $0xc30] sm:$0xff]  ;;  %v635_v27 = vld [vmem:[%s9567_s22 + $0xc18] sm:$0xff] }
 0x319   : > { %7246 = vmatprep.subr.bf16.mxu0 %v8299_v28  ;;  %7574 = vmatprep.subr.bf16.mxu1 %v8301_v29  ;;  %v639_v28 = vld [vmem:[%s9567_s22 + $0xc38] sm:$0xff]  ;;  %v8346_v29 = vcombine.low %v626_v9, %v630_v10  ;;  %v8355_v22 = vcombine.high %v634_v23, %v638_v26  ;;  %v1272_v10 = vld [vmem:[%s10431_s27] sm:$0xff] }
 0x31a   : > { %v8357_v31 = vcombine.high %v635_v27, %v639_v28  ;;  %v8356_v37 = vcombine.low %v635_v27, %v639_v28  ;;  %v683_v28 = vld [vmem:[%s9567_s22 + $0xd98] sm:$0xff] }
 0x31c   : > { %7247 = vmatpush1.bf16.msra.mxu0 %v8298_v33  ;;  %7575 = vmatpush1.bf16.msra.mxu1 %v8300_v34  ;;  %v646_v33 = vld [vmem:[%s9567_s22 + $0xc70] sm:$0xff]  ;;  %v643_v34 = vld [vmem:[%s9567_s22 + $0xc58] sm:$0xff] }
 0x31d   : > { %7248 = vmatprep.subr.bf16.mxu0 %v8307_v57  ;;  %7576 = vmatprep.subr.bf16.mxu1 %v8309_v35  ;;  %v647_v57 = vld [vmem:[%s9567_s22 + $0xc78] sm:$0xff]  ;;  %v8354_v35 = vcombine.low %v634_v23, %v638_v26  ;;  %v8363_v38 = vcombine.high %v642_v32, %v646_v33  ;;  %v682_v23 = vld [vmem:[%s9567_s22 + $0xd90] sm:$0xff] }
 0x31e   : > { %v8365_v15 = vcombine.high %v643_v34, %v647_v57  ;;  %v8364_v45 = vcombine.low %v643_v34, %v647_v57  ;;  %v686_v26 = vld [vmem:[%s9567_s22 + $0xdb0] sm:$0xff] }
 0x31f   : > { %v8403_v34 = vcombine.high %v682_v23, %v686_v26 }
 0x320   : > { %7249 = vmatpush1.bf16.msra.mxu0 %v8306_v41  ;;  %7577 = vmatpush1.bf16.msra.mxu1 %v8308_v42  ;;  %v654_v41 = vld [vmem:[%s9567_s22 + $0xcb0] sm:$0xff]  ;;  %v651_v42 = vld [vmem:[%s9567_s22 + $0xc98] sm:$0xff] }
 0x321   : > { %7250 = vmatprep.subr.bf16.mxu0 %v8315_v43  ;;  %7578 = vmatprep.subr.bf16.mxu1 %v8317_v44  ;;  %v655_v43 = vld [vmem:[%s9567_s22 + $0xcb8] sm:$0xff]  ;;  %v8362_v44 = vcombine.low %v642_v32, %v646_v33  ;;  %v8371_v47 = vcombine.high %v650_v40, %v654_v41 }
 0x322   : > { %v8373_v48 = vcombine.high %v651_v42, %v655_v43  ;;  %v8372_v58 = vcombine.low %v651_v42, %v655_v43  ;;  %v691_v42 = vld [vmem:[%s9567_s22 + $0xdd8] sm:$0xff] }
 0x323   : > { %v695_v43 = vld [vmem:[%s9567_s22 + $0xdf8] sm:$0xff] }
 0x324   : > { %7251 = vmatpush1.bf16.msra.mxu0 %v8314_v51  ;;  %7579 = vmatpush1.bf16.msra.mxu1 %v8316_v52  ;;  %v662_v51 = vld [vmem:[%s9567_s22 + $0xcf0] sm:$0xff]  ;;  %v659_v52 = vld [vmem:[%s9567_s22 + $0xcd8] sm:$0xff] }
 0x325   : > { %7252 = vmatprep.subr.bf16.mxu0 %v8323_v54  ;;  %7580 = vmatprep.subr.bf16.mxu1 %v8325_v56  ;;  %v663_v54 = vld [vmem:[%s9567_s22 + $0xcf8] sm:$0xff]  ;;  %v1274_v56 = vlaneseq  ;;  %v8379_v60 = vcombine.high %v658_v50, %v662_v51 }
 0x326   : > { %v8381_v61 = vcombine.high %v659_v52, %v663_v54  ;;  %v8380_v3 = vcombine.low %v659_v52, %v663_v54 }
 0x328   : > { %7253 = vmatpush1.bf16.msra.mxu0 %v8322_v12  ;;  %7581 = vmatpush1.bf16.msra.mxu1 %v8324_v63  ;;  %v670_v12 = vld [vmem:[%s9567_s22 + $0xd30] sm:$0xff]  ;;  %v667_v63 = vld [vmem:[%s9567_s22 + $0xd18] sm:$0xff] }
 0x329   : > { %7254 = vmatprep.subr.bf16.mxu0 %v8331_v1  ;;  %7582 = vmatprep.subr.bf16.mxu1 %v8333_v2  ;;  %v671_v1 = vld [vmem:[%s9567_s22 + $0xd38] sm:$0xff]  ;;  %v10424_v2 = vshrl.u32 %v1274_v56, 7  ;;  %v8387_v4 = vcombine.high %v666_v62, %v670_v12  ;;  %v8386_v9 = vcombine.low %v666_v62, %v670_v12  ;;  %v8413_v12 = vcombine.high %v691_v42, %v695_v43 }
 0x32a   : > { %v8389_v5 = vcombine.high %v667_v63, %v671_v1 }
 0x32b   : > { %v1284_v11 = vsub.s32 2, %v10424_v2  ;;  %v1280_v13 = vsub.s32 1, %v10424_v2 }
 0x32c   : > { %7255 = vmatpush1.bf16.msra.mxu0 %v8330_v7  ;;  %7583 = vmatpush1.bf16.msra.mxu1 %v8332_v53  ;;  %v678_v7 = vld [vmem:[%s9567_s22 + $0xd70] sm:$0xff]  ;;  %v1276_v53 = vsub.s32 0, %v10424_v2 }
 0x32d   : > { %7256 = vmatprep.subr.bf16.mxu0 %v8339_v8  ;;  %7584 = vmatprep.subr.bf16.mxu1 %v8341_v24  ;;  %v675_v8 = vld [vmem:[%s9567_s22 + $0xd58] sm:$0xff] }
 0x32e   : > { %v679_v24 = vld [vmem:[%s9567_s22 + $0xd78] sm:$0xff]  ;;  %v1277_v27 = vrot.slane %v1272_v10, %v1276_v53 }
 0x32f   : > { %v8396_v33 = vcombine.low %v675_v8, %v679_v24 }
 0x330   : > { %7257 = vmatpush1.bf16.msra.mxu0 %v8338_v14  ;;  %7585 = vmatpush1.bf16.msra.mxu1 %v8340_v17  ;;  %v8388_v14 = vcombine.low %v667_v63, %v671_v1  ;;  %v1288_v17 = vsub.s32 3, %v10424_v2  ;;  %v698_v63 = vld [vmem:[%s9567_s22 + $0xe10] sm:$0xff] }
 0x331   : > { %7258 = vmatprep.subr.bf16.mxu0 %v8347_v18  ;;  %7586 = vmatprep.subr.bf16.mxu1 %v8349_v21  ;;  %v8395_v18 = vcombine.high %v674_v6, %v678_v7  ;;  %v8397_v21 = vcombine.high %v675_v8, %v679_v24  ;;  %v702_v1 = vld [vmem:[%s9567_s22 + $0xe30] sm:$0xff] }
 0x332   : > { %v1289_v32 = vrot.slane %v1272_v10, %v1288_v17  ;;  %v706_v8 = vld [vmem:[%s9567_s22 + $0xe50] sm:$0xff] }
 0x333   : > { %v710_v24 = vld [vmem:[%s9567_s22 + $0xe70] sm:$0xff] }
 0x334   : > { %7259 = vmatpush1.bf16.msra.mxu0 %v8346_v29  ;;  %7587 = vmatpush1.bf16.msra.mxu1 %v8348_v30  ;;  %v687_v29 = vld [vmem:[%s9567_s22 + $0xdb8] sm:$0xff]  ;;  %v1285_v30 = vrot.slane %v1272_v10, %v1284_v11  ;;  %v8418_v11 = vcombine.low %v698_v63, %v702_v1 }
 0x335   : > { %7269 = vmatprep.subr.bf16.mxu0 %v8355_v22  ;;  %7597 = vmatprep.subr.bf16.mxu1 %v8357_v31  ;;  %v1281_v22 = vrot.slane %v1272_v10, %v1280_v13  ;;  %v8394_v31 = vcombine.low %v674_v6, %v678_v7  ;;  %v8412_v6 = vcombine.low %v691_v42, %v695_v43  ;;  %v711_v10 = vld [vmem:[%s9567_s22 + $0xe78] sm:$0xff] }
 0x336   : > { %v8419_v7 = vcombine.high %v698_v63, %v702_v1 }
 0x337   : > { %7261 = vmatmul.mubr.bf16.vlgmr.msra.gmra.mrb[4].mxu0 %v9809_v36  ;;  %7589 = vmatmul.mubr.bf16.vlgmr.msra.gmra.mrb[4].mxu1 %v9809_v36  ;;  %v8370_v36 = vcombine.low %v650_v40, %v654_v41 }
 0x338   : > { %7270 = vmatpush1.bf16.msra.mxu0 %v8354_v35  ;;  %7598 = vmatpush1.bf16.msra.mxu1 %v8356_v37  ;;  %v8405_v35 = vcombine.high %v683_v28, %v687_v29  ;;  %v690_v37 = vld [vmem:[%s9567_s22 + $0xdd0] sm:$0xff] }
 0x339   : > { %7271 = vmatprep.subr.bf16.mxu0 %v8363_v38  ;;  %7599 = vmatprep.subr.bf16.mxu1 %v8365_v15  ;;  %v694_v38 = vld [vmem:[%s9567_s22 + $0xdf0] sm:$0xff] }
 0x33a   : > { %7301 = vmatprep.mubr.bf16.mxu0 %v9819_v25  ;;  %7629 = vmatprep.mubr.bf16.mxu1 %v9819_v25  ;;  %v8378_v25 = vcombine.low %v658_v50, %v662_v51  ;;  %v8402_v50 = vcombine.low %v682_v23, %v686_v26  ;;  %v715_v23 = vld [vmem:[%s9567_s22 + $0xe98] sm:$0xff] }
 0x33b   : > { %v719_v26 = vld [vmem:[%s9567_s22 + $0xeb8] sm:$0xff] }
 0x33c   : > { %7272 = vmatpush1.bf16.msra.mxu0 %v8362_v44  ;;  %7600 = vmatpush1.bf16.msra.mxu1 %v8364_v45 }
 0x33d   : > { %7273 = vmatprep.subr.bf16.mxu0 %v8371_v47  ;;  %7601 = vmatprep.subr.bf16.mxu1 %v8373_v48 }
 0x340   : > { %7274 = vmatpush1.bf16.msra.mxu0 %v8370_v36  ;;  %7602 = vmatpush1.bf16.msra.mxu1 %v8372_v58  ;;  %v8404_v36 = vcombine.low %v683_v28, %v687_v29  ;;  %v8411_v58 = vcombine.high %v690_v37, %v694_v38 }
 0x341   : > { %7275 = vmatprep.subr.bf16.mxu0 %v8379_v60  ;;  %7603 = vmatprep.subr.bf16.mxu1 %v8381_v61 }
 0x344   : > { %7276 = vmatpush1.bf16.msra.mxu0 %v8378_v25  ;;  %7604 = vmatpush1.bf16.msra.mxu1 %v8380_v3  ;;  %v699_v3 = vld [vmem:[%s9567_s22 + $0xe18] sm:$0xff] }
 0x345   : > { %7277 = vmatprep.subr.bf16.mxu0 %v8387_v4  ;;  %7605 = vmatprep.subr.bf16.mxu1 %v8389_v5  ;;  %v703_v4 = vld [vmem:[%s9567_s22 + $0xe38] sm:$0xff]  ;;  %v8410_v5 = vcombine.low %v690_v37, %v694_v38  ;;  %v730_v38 = vld [vmem:[%s9567_s22 + $0xf10] sm:$0xff] }
 0x346   : > { %v8421_v53 = vcombine.high %v699_v3, %v703_v4  ;;  %v8420_v13 = vcombine.low %v699_v3, %v703_v4  ;;  %v754_v3 = vld [vmem:[%s9567_s22 + $0xfd0] sm:$0xff] }
 0x347   : > { %v758_v4 = vld [vmem:[%s9567_s22 + $0xff0] sm:$0xff] }
 0x348   : > { %7278 = vmatpush1.bf16.msra.mxu0 %v8386_v9  ;;  %7606 = vmatpush1.bf16.msra.mxu1 %v8388_v14  ;;  %v707_v9 = vld [vmem:[%s9567_s22 + $0xe58] sm:$0xff]  ;;  %v8427_v14 = vcombine.high %v706_v8, %v710_v24 }
 0x349   : > { %7279 = vmatprep.subr.bf16.mxu0 %v8395_v18  ;;  %7607 = vmatprep.subr.bf16.mxu1 %v8397_v21  ;;  %v8429_v17 = vcombine.high %v707_v9, %v711_v10  ;;  %v714_v18 = vld [vmem:[%s9567_s22 + $0xe90] sm:$0xff]  ;;  %v8428_v28 = vcombine.low %v707_v9, %v711_v10 }
 0x34a   : > { %v6811_v57 = vpop.f32.mrb[0].mxu0  ;;  %v7139_v40 = vpop.f32.mrb[0].mxu1  ;;  %v718_v21 = vld [vmem:[%s9567_s22 + $0xeb0] sm:$0xff] }
 0x34b   : > { %v8998_v15 = vadd.f32 %v6811_v57, %v1277_v27  ;;  %v6813_v41 = vpop.f32.mrb[1].mxu0  ;;  %v9000_v44 = vadd.f32 %v7139_v40, %v1285_v30  ;;  %v7141_v47 = vpop.f32.mrb[1].mxu1  ;;  %v8426_v27 = vcombine.low %v706_v8, %v710_v24  ;;  %v8435_v29 = vcombine.high %v714_v18, %v718_v21  ;;  %v731_v40 = vld [vmem:[%s9567_s22 + $0xf18] sm:$0xff]  ;;  %v762_v9 = vld [vmem:[%s9567_s22 + $0x1010] sm:$0xff] }
 0x34c   : > { %v8999_v45 = vadd.f32 %v6813_v41, %v1281_v22  ;;  %v6815_v48 = vpop.f32.mrb[2].mxu0  ;;  %7280 = vmatpush1.bf16.msra.mxu0 %v8394_v31  ;;  %v9001_v52 = vadd.f32 %v7141_v47, %v1289_v32  ;;  %v7143_v54 = vpop.f32.mrb[2].mxu1  ;;  %7608 = vmatpush1.bf16.msra.mxu1 %v8396_v33  ;;  %v8437_v30 = vcombine.high %v715_v23, %v719_v26  ;;  %v722_v22 = vld [vmem:[%s9567_s22 + $0xed0] sm:$0xff]  ;;  %v723_v32 = vld [vmem:[%s9567_s22 + $0xed8] sm:$0xff] }
 0x34d   : > { %v7802_v51 = vmax.f32 %v8998_v15, 0.0  ;;  %v6816_v56 = vpop.f32.mrb[3].mxu0  ;;  %7281 = vmatprep.subr.bf16.mxu0 %v8403_v34  ;;  %v7804_v60 = vmax.f32 %v9000_v44, 0.0  ;;  %v7144_v62 = vpop.f32.mrb[3].mxu1  ;;  %7609 = vmatprep.subr.bf16.mxu1 %v8405_v35  ;;  %v726_v31 = vld [vmem:[%s9567_s22 + $0xef0] sm:$0xff]  ;;  %v727_v33 = vld [vmem:[%s9567_s22 + $0xef8] sm:$0xff]  ;;  %v8434_v34 = vcombine.low %v714_v18, %v718_v21  ;;  %v8436_v57 = vcombine.low %v715_v23, %v719_v26 }
 0x34e   : > { %v7803_v61 = vmax.f32 %v8999_v45, 0.0  ;;  %v7805_v25 = vmax.f32 %v9001_v52, 0.0  ;;  %v8443_v35 = vcombine.high %v722_v22, %v726_v31  ;;  %v8445_v37 = vcombine.high %v723_v32, %v727_v33  ;;  %v734_v15 = vld [vmem:[%s9567_s22 + $0xf30] sm:$0xff]  ;;  %v735_v41 = vld [vmem:[%s9567_s22 + $0xf38] sm:$0xff] }
 0x34f   : > { %7810 = vst [vmem:[%s10450_s10] sm:$0xff] %v7802_v51  ;;  %7812 = vst [vmem:[%s10450_s10 + $0x10] sm:$0xff] %v7804_v60  ;;  %v8442_v42 = vcombine.low %v722_v22, %v726_v31  ;;  %v8444_v43 = vcombine.low %v723_v32, %v727_v33  ;;  %v8451_v44 = vcombine.high %v730_v38, %v734_v15  ;;  %v738_v47 = vld [vmem:[%s9567_s22 + $0xf50] sm:$0xff]  ;;  %v743_v51 = vld [vmem:[%s9567_s22 + $0xf78] sm:$0xff] }
 0x350   : > { %7811 = vst [vmem:[%s10450_s10 + $0x8] sm:$0xff] %v7803_v61  ;;  %7282 = vmatpush1.bf16.msra.mxu0 %v8402_v50  ;;  %7813 = vst [vmem:[%s10450_s10 + $0x18] sm:$0xff] %v7805_v25  ;;  %7610 = vmatpush1.bf16.msra.mxu1 %v8404_v36  ;;  %v8453_v45 = vcombine.high %v731_v40, %v735_v41  ;;  %v742_v48 = vld [vmem:[%s9567_s22 + $0xf70] sm:$0xff]  ;;  %v739_v50 = vld [vmem:[%s9567_s22 + $0xf58] sm:$0xff]  ;;  %v8450_v52 = vcombine.low %v730_v38, %v734_v15 }
 0x351   : > { %7283 = vmatprep.subr.bf16.mxu0 %v8411_v58  ;;  %7611 = vmatprep.subr.bf16.mxu1 %v8413_v12  ;;  %v8452_v54 = vcombine.low %v731_v40, %v735_v41  ;;  %v8459_v56 = vcombine.high %v738_v47, %v742_v48  ;;  %v8461_v36 = vcombine.high %v739_v50, %v743_v51  ;;  %v746_v58 = vld [vmem:[%s9567_s22 + $0xf90] sm:$0xff]  ;;  %v747_v61 = vld [vmem:[%s9567_s22 + $0xf98] sm:$0xff] }
 0x352   : > { %v750_v60 = vld [vmem:[%s9567_s22 + $0xfb0] sm:$0xff]  ;;  %v751_v62 = vld [vmem:[%s9567_s22 + $0xfb8] sm:$0xff]  ;;  %v8458_v12 = vcombine.low %v738_v47, %v742_v48  ;;  %v8460_v63 = vcombine.low %v739_v50, %v743_v51  ;;  %v8475_v8 = vcombine.high %v754_v3, %v758_v4 }
 0x353   : > { %v8467_v1 = vcombine.high %v746_v58, %v750_v60  ;;  %v8469_v25 = vcombine.high %v747_v61, %v751_v62  ;;  %v766_v10 = vld [vmem:[%s9567_s22 + $0x1030] sm:$0xff]  ;;  %v795_v51 = vld [vmem:[%s9567_s22 + $0x1118] sm:$0xff] }
 0x354   : > { %7284 = vmatpush1.bf16.msra.mxu0 %v8410_v5  ;;  %7612 = vmatpush1.bf16.msra.mxu1 %v8412_v6  ;;  %v755_v5 = vld [vmem:[%s9567_s22 + $0xfd8] sm:$0xff]  ;;  %v8483_v18 = vcombine.high %v762_v9, %v766_v10  ;;  %v770_v23 = vld [vmem:[%s9567_s22 + $0x1050] sm:$0xff] }
 0x355   : > { %7285 = vmatprep.subr.bf16.mxu0 %v8419_v7  ;;  %7613 = vmatprep.subr.bf16.mxu1 %v8421_v53  ;;  %v759_v6 = vld [vmem:[%s9567_s22 + $0xff8] sm:$0xff]  ;;  %v8466_v7 = vcombine.low %v746_v58, %v750_v60  ;;  %v8468_v53 = vcombine.low %v747_v61, %v751_v62  ;;  %v774_v26 = vld [vmem:[%s9567_s22 + $0x1070] sm:$0xff] }
 0x356   : > { %v8477_v24 = vcombine.high %v755_v5, %v759_v6  ;;  %v8491_v22 = vcombine.high %v770_v23, %v774_v26  ;;  %v778_v32 = vld [vmem:[%s9567_s22 + $0x1090] sm:$0xff]  ;;  %v803_v61 = vld [vmem:[%s9567_s22 + $0x1158] sm:$0xff] }
 0x357   : > { %v782_v33 = vld [vmem:[%s9567_s22 + $0x10b0] sm:$0xff]  ;;  %v807_v62 = vld [vmem:[%s9567_s22 + $0x1178] sm:$0xff] }
 0x358   : > { %7286 = vmatpush1.bf16.msra.mxu0 %v8418_v11  ;;  %7614 = vmatpush1.bf16.msra.mxu1 %v8420_v13  ;;  %v763_v11 = vld [vmem:[%s9567_s22 + $0x1018] sm:$0xff]  ;;  %v8499_v38 = vcombine.high %v778_v32, %v782_v33  ;;  %v786_v40 = vld [vmem:[%s9567_s22 + $0x10d0] sm:$0xff] }
 0x359   : > { %7287 = vmatprep.subr.bf16.mxu0 %v8427_v14  ;;  %7615 = vmatprep.subr.bf16.mxu1 %v8429_v17  ;;  %v767_v13 = vld [vmem:[%s9567_s22 + $0x1038] sm:$0xff]  ;;  %v8474_v14 = vcombine.low %v754_v3, %v758_v4  ;;  %v8476_v17 = vcombine.low %v755_v5, %v759_v6  ;;  %v790_v41 = vld [vmem:[%s9567_s22 + $0x10f0] sm:$0xff] }
 0x35a   : > { %v8485_v21 = vcombine.high %v763_v11, %v767_v13  ;;  %v794_v48 = vld [vmem:[%s9567_s22 + $0x1110] sm:$0xff]  ;;  %v811_v5 = vld [vmem:[%s9567_s22 + $0x1198] sm:$0xff] }
 0x35b   : > { %v798_v50 = vld [vmem:[%s9567_s22 + $0x1130] sm:$0xff]  ;;  %v815_v6 = vld [vmem:[%s9567_s22 + $0x11b8] sm:$0xff] }
 0x35c   : > { %7288 = vmatpush1.bf16.msra.mxu0 %v8426_v27  ;;  %7616 = vmatpush1.bf16.msra.mxu1 %v8428_v28  ;;  %v771_v27 = vld [vmem:[%s9567_s22 + $0x1058] sm:$0xff]  ;;  %v802_v58 = vld [vmem:[%s9567_s22 + $0x1150] sm:$0xff] }
 0x35d   : > { %7289 = vmatprep.subr.bf16.mxu0 %v8435_v29  ;;  %7617 = vmatprep.subr.bf16.mxu1 %v8437_v30  ;;  %v775_v28 = vld [vmem:[%s9567_s22 + $0x1078] sm:$0xff]  ;;  %v8482_v29 = vcombine.low %v762_v9, %v766_v10  ;;  %v8484_v30 = vcombine.low %v763_v11, %v767_v13  ;;  %v806_v60 = vld [vmem:[%s9567_s22 + $0x1170] sm:$0xff] }
 0x35e   : > { %v8493_v31 = vcombine.high %v771_v27, %v775_v28  ;;  %v810_v3 = vld [vmem:[%s9567_s22 + $0x1190] sm:$0xff]  ;;  %v819_v11 = vld [vmem:[%s9567_s22 + $0x11d8] sm:$0xff] }
 0x35f   : > { %v814_v4 = vld [vmem:[%s9567_s22 + $0x11b0] sm:$0xff]  ;;  %v823_v13 = vld [vmem:[%s9567_s22 + $0x11f8] sm:$0xff] }
 0x360   : > { %7290 = vmatpush1.bf16.msra.mxu0 %v8434_v34  ;;  %7618 = vmatpush1.bf16.msra.mxu1 %v8436_v57  ;;  %v779_v34 = vld [vmem:[%s9567_s22 + $0x1098] sm:$0xff]  ;;  %v818_v9 = vld [vmem:[%s9567_s22 + $0x11d0] sm:$0xff] }
 0x361   : > { %7291 = vmatprep.subr.bf16.mxu0 %v8443_v35  ;;  %7619 = vmatprep.subr.bf16.mxu1 %v8445_v37  ;;  %v783_v57 = vld [vmem:[%s9567_s22 + $0x10b8] sm:$0xff]  ;;  %v8490_v35 = vcombine.low %v770_v23, %v774_v26  ;;  %v8492_v37 = vcombine.low %v771_v27, %v775_v28  ;;  %v822_v10 = vld [vmem:[%s9567_s22 + $0x11f0] sm:$0xff] }
 0x362   : > { %v8501_v15 = vcombine.high %v779_v34, %v783_v57  ;;  %v826_v23 = vld [vmem:[%s9567_s22 + $0x1210] sm:$0xff]  ;;  %v827_v27 = vld [vmem:[%s9567_s22 + $0x1218] sm:$0xff] }
 0x363   : > { %v830_v26 = vld [vmem:[%s9567_s22 + $0x1230] sm:$0xff]  ;;  %v831_v28 = vld [vmem:[%s9567_s22 + $0x1238] sm:$0xff] }
 0x364   : > { %7292 = vmatpush1.bf16.msra.mxu0 %v8442_v42  ;;  %7620 = vmatpush1.bf16.msra.mxu1 %v8444_v43  ;;  %v787_v42 = vld [vmem:[%s9567_s22 + $0x10d8] sm:$0xff] }
 0x365   : > { %7293 = vmatprep.subr.bf16.mxu0 %v8451_v44  ;;  %7621 = vmatprep.subr.bf16.mxu1 %v8453_v45  ;;  %v791_v43 = vld [vmem:[%s9567_s22 + $0x10f8] sm:$0xff]  ;;  %v8500_v44 = vcombine.low %v779_v34, %v783_v57  ;;  %v8507_v45 = vcombine.high %v786_v40, %v790_v41 }
 0x366   : > { %v8509_v47 = vcombine.high %v787_v42, %v791_v43  ;;  %v835_v34 = vld [vmem:[%s9567_s22 + $0x1258] sm:$0xff] }
 0x367   : > { %v839_v57 = vld [vmem:[%s9567_s22 + $0x1278] sm:$0xff] }
 0x368   : > { %7294 = vmatpush1.bf16.msra.mxu0 %v8450_v52  ;;  %7622 = vmatpush1.bf16.msra.mxu1 %v8452_v54  ;;  %v799_v52 = vld [vmem:[%s9567_s22 + $0x1138] sm:$0xff]  ;;  %v8506_v54 = vcombine.low %v786_v40, %v790_v41  ;;  %v842_v40 = vld [vmem:[%s9567_s22 + $0x1290] sm:$0xff] }
 0x369   : > { %7295 = vmatprep.subr.bf16.mxu0 %v8459_v56  ;;  %7623 = vmatprep.subr.bf16.mxu1 %v8461_v36  ;;  %v8515_v56 = vcombine.high %v794_v48, %v798_v50  ;;  %v8517_v36 = vcombine.high %v795_v51, %v799_v52  ;;  %v846_v41 = vld [vmem:[%s9567_s22 + $0x12b0] sm:$0xff] }
 0x36c   : > { %7296 = vmatpush1.bf16.msra.mxu0 %v8458_v12  ;;  %7624 = vmatpush1.bf16.msra.mxu1 %v8460_v63  ;;  %v8514_v12 = vcombine.low %v794_v48, %v798_v50  ;;  %v8516_v63 = vcombine.low %v795_v51, %v799_v52  ;;  %v850_v48 = vld [vmem:[%s9567_s22 + $0x12d0] sm:$0xff]  ;;  %v851_v51 = vld [vmem:[%s9567_s22 + $0x12d8] sm:$0xff] }
 0x36d   : > { %7297 = vmatprep.subr.bf16.mxu0 %v8467_v1  ;;  %7625 = vmatprep.subr.bf16.mxu1 %v8469_v25  ;;  %v8523_v1 = vcombine.high %v802_v58, %v806_v60  ;;  %v8525_v25 = vcombine.high %v803_v61, %v807_v62  ;;  %v854_v50 = vld [vmem:[%s9567_s22 + $0x12f0] sm:$0xff]  ;;  %v855_v52 = vld [vmem:[%s9567_s22 + $0x12f8] sm:$0xff] }
 0x370   : > { %7298 = vmatpush1.bf16.msra.mxu0 %v8466_v7  ;;  %7626 = vmatpush1.bf16.msra.mxu1 %v8468_v53  ;;  %v8522_v7 = vcombine.low %v802_v58, %v806_v60  ;;  %v8524_v53 = vcombine.low %v803_v61, %v807_v62  ;;  %v858_v58 = vld [vmem:[%s9567_s22 + $0x1310] sm:$0xff]  ;;  %v859_v61 = vld [vmem:[%s9567_s22 + $0x1318] sm:$0xff] }
 0x371   : > { %7299 = vmatprep.subr.bf16.mxu0 %v8475_v8  ;;  %7627 = vmatprep.subr.bf16.mxu1 %v8477_v24  ;;  %v8531_v8 = vcombine.high %v810_v3, %v814_v4  ;;  %v8533_v24 = vcombine.high %v811_v5, %v815_v6  ;;  %v862_v60 = vld [vmem:[%s9567_s22 + $0x1330] sm:$0xff]  ;;  %v863_v62 = vld [vmem:[%s9567_s22 + $0x1338] sm:$0xff] }
 0x374   : > { %7300 = vmatpush1.bf16.msra.mxu0 %v8474_v14  ;;  %7628 = vmatpush1.bf16.msra.mxu1 %v8476_v17  ;;  %v8530_v14 = vcombine.low %v810_v3, %v814_v4  ;;  %v8532_v17 = vcombine.low %v811_v5, %v815_v6  ;;  %v866_v3 = vld [vmem:[%s9567_s22 + $0x1350] sm:$0xff]  ;;  %v867_v5 = vld [vmem:[%s9567_s22 + $0x1358] sm:$0xff] }
 0x375   : > { %7310 = vmatprep.subr.bf16.mxu0 %v8483_v18  ;;  %7638 = vmatprep.subr.bf16.mxu1 %v8485_v21  ;;  %v8539_v18 = vcombine.high %v818_v9, %v822_v10  ;;  %v8541_v21 = vcombine.high %v819_v11, %v823_v13  ;;  %v870_v4 = vld [vmem:[%s9567_s22 + $0x1370] sm:$0xff]  ;;  %v871_v6 = vld [vmem:[%s9567_s22 + $0x1378] sm:$0xff] }
 0x377   : > { %7302 = vmatmul.mubr.bf16.vlgmr.msra.gmra.mrb[4].mxu0 %v9887_v55  ;;  %7630 = vmatmul.mubr.bf16.vlgmr.msra.gmra.mrb[4].mxu1 %v9887_v55  ;;  %v8498_v55 = vcombine.low %v778_v32, %v782_v33  ;;  %v834_v32 = vld [vmem:[%s9567_s22 + $0x1250] sm:$0xff] }
 0x378   : > { %7311 = vmatpush1.bf16.msra.mxu0 %v8482_v29  ;;  %7639 = vmatpush1.bf16.msra.mxu1 %v8484_v30  ;;  %v8538_v29 = vcombine.low %v818_v9, %v822_v10  ;;  %v8540_v30 = vcombine.low %v819_v11, %v823_v13  ;;  %v838_v33 = vld [vmem:[%s9567_s22 + $0x1270] sm:$0xff]  ;;  %v875_v11 = vld [vmem:[%s9567_s22 + $0x1398] sm:$0xff] }
 0x379   : > { %7312 = vmatprep.subr.bf16.mxu0 %v8491_v22  ;;  %7640 = vmatprep.subr.bf16.mxu1 %v8493_v31  ;;  %v8547_v22 = vcombine.high %v826_v23, %v830_v26  ;;  %v8549_v31 = vcombine.high %v827_v27, %v831_v28  ;;  %v874_v9 = vld [vmem:[%s9567_s22 + $0x1390] sm:$0xff]  ;;  %v879_v13 = vld [vmem:[%s9567_s22 + $0x13b8] sm:$0xff] }
 0x37a   : > { %7342 = vmatprep.mubr.bf16.mxu0 %v9897_v39  ;;  %7670 = vmatprep.mubr.bf16.mxu1 %v9897_v39  ;;  %v8508_v39 = vcombine.low %v787_v42, %v791_v43  ;;  %v843_v42 = vld [vmem:[%s9567_s22 + $0x1298] sm:$0xff]  ;;  %v878_v10 = vld [vmem:[%s9567_s22 + $0x13b0] sm:$0xff] }
 0x37b   : > { %v847_v43 = vld [vmem:[%s9567_s22 + $0x12b8] sm:$0xff] }
 0x37c   : > { %7313 = vmatpush1.bf16.msra.mxu0 %v8490_v35  ;;  %7641 = vmatpush1.bf16.msra.mxu1 %v8492_v37  ;;  %v8546_v35 = vcombine.low %v826_v23, %v830_v26  ;;  %v8548_v37 = vcombine.low %v827_v27, %v831_v28  ;;  %v882_v23 = vld [vmem:[%s9567_s22 + $0x13d0] sm:$0xff]  ;;  %v883_v27 = vld [vmem:[%s9567_s22 + $0x13d8] sm:$0xff] }
 0x37d   : > { %7314 = vmatprep.subr.bf16.mxu0 %v8499_v38  ;;  %7642 = vmatprep.subr.bf16.mxu1 %v8501_v15  ;;  %v8555_v38 = vcombine.high %v834_v32, %v838_v33  ;;  %v8557_v15 = vcombine.high %v835_v34, %v839_v57  ;;  %v886_v26 = vld [vmem:[%s9567_s22 + $0x13f0] sm:$0xff]  ;;  %v887_v28 = vld [vmem:[%s9567_s22 + $0x13f8] sm:$0xff] }
 0x380   : > { %7315 = vmatpush1.bf16.msra.mxu0 %v8498_v55  ;;  %7643 = vmatpush1.bf16.msra.mxu1 %v8500_v44  ;;  %v8554_v55 = vcombine.low %v834_v32, %v838_v33  ;;  %v8556_v44 = vcombine.low %v835_v34, %v839_v57  ;;  %v890_v32 = vld [vmem:[%s9567_s22 + $0x1410] sm:$0xff]  ;;  %v891_v34 = vld [vmem:[%s9567_s22 + $0x1418] sm:$0xff] }
 0x381   : > { %7316 = vmatprep.subr.bf16.mxu0 %v8507_v45  ;;  %7644 = vmatprep.subr.bf16.mxu1 %v8509_v47  ;;  %v8563_v45 = vcombine.high %v842_v40, %v846_v41  ;;  %v8565_v47 = vcombine.high %v843_v42, %v847_v43  ;;  %v894_v33 = vld [vmem:[%s9567_s22 + $0x1430] sm:$0xff]  ;;  %v895_v57 = vld [vmem:[%s9567_s22 + $0x1438] sm:$0xff] }
 0x384   : > { %7317 = vmatpush1.bf16.msra.mxu0 %v8506_v54  ;;  %7645 = vmatpush1.bf16.msra.mxu1 %v8508_v39  ;;  %v8562_v54 = vcombine.low %v842_v40, %v846_v41  ;;  %v8564_v39 = vcombine.low %v843_v42, %v847_v43  ;;  %v898_v40 = vld [vmem:[%s9567_s22 + $0x1450] sm:$0xff]  ;;  %v899_v42 = vld [vmem:[%s9567_s22 + $0x1458] sm:$0xff] }
 0x385   : > { %7318 = vmatprep.subr.bf16.mxu0 %v8515_v56  ;;  %7646 = vmatprep.subr.bf16.mxu1 %v8517_v36  ;;  %v8571_v56 = vcombine.high %v850_v48, %v854_v50  ;;  %v8573_v36 = vcombine.high %v851_v51, %v855_v52  ;;  %v902_v41 = vld [vmem:[%s9567_s22 + $0x1470] sm:$0xff]  ;;  %v903_v43 = vld [vmem:[%s9567_s22 + $0x1478] sm:$0xff] }
 0x388   : > { %7319 = vmatpush1.bf16.msra.mxu0 %v8514_v12  ;;  %7647 = vmatpush1.bf16.msra.mxu1 %v8516_v63  ;;  %v8570_v12 = vcombine.low %v850_v48, %v854_v50  ;;  %v8572_v63 = vcombine.low %v851_v51, %v855_v52  ;;  %v906_v48 = vld [vmem:[%s9567_s22 + $0x1490] sm:$0xff]  ;;  %v907_v51 = vld [vmem:[%s9567_s22 + $0x1498] sm:$0xff] }
 0x389   : > { %7320 = vmatprep.subr.bf16.mxu0 %v8523_v1  ;;  %7648 = vmatprep.subr.bf16.mxu1 %v8525_v25  ;;  %v8579_v1 = vcombine.high %v858_v58, %v862_v60  ;;  %v8581_v25 = vcombine.high %v859_v61, %v863_v62  ;;  %v910_v50 = vld [vmem:[%s9567_s22 + $0x14b0] sm:$0xff]  ;;  %v911_v52 = vld [vmem:[%s9567_s22 + $0x14b8] sm:$0xff] }
 0x38c   : > { %7321 = vmatpush1.bf16.msra.mxu0 %v8522_v7  ;;  %7649 = vmatpush1.bf16.msra.mxu1 %v8524_v53  ;;  %v8578_v7 = vcombine.low %v858_v58, %v862_v60  ;;  %v8580_v53 = vcombine.low %v859_v61, %v863_v62  ;;  %v914_v58 = vld [vmem:[%s9567_s22 + $0x14d0] sm:$0xff]  ;;  %v915_v61 = vld [vmem:[%s9567_s22 + $0x14d8] sm:$0xff] }
 0x38d   : > { %7322 = vmatprep.subr.bf16.mxu0 %v8531_v8  ;;  %7650 = vmatprep.subr.bf16.mxu1 %v8533_v24  ;;  %v8587_v8 = vcombine.high %v866_v3, %v870_v4  ;;  %v8589_v24 = vcombine.high %v867_v5, %v871_v6  ;;  %v918_v60 = vld [vmem:[%s9567_s22 + $0x14f0] sm:$0xff]  ;;  %v919_v62 = vld [vmem:[%s9567_s22 + $0x14f8] sm:$0xff] }
 0x390   : > { %7323 = vmatpush1.bf16.msra.mxu0 %v8530_v14  ;;  %7651 = vmatpush1.bf16.msra.mxu1 %v8532_v17  ;;  %v8586_v14 = vcombine.low %v866_v3, %v870_v4  ;;  %v8588_v17 = vcombine.low %v867_v5, %v871_v6  ;;  %v926_v3 = vld [vmem:[%s9567_s22 + $0x1530] sm:$0xff]  ;;  %v923_v4 = vld [vmem:[%s9567_s22 + $0x1518] sm:$0xff]  ;;  %v8634_v6 = vcombine.low %v914_v58, %v918_v60 }
 0x391   : > { %7324 = vmatprep.subr.bf16.mxu0 %v8539_v18  ;;  %7652 = vmatprep.subr.bf16.mxu1 %v8541_v21  ;;  %v8595_v18 = vcombine.high %v874_v9, %v878_v10  ;;  %v8597_v21 = vcombine.high %v875_v11, %v879_v13  ;;  %v927_v5 = vld [vmem:[%s9567_s22 + $0x1538] sm:$0xff] }
 0x394   : > { %7325 = vmatpush1.bf16.msra.mxu0 %v8538_v29  ;;  %7653 = vmatpush1.bf16.msra.mxu1 %v8540_v30  ;;  %v8594_v29 = vcombine.low %v874_v9, %v878_v10  ;;  %v8596_v30 = vcombine.low %v875_v11, %v879_v13  ;;  %v931_v9 = vld [vmem:[%s9567_s22 + $0x1558] sm:$0xff]  ;;  %v8644_v13 = vcombine.low %v923_v4, %v927_v5 }
 0x395   : > { %7326 = vmatprep.subr.bf16.mxu0 %v8547_v22  ;;  %7654 = vmatprep.subr.bf16.mxu1 %v8549_v31  ;;  %v8603_v22 = vcombine.high %v882_v23, %v886_v26  ;;  %v8605_v31 = vcombine.high %v883_v27, %v887_v28  ;;  %v935_v10 = vld [vmem:[%s9567_s22 + $0x1578] sm:$0xff] }
 0x398   : > { %7327 = vmatpush1.bf16.msra.mxu0 %v8546_v35  ;;  %7655 = vmatpush1.bf16.msra.mxu1 %v8548_v37  ;;  %v8602_v35 = vcombine.low %v882_v23, %v886_v26  ;;  %v8604_v37 = vcombine.low %v883_v27, %v887_v28  ;;  %v939_v23 = vld [vmem:[%s9567_s22 + $0x1598] sm:$0xff]  ;;  %v8652_v28 = vcombine.low %v931_v9, %v935_v10 }
 0x399   : > { %7328 = vmatprep.subr.bf16.mxu0 %v8555_v38  ;;  %7656 = vmatprep.subr.bf16.mxu1 %v8557_v15  ;;  %v8611_v38 = vcombine.high %v890_v32, %v894_v33  ;;  %v8613_v15 = vcombine.high %v891_v34, %v895_v57  ;;  %v943_v26 = vld [vmem:[%s9567_s22 + $0x15b8] sm:$0xff] }
 0x39c   : > { %7329 = vmatpush1.bf16.msra.mxu0 %v8554_v55  ;;  %7657 = vmatpush1.bf16.msra.mxu1 %v8556_v44  ;;  %v8610_v55 = vcombine.low %v890_v32, %v894_v33  ;;  %v8612_v44 = vcombine.low %v891_v34, %v895_v57  ;;  %v947_v32 = vld [vmem:[%s9567_s22 + $0x15d8] sm:$0xff]  ;;  %v8660_v57 = vcombine.low %v939_v23, %v943_v26 }
 0x39d   : > { %7330 = vmatprep.subr.bf16.mxu0 %v8563_v45  ;;  %7658 = vmatprep.subr.bf16.mxu1 %v8565_v47  ;;  %v8619_v45 = vcombine.high %v898_v40, %v902_v41  ;;  %v8621_v47 = vcombine.high %v899_v42, %v903_v43  ;;  %v951_v33 = vld [vmem:[%s9567_s22 + $0x15f8] sm:$0xff] }
 0x3a0   : > { %7331 = vmatpush1.bf16.msra.mxu0 %v8562_v54  ;;  %7659 = vmatpush1.bf16.msra.mxu1 %v8564_v39  ;;  %v8618_v54 = vcombine.low %v898_v40, %v902_v41  ;;  %v8620_v39 = vcombine.low %v899_v42, %v903_v43  ;;  %v955_v40 = vld [vmem:[%s9567_s22 + $0x1618] sm:$0xff]  ;;  %v8668_v43 = vcombine.low %v947_v32, %v951_v33 }
 0x3a1   : > { %7332 = vmatprep.subr.bf16.mxu0 %v8571_v56  ;;  %7660 = vmatprep.subr.bf16.mxu1 %v8573_v36  ;;  %v8627_v56 = vcombine.high %v906_v48, %v910_v50  ;;  %v8629_v36 = vcombine.high %v907_v51, %v911_v52  ;;  %v959_v41 = vld [vmem:[%s9567_s22 + $0x1638] sm:$0xff] }
 0x3a4   : > { %7333 = vmatpush1.bf16.msra.mxu0 %v8570_v12  ;;  %7661 = vmatpush1.bf16.msra.mxu1 %v8572_v63  ;;  %v8628_v12 = vcombine.low %v907_v51, %v911_v52  ;;  %v8635_v63 = vcombine.high %v914_v58, %v918_v60  ;;  %v8676_v52 = vcombine.low %v955_v40, %v959_v41  ;;  %v971_v58 = vld [vmem:[%s9567_s22 + $0x1698] sm:$0xff] }
 0x3a5   : > { %7334 = vmatprep.subr.bf16.mxu0 %v8579_v1  ;;  %7662 = vmatprep.subr.bf16.mxu1 %v8581_v25  ;;  %v8637_v1 = vcombine.high %v915_v61, %v919_v62  ;;  %v922_v25 = vld [vmem:[%s9567_s22 + $0x1510] sm:$0xff]  ;;  %v975_v60 = vld [vmem:[%s9567_s22 + $0x16b8] sm:$0xff] }
 0x3a6   : > { %v8642_v11 = vcombine.low %v922_v25, %v926_v3 }
 0x3a8   : > { %7335 = vmatpush1.bf16.msra.mxu0 %v8578_v7  ;;  %7663 = vmatpush1.bf16.msra.mxu1 %v8580_v53  ;;  %v8643_v7 = vcombine.high %v922_v25, %v926_v3  ;;  %v8645_v53 = vcombine.high %v923_v4, %v927_v5  ;;  %v979_v25 = vld [vmem:[%s9567_s22 + $0x16d8] sm:$0xff]  ;;  %v8692_v5 = vcombine.low %v971_v58, %v975_v60 }
 0x3a9   : > { %7336 = vmatprep.subr.bf16.mxu0 %v8587_v8  ;;  %7664 = vmatprep.subr.bf16.mxu1 %v8589_v24  ;;  %v930_v8 = vld [vmem:[%s9567_s22 + $0x1550] sm:$0xff]  ;;  %v983_v3 = vld [vmem:[%s9567_s22 + $0x16f8] sm:$0xff] }
 0x3aa   : > { %v934_v24 = vld [vmem:[%s9567_s22 + $0x1570] sm:$0xff] }
 0x3ab   : > { %v8650_v27 = vcombine.low %v930_v8, %v934_v24 }
 0x3ac   : > { %7337 = vmatpush1.bf16.msra.mxu0 %v8586_v14  ;;  %7665 = vmatpush1.bf16.msra.mxu1 %v8588_v17  ;;  %v8651_v14 = vcombine.high %v930_v8, %v934_v24  ;;  %v8653_v17 = vcombine.high %v931_v9, %v935_v10  ;;  %v987_v8 = vld [vmem:[%s9567_s22 + $0x1718] sm:$0xff]  ;;  %v8700_v10 = vcombine.low %v979_v25, %v983_v3 }
 0x3ad   : > { %7338 = vmatprep.subr.bf16.mxu0 %v8595_v18  ;;  %7666 = vmatprep.subr.bf16.mxu1 %v8597_v21  ;;  %v938_v18 = vld [vmem:[%s9567_s22 + $0x1590] sm:$0xff]  ;;  %v991_v24 = vld [vmem:[%s9567_s22 + $0x1738] sm:$0xff] }
 0x3ae   : > { %v942_v21 = vld [vmem:[%s9567_s22 + $0x15b0] sm:$0xff] }
 0x3af   : > { %v8658_v34 = vcombine.low %v938_v18, %v942_v21 }
 0x3b0   : > { %7339 = vmatpush1.bf16.msra.mxu0 %v8594_v29  ;;  %7667 = vmatpush1.bf16.msra.mxu1 %v8596_v30  ;;  %v8659_v29 = vcombine.high %v938_v18, %v942_v21  ;;  %v8661_v30 = vcombine.high %v939_v23, %v943_v26  ;;  %v995_v18 = vld [vmem:[%s9567_s22 + $0x1758] sm:$0xff]  ;;  %v8708_v26 = vcombine.low %v987_v8, %v991_v24 }
 0x3b1   : > { %7340 = vmatprep.subr.bf16.mxu0 %v8603_v22  ;;  %7668 = vmatprep.subr.bf16.mxu1 %v8605_v31  ;;  %v946_v22 = vld [vmem:[%s9567_s22 + $0x15d0] sm:$0xff]  ;;  %v999_v21 = vld [vmem:[%s9567_s22 + $0x1778] sm:$0xff] }
 0x3b2   : > { %v950_v31 = vld [vmem:[%s9567_s22 + $0x15f0] sm:$0xff] }
 0x3b3   : > { %v8666_v42 = vcombine.low %v946_v22, %v950_v31 }
 0x3b4   : > { %7341 = vmatpush1.bf16.msra.mxu0 %v8602_v35  ;;  %7669 = vmatpush1.bf16.msra.mxu1 %v8604_v37  ;;  %v8667_v35 = vcombine.high %v946_v22, %v950_v31  ;;  %v8669_v37 = vcombine.high %v947_v32, %v951_v33  ;;  %v1003_v22 = vld [vmem:[%s9567_s22 + $0x1798] sm:$0xff]  ;;  %v8716_v33 = vcombine.low %v995_v18, %v999_v21 }
 0x3b5   : > { %7351 = vmatprep.subr.bf16.mxu0 %v8611_v38  ;;  %7679 = vmatprep.subr.bf16.mxu1 %v8613_v15  ;;  %v954_v38 = vld [vmem:[%s9567_s22 + $0x1610] sm:$0xff]  ;;  %v1007_v31 = vld [vmem:[%s9567_s22 + $0x17b8] sm:$0xff] }
 0x3b6   : > { %v958_v15 = vld [vmem:[%s9567_s22 + $0x1630] sm:$0xff] }
 0x3b7   : > { %7343 = vmatmul.mubr.bf16.vlgmr.msra.gmra.mrb[4].mxu0 %v9965_v16  ;;  %7671 = vmatmul.mubr.bf16.vlgmr.msra.gmra.mrb[4].mxu1 %v9965_v16  ;;  %v8626_v16 = vcombine.low %v906_v48, %v910_v50  ;;  %v963_v48 = vld [vmem:[%s9567_s22 + $0x1658] sm:$0xff]  ;;  %v8674_v51 = vcombine.low %v954_v38, %v958_v15 }
 0x3b8   : > { %7352 = vmatpush1.bf16.msra.mxu0 %v8610_v55  ;;  %7680 = vmatpush1.bf16.msra.mxu1 %v8612_v44  ;;  %v8675_v55 = vcombine.high %v954_v38, %v958_v15  ;;  %v8677_v44 = vcombine.high %v955_v40, %v959_v41  ;;  %v967_v50 = vld [vmem:[%s9567_s22 + $0x1678] sm:$0xff]  ;;  %v8724_v41 = vcombine.low %v1003_v22, %v1007_v31 }
 0x3b9   : > { %7353 = vmatprep.subr.bf16.mxu0 %v8619_v45  ;;  %7681 = vmatprep.subr.bf16.mxu1 %v8621_v47  ;;  %v962_v45 = vld [vmem:[%s9567_s22 + $0x1650] sm:$0xff]  ;;  %v1011_v38 = vld [vmem:[%s9567_s22 + $0x17d8] sm:$0xff] }
 0x3ba   : > { %7383 = vmatprep.mubr.bf16.mxu0 %v9975_v59  ;;  %7711 = vmatprep.mubr.bf16.mxu1 %v9975_v59  ;;  %v8636_v59 = vcombine.low %v915_v61, %v919_v62  ;;  %v966_v47 = vld [vmem:[%s9567_s22 + $0x1670] sm:$0xff]  ;;  %v8684_v62 = vcombine.low %v963_v48, %v967_v50  ;;  %v1015_v15 = vld [vmem:[%s9567_s22 + $0x17f8] sm:$0xff] }
 0x3bb   : > { %v8682_v61 = vcombine.low %v962_v45, %v966_v47 }
 0x3bc   : > { %7354 = vmatpush1.bf16.msra.mxu0 %v8618_v54  ;;  %7682 = vmatpush1.bf16.msra.mxu1 %v8620_v39  ;;  %v8683_v54 = vcombine.high %v962_v45, %v966_v47  ;;  %v8685_v39 = vcombine.high %v963_v48, %v967_v50  ;;  %v1019_v45 = vld [vmem:[%s9567_s22 + $0x1818] sm:$0xff]  ;;  %v8732_v50 = vcombine.low %v1011_v38, %v1015_v15 }
 0x3bd   : > { %7355 = vmatprep.subr.bf16.mxu0 %v8627_v56  ;;  %7683 = vmatprep.subr.bf16.mxu1 %v8629_v36  ;;  %v970_v56 = vld [vmem:[%s9567_s22 + $0x1690] sm:$0xff]  ;;  %v1023_v47 = vld [vmem:[%s9567_s22 + $0x1838] sm:$0xff] }
 0x3be   : > { %v974_v36 = vld [vmem:[%s9567_s22 + $0x16b0] sm:$0xff] }
 0x3bf   : > { %v8690_v4 = vcombine.low %v970_v56, %v974_v36 }
 0x3c0   : > { %7356 = vmatpush1.bf16.msra.mxu0 %v8626_v16  ;;  %7684 = vmatpush1.bf16.msra.mxu1 %v8628_v12  ;;  %v8691_v16 = vcombine.high %v970_v56, %v974_v36  ;;  %v8693_v12 = vcombine.high %v971_v58, %v975_v60  ;;  %v1027_v56 = vld [vmem:[%s9567_s22 + $0x1858] sm:$0xff]  ;;  %v8740_v60 = vcombine.low %v1019_v45, %v1023_v47 }
 0x3c1   : > { %7357 = vmatprep.subr.bf16.mxu0 %v8635_v63  ;;  %7685 = vmatprep.subr.bf16.mxu1 %v8637_v1  ;;  %v978_v63 = vld [vmem:[%s9567_s22 + $0x16d0] sm:$0xff]  ;;  %v1031_v36 = vld [vmem:[%s9567_s22 + $0x1878] sm:$0xff] }
 0x3c2   : > { %v982_v1 = vld [vmem:[%s9567_s22 + $0x16f0] sm:$0xff] }
 0x3c3   : > { %v8698_v9 = vcombine.low %v978_v63, %v982_v1 }
 0x3c4   : > { %7358 = vmatpush1.bf16.msra.mxu0 %v8634_v6  ;;  %7686 = vmatpush1.bf16.msra.mxu1 %v8636_v59  ;;  %v8699_v6 = vcombine.high %v978_v63, %v982_v1  ;;  %v8701_v59 = vcombine.high %v979_v25, %v983_v3  ;;  %v1035_v63 = vld [vmem:[%s9567_s22 + $0x1898] sm:$0xff]  ;;  %v8748_v3 = vcombine.low %v1027_v56, %v1031_v36 }
 0x3c5   : > { %7359 = vmatprep.subr.bf16.mxu0 %v8643_v7  ;;  %7687 = vmatprep.subr.bf16.mxu1 %v8645_v53  ;;  %v986_v7 = vld [vmem:[%s9567_s22 + $0x1710] sm:$0xff]  ;;  %v1039_v1 = vld [vmem:[%s9567_s22 + $0x18b8] sm:$0xff] }
 0x3c6   : > { %v990_v53 = vld [vmem:[%s9567_s22 + $0x1730] sm:$0xff] }
 0x3c7   : > { %v8706_v23 = vcombine.low %v986_v7, %v990_v53 }
 0x3c8   : > { %7360 = vmatpush1.bf16.msra.mxu0 %v8642_v11  ;;  %7688 = vmatpush1.bf16.msra.mxu1 %v8644_v13  ;;  %v8707_v11 = vcombine.high %v986_v7, %v990_v53  ;;  %v8709_v13 = vcombine.high %v987_v8, %v991_v24  ;;  %v1043_v7 = vld [vmem:[%s9567_s22 + $0x18d8] sm:$0xff]  ;;  %v8756_v8 = vcombine.low %v1035_v63, %v1039_v1 }
 0x3c9   : > { %7361 = vmatprep.subr.bf16.mxu0 %v8651_v14  ;;  %7689 = vmatprep.subr.bf16.mxu1 %v8653_v17  ;;  %v994_v14 = vld [vmem:[%s9567_s22 + $0x1750] sm:$0xff]  ;;  %v1047_v53 = vld [vmem:[%s9567_s22 + $0x18f8] sm:$0xff] }
 0x3ca   : > { %v998_v17 = vld [vmem:[%s9567_s22 + $0x1770] sm:$0xff] }
 0x3cb   : > { %v8714_v32 = vcombine.low %v994_v14, %v998_v17 }
 0x3cc   : > { %7362 = vmatpush1.bf16.msra.mxu0 %v8650_v27  ;;  %7690 = vmatpush1.bf16.msra.mxu1 %v8652_v28  ;;  %v8715_v27 = vcombine.high %v994_v14, %v998_v17  ;;  %v8717_v28 = vcombine.high %v995_v18, %v999_v21  ;;  %v1055_v14 = vld [vmem:[%s9567_s22 + $0x1938] sm:$0xff] }
 0x3cd   : > { %7363 = vmatprep.subr.bf16.mxu0 %v8659_v29  ;;  %7691 = vmatprep.subr.bf16.mxu1 %v8661_v30  ;;  %v1002_v29 = vld [vmem:[%s9567_s22 + $0x1790] sm:$0xff] }
 0x3ce   : > { %v1006_v30 = vld [vmem:[%s9567_s22 + $0x17b0] sm:$0xff] }
 0x3cf   : > { %v8722_v40 = vcombine.low %v1002_v29, %v1006_v30 }
 0x3d0   : > { %7364 = vmatpush1.bf16.msra.mxu0 %v8658_v34  ;;  %7692 = vmatpush1.bf16.msra.mxu1 %v8660_v57  ;;  %v8723_v34 = vcombine.high %v1002_v29, %v1006_v30  ;;  %v8725_v57 = vcombine.high %v1003_v22, %v1007_v31 }
 0x3d1   : > { %7365 = vmatprep.subr.bf16.mxu0 %v8667_v35  ;;  %7693 = vmatprep.subr.bf16.mxu1 %v8669_v37  ;;  %v1010_v35 = vld [vmem:[%s9567_s22 + $0x17d0] sm:$0xff] }
 0x3d2   : > { %v1014_v37 = vld [vmem:[%s9567_s22 + $0x17f0] sm:$0xff] }
 0x3d3   : > { %v8730_v48 = vcombine.low %v1010_v35, %v1014_v37 }
 0x3d4   : > { %7366 = vmatpush1.bf16.msra.mxu0 %v8666_v42  ;;  %7694 = vmatpush1.bf16.msra.mxu1 %v8668_v43  ;;  %v8731_v42 = vcombine.high %v1010_v35, %v1014_v37  ;;  %v8733_v43 = vcombine.high %v1011_v38, %v1015_v15 }
 0x3d5   : > { %7367 = vmatprep.subr.bf16.mxu0 %v8675_v55  ;;  %7695 = vmatprep.subr.bf16.mxu1 %v8677_v44  ;;  %v1018_v55 = vld [vmem:[%s9567_s22 + $0x1810] sm:$0xff] }
 0x3d6   : > { %v1022_v44 = vld [vmem:[%s9567_s22 + $0x1830] sm:$0xff] }
 0x3d7   : > { %v8738_v58 = vcombine.low %v1018_v55, %v1022_v44 }
 0x3d8   : > { %7368 = vmatpush1.bf16.msra.mxu0 %v8674_v51  ;;  %7696 = vmatpush1.bf16.msra.mxu1 %v8676_v52  ;;  %v8739_v51 = vcombine.high %v1018_v55, %v1022_v44  ;;  %v8741_v52 = vcombine.high %v1019_v45, %v1023_v47 }
 0x3d9   : > { %7369 = vmatprep.subr.bf16.mxu0 %v8683_v54  ;;  %7697 = vmatprep.subr.bf16.mxu1 %v8685_v39  ;;  %v1026_v54 = vld [vmem:[%s9567_s22 + $0x1850] sm:$0xff] }
 0x3da   : > { %v1030_v39 = vld [vmem:[%s9567_s22 + $0x1870] sm:$0xff] }
 0x3db   : > { %v8746_v25 = vcombine.low %v1026_v54, %v1030_v39 }
 0x3dc   : > { %7370 = vmatpush1.bf16.msra.mxu0 %v8682_v61  ;;  %7698 = vmatpush1.bf16.msra.mxu1 %v8684_v62  ;;  %v8747_v61 = vcombine.high %v1026_v54, %v1030_v39  ;;  %v8749_v62 = vcombine.high %v1027_v56, %v1031_v36 }
 0x3dd   : > { %7371 = vmatprep.subr.bf16.mxu0 %v8691_v16  ;;  %7699 = vmatprep.subr.bf16.mxu1 %v8693_v12  ;;  %v1034_v16 = vld [vmem:[%s9567_s22 + $0x1890] sm:$0xff] }
 0x3de   : > { %v1038_v12 = vld [vmem:[%s9567_s22 + $0x18b0] sm:$0xff] }
 0x3e0   : > { %7372 = vmatpush1.bf16.msra.mxu0 %v8690_v4  ;;  %7700 = vmatpush1.bf16.msra.mxu1 %v8692_v5  ;;  %v8755_v4 = vcombine.high %v1034_v16, %v1038_v12  ;;  %v8757_v5 = vcombine.high %v1035_v63, %v1039_v1 }
 0x3e1   : > { %7373 = vmatprep.subr.bf16.mxu0 %v8699_v6  ;;  %7701 = vmatprep.subr.bf16.mxu1 %v8701_v59  ;;  %v1042_v6 = vld [vmem:[%s9567_s22 + $0x18d0] sm:$0xff] }
 0x3e2   : > { %v1046_v59 = vld [vmem:[%s9567_s22 + $0x18f0] sm:$0xff] }
 0x3e3   : > { %v8763_v24 = vcombine.high %v1042_v6, %v1046_v59  ;;  %v8762_v17 = vcombine.low %v1042_v6, %v1046_v59 }
 0x3e4   : > { %7374 = vmatpush1.bf16.msra.mxu0 %v8698_v9  ;;  %7702 = vmatpush1.bf16.msra.mxu1 %v8700_v10  ;;  %v8765_v9 = vcombine.high %v1043_v7, %v1047_v53  ;;  %v1050_v10 = vld [vmem:[%s9567_s22 + $0x1910] sm:$0xff] }
 0x3e5   : > { %7375 = vmatprep.subr.bf16.mxu0 %v8707_v11  ;;  %7703 = vmatprep.subr.bf16.mxu1 %v8709_v13  ;;  %v1054_v11 = vld [vmem:[%s9567_s22 + $0x1930] sm:$0xff]  ;;  %v1051_v13 = vld [vmem:[%s9567_s22 + $0x1918] sm:$0xff] }
 0x3e6   : > { %v8771_v18 = vcombine.high %v1050_v10, %v1054_v11  ;;  %v8773_v21 = vcombine.high %v1051_v13, %v1055_v14  ;;  %v8770_v29 = vcombine.low %v1050_v10, %v1054_v11  ;;  %v8772_v30 = vcombine.low %v1051_v13, %v1055_v14 }
 0x3e8   : > { %7376 = vmatpush1.bf16.msra.mxu0 %v8706_v23  ;;  %7704 = vmatpush1.bf16.msra.mxu1 %v8708_v26  ;;  %v1058_v23 = vld [vmem:[%s9567_s22 + $0x1950] sm:$0xff] }
 0x3e9   : > { %7377 = vmatprep.subr.bf16.mxu0 %v8715_v27  ;;  %7705 = vmatprep.subr.bf16.mxu1 %v8717_v28  ;;  %v1062_v26 = vld [vmem:[%s9567_s22 + $0x1970] sm:$0xff]  ;;  %v1059_v27 = vld [vmem:[%s9567_s22 + $0x1958] sm:$0xff] }
 0x3ea   : > { %v1063_v28 = vld [vmem:[%s9567_s22 + $0x1978] sm:$0xff]  ;;  %v8779_v22 = vcombine.high %v1058_v23, %v1062_v26  ;;  %v8778_v35 = vcombine.low %v1058_v23, %v1062_v26 }
 0x3eb   : > { %v8781_v31 = vcombine.high %v1059_v27, %v1063_v28  ;;  %v8780_v37 = vcombine.low %v1059_v27, %v1063_v28 }
 0x3ec   : > { %7378 = vmatpush1.bf16.msra.mxu0 %v8714_v32  ;;  %7706 = vmatpush1.bf16.msra.mxu1 %v8716_v33  ;;  %v1066_v32 = vld [vmem:[%s9567_s22 + $0x1990] sm:$0xff] }
 0x3ed   : > { %7379 = vmatprep.subr.bf16.mxu0 %v8723_v34  ;;  %7707 = vmatprep.subr.bf16.mxu1 %v8725_v57  ;;  %v1070_v33 = vld [vmem:[%s9567_s22 + $0x19b0] sm:$0xff]  ;;  %v1067_v34 = vld [vmem:[%s9567_s22 + $0x1998] sm:$0xff] }
 0x3ee   : > { %v1071_v57 = vld [vmem:[%s9567_s22 + $0x19b8] sm:$0xff]  ;;  %v8787_v38 = vcombine.high %v1066_v32, %v1070_v33  ;;  %v8786_v55 = vcombine.low %v1066_v32, %v1070_v33 }
 0x3ef   : > { %v8789_v15 = vcombine.high %v1067_v34, %v1071_v57  ;;  %v8788_v44 = vcombine.low %v1067_v34, %v1071_v57 }
 0x3f0   : > { %7380 = vmatpush1.bf16.msra.mxu0 %v8722_v40  ;;  %7708 = vmatpush1.bf16.msra.mxu1 %v8724_v41  ;;  %v1074_v40 = vld [vmem:[%s9567_s22 + $0x19d0] sm:$0xff] }
 0x3f1   : > { %7381 = vmatprep.subr.bf16.mxu0 %v8731_v42  ;;  %7709 = vmatprep.subr.bf16.mxu1 %v8733_v43  ;;  %v1078_v41 = vld [vmem:[%s9567_s22 + $0x19f0] sm:$0xff]  ;;  %v1075_v42 = vld [vmem:[%s9567_s22 + $0x19d8] sm:$0xff] }
 0x3f2   : > { %v1079_v43 = vld [vmem:[%s9567_s22 + $0x19f8] sm:$0xff]  ;;  %v8795_v45 = vcombine.high %v1074_v40, %v1078_v41  ;;  %v8794_v54 = vcombine.low %v1074_v40, %v1078_v41 }
 0x3f3   : > { %v8797_v47 = vcombine.high %v1075_v42, %v1079_v43  ;;  %v8796_v39 = vcombine.low %v1075_v42, %v1079_v43 }
 0x3f4   : > { %7382 = vmatpush1.bf16.msra.mxu0 %v8730_v48  ;;  %7710 = vmatpush1.bf16.msra.mxu1 %v8732_v50  ;;  %v1082_v48 = vld [vmem:[%s9567_s22 + $0x1a10] sm:$0xff] }
 0x3f5   : > { %7392 = vmatprep.subr.bf16.mxu0 %v8739_v51  ;;  %7720 = vmatprep.subr.bf16.mxu1 %v8741_v52  ;;  %v1086_v50 = vld [vmem:[%s9567_s22 + $0x1a30] sm:$0xff]  ;;  %v1083_v51 = vld [vmem:[%s9567_s22 + $0x1a18] sm:$0xff] }
 0x3f6   : > { %v1087_v52 = vld [vmem:[%s9567_s22 + $0x1a38] sm:$0xff]  ;;  %v8803_v56 = vcombine.high %v1082_v48, %v1086_v50 }
 0x3f7   : > { %7384 = vmatmul.mubr.bf16.vlgmr.msra.gmra.mrb[4].mxu0 %v10043_v46  ;;  %7712 = vmatmul.mubr.bf16.vlgmr.msra.gmra.mrb[4].mxu1 %v10043_v46  ;;  %v8754_v46 = vcombine.low %v1034_v16, %v1038_v12  ;;  %v8805_v36 = vcombine.high %v1083_v51, %v1087_v52  ;;  %v8802_v16 = vcombine.low %v1082_v48, %v1086_v50 }
 0x3f8   : > { %7393 = vmatpush1.bf16.msra.mxu0 %v8738_v58  ;;  %7721 = vmatpush1.bf16.msra.mxu1 %v8740_v60  ;;  %v1090_v58 = vld [vmem:[%s9567_s22 + $0x1a50] sm:$0xff]  ;;  %v8804_v12 = vcombine.low %v1083_v51, %v1087_v52 }
 0x3f9   : > { %7394 = vmatprep.subr.bf16.mxu0 %v8747_v61  ;;  %7722 = vmatprep.subr.bf16.mxu1 %v8749_v62  ;;  %v1094_v60 = vld [vmem:[%s9567_s22 + $0x1a70] sm:$0xff]  ;;  %v1091_v61 = vld [vmem:[%s9567_s22 + $0x1a58] sm:$0xff] }
 0x3fa   : > { %7424 = vmatprep.mubr.bf16.mxu0 %v10053_v19  ;;  %7752 = vmatprep.mubr.bf16.mxu1 %v10053_v19  ;;  %v8764_v19 = vcombine.low %v1043_v7, %v1047_v53  ;;  %v1095_v62 = vld [vmem:[%s9567_s22 + $0x1a78] sm:$0xff]  ;;  %v8811_v63 = vcombine.high %v1090_v58, %v1094_v60  ;;  %v8810_v6 = vcombine.low %v1090_v58, %v1094_v60 }
 0x3fb   : > { %v8813_v1 = vcombine.high %v1091_v61, %v1095_v62  ;;  %v8812_v59 = vcombine.low %v1091_v61, %v1095_v62 }
 0x3fc   : > { %7395 = vmatpush1.bf16.msra.mxu0 %v8746_v25  ;;  %7723 = vmatpush1.bf16.msra.mxu1 %v8748_v3  ;;  %v1098_v25 = vld [vmem:[%s9567_s22 + $0x1a90] sm:$0xff] }
 0x3fd   : > { %7396 = vmatprep.subr.bf16.mxu0 %v8755_v4  ;;  %7724 = vmatprep.subr.bf16.mxu1 %v8757_v5  ;;  %v1102_v3 = vld [vmem:[%s9567_s22 + $0x1ab0] sm:$0xff]  ;;  %v1099_v4 = vld [vmem:[%s9567_s22 + $0x1a98] sm:$0xff] }
 0x3fe   : > { %v1103_v5 = vld [vmem:[%s9567_s22 + $0x1ab8] sm:$0xff]  ;;  %v8819_v7 = vcombine.high %v1098_v25, %v1102_v3  ;;  %v8818_v10 = vcombine.low %v1098_v25, %v1102_v3 }
 0x3ff   : > { %v8821_v53 = vcombine.high %v1099_v4, %v1103_v5  ;;  %v8820_v11 = vcombine.low %v1099_v4, %v1103_v5 }
 0x400   : > { %7397 = vmatpush1.bf16.msra.mxu0 %v8754_v46  ;;  %7725 = vmatpush1.bf16.msra.mxu1 %v8756_v8  ;;  %v1106_v46 = vld [vmem:[%s9567_s22 + $0x1ad0] sm:$0xff] }
 0x401   : > { %7398 = vmatprep.subr.bf16.mxu0 %v8763_v24  ;;  %7726 = vmatprep.subr.bf16.mxu1 %v8765_v9  ;;  %v1110_v8 = vld [vmem:[%s9567_s22 + $0x1af0] sm:$0xff]  ;;  %v1107_v24 = vld [vmem:[%s9567_s22 + $0x1ad8] sm:$0xff] }
 0x402   : > { %v1111_v9 = vld [vmem:[%s9567_s22 + $0x1af8] sm:$0xff]  ;;  %v8827_v13 = vcombine.high %v1106_v46, %v1110_v8  ;;  %v8826_v23 = vcombine.low %v1106_v46, %v1110_v8 }
 0x403   : > { %v8829_v14 = vcombine.high %v1107_v24, %v1111_v9  ;;  %v8828_v26 = vcombine.low %v1107_v24, %v1111_v9 }
 0x404   : > { %7399 = vmatpush1.bf16.msra.mxu0 %v8762_v17  ;;  %7727 = vmatpush1.bf16.msra.mxu1 %v8764_v19  ;;  %v1114_v17 = vld [vmem:[%s9567_s22 + $0x1b10] sm:$0xff] }
 0x405   : > { %7400 = vmatprep.subr.bf16.mxu0 %v8771_v18  ;;  %7728 = vmatprep.subr.bf16.mxu1 %v8773_v21  ;;  %v1118_v19 = vld [vmem:[%s9567_s22 + $0x1b30] sm:$0xff]  ;;  %v1115_v18 = vld [vmem:[%s9567_s22 + $0x1b18] sm:$0xff] }
 0x406   : > { %v1119_v21 = vld [vmem:[%s9567_s22 + $0x1b38] sm:$0xff]  ;;  %v8835_v27 = vcombine.high %v1114_v17, %v1118_v19  ;;  %v8834_v32 = vcombine.low %v1114_v17, %v1118_v19 }
 0x407   : > { %v8837_v28 = vcombine.high %v1115_v18, %v1119_v21  ;;  %v8836_v33 = vcombine.low %v1115_v18, %v1119_v21  ;;  %v1178_v21 = vld [vmem:[%s9567_s22 + $0x1d10] sm:$0xff] }
 0x408   : > { %7401 = vmatpush1.bf16.msra.mxu0 %v8770_v29  ;;  %7729 = vmatpush1.bf16.msra.mxu1 %v8772_v30  ;;  %v1122_v29 = vld [vmem:[%s9567_s22 + $0x1b50] sm:$0xff] }
 0x409   : > { %7402 = vmatprep.subr.bf16.mxu0 %v8779_v22  ;;  %7730 = vmatprep.subr.bf16.mxu1 %v8781_v31  ;;  %v1126_v30 = vld [vmem:[%s9567_s22 + $0x1b70] sm:$0xff]  ;;  %v1123_v22 = vld [vmem:[%s9567_s22 + $0x1b58] sm:$0xff] }
 0x40a   : > { %v1127_v31 = vld [vmem:[%s9567_s22 + $0x1b78] sm:$0xff]  ;;  %v8843_v34 = vcombine.high %v1122_v29, %v1126_v30  ;;  %v8842_v40 = vcombine.low %v1122_v29, %v1126_v30 }
 0x40b   : > { %v8845_v57 = vcombine.high %v1123_v22, %v1127_v31  ;;  %v8844_v41 = vcombine.low %v1123_v22, %v1127_v31  ;;  %v1186_v22 = vld [vmem:[%s9567_s22 + $0x1d50] sm:$0xff] }
 0x40c   : > { %7403 = vmatpush1.bf16.msra.mxu0 %v8778_v35  ;;  %7731 = vmatpush1.bf16.msra.mxu1 %v8780_v37  ;;  %v1130_v35 = vld [vmem:[%s9567_s22 + $0x1b90] sm:$0xff] }
 0x40d   : > { %7404 = vmatprep.subr.bf16.mxu0 %v8787_v38  ;;  %7732 = vmatprep.subr.bf16.mxu1 %v8789_v15  ;;  %v1134_v37 = vld [vmem:[%s9567_s22 + $0x1bb0] sm:$0xff]  ;;  %v1131_v38 = vld [vmem:[%s9567_s22 + $0x1b98] sm:$0xff] }
 0x40e   : > { %v1135_v15 = vld [vmem:[%s9567_s22 + $0x1bb8] sm:$0xff]  ;;  %v8851_v42 = vcombine.high %v1130_v35, %v1134_v37  ;;  %v8850_v48 = vcombine.low %v1130_v35, %v1134_v37  ;;  %v1190_v31 = vld [vmem:[%s9567_s22 + $0x1d70] sm:$0xff] }
 0x40f   : > { %v8853_v43 = vcombine.high %v1131_v38, %v1135_v15  ;;  %v8852_v50 = vcombine.low %v1131_v38, %v1135_v15  ;;  %v8907_v35 = vcombine.high %v1186_v22, %v1190_v31  ;;  %v1194_v38 = vld [vmem:[%s9567_s22 + $0x1d90] sm:$0xff] }
 0x410   : > { %7405 = vmatpush1.bf16.msra.mxu0 %v8786_v55  ;;  %7733 = vmatpush1.bf16.msra.mxu1 %v8788_v44  ;;  %v1138_v55 = vld [vmem:[%s9567_s22 + $0x1bd0] sm:$0xff] }
 0x411   : > { %7406 = vmatprep.subr.bf16.mxu0 %v8795_v45  ;;  %7734 = vmatprep.subr.bf16.mxu1 %v8797_v47  ;;  %v1142_v44 = vld [vmem:[%s9567_s22 + $0x1bf0] sm:$0xff]  ;;  %v1139_v45 = vld [vmem:[%s9567_s22 + $0x1bd8] sm:$0xff] }
 0x412   : > { %v1143_v47 = vld [vmem:[%s9567_s22 + $0x1bf8] sm:$0xff]  ;;  %v8859_v51 = vcombine.high %v1138_v55, %v1142_v44  ;;  %v8858_v58 = vcombine.low %v1138_v55, %v1142_v44  ;;  %v1198_v15 = vld [vmem:[%s9567_s22 + $0x1db0] sm:$0xff] }
 0x413   : > { %v8861_v52 = vcombine.high %v1139_v45, %v1143_v47  ;;  %v8860_v60 = vcombine.low %v1139_v45, %v1143_v47  ;;  %v8915_v55 = vcombine.high %v1194_v38, %v1198_v15  ;;  %v1202_v45 = vld [vmem:[%s9567_s22 + $0x1dd0] sm:$0xff] }
 0x414   : > { %7407 = vmatpush1.bf16.msra.mxu0 %v8794_v54  ;;  %7735 = vmatpush1.bf16.msra.mxu1 %v8796_v39  ;;  %v1146_v54 = vld [vmem:[%s9567_s22 + $0x1c10] sm:$0xff] }
 0x415   : > { %7408 = vmatprep.subr.bf16.mxu0 %v8803_v56  ;;  %7736 = vmatprep.subr.bf16.mxu1 %v8805_v36  ;;  %v1150_v39 = vld [vmem:[%s9567_s22 + $0x1c30] sm:$0xff]  ;;  %v1147_v56 = vld [vmem:[%s9567_s22 + $0x1c18] sm:$0xff] }
 0x416   : > { %v1151_v36 = vld [vmem:[%s9567_s22 + $0x1c38] sm:$0xff]  ;;  %v8867_v61 = vcombine.high %v1146_v54, %v1150_v39  ;;  %v8866_v25 = vcombine.low %v1146_v54, %v1150_v39  ;;  %v1206_v47 = vld [vmem:[%s9567_s22 + $0x1df0] sm:$0xff] }
 0x417   : > { %v8869_v62 = vcombine.high %v1147_v56, %v1151_v36  ;;  %v8868_v3 = vcombine.low %v1147_v56, %v1151_v36  ;;  %v8923_v54 = vcombine.high %v1202_v45, %v1206_v47  ;;  %v1210_v56 = vld [vmem:[%s9567_s22 + $0x1e10] sm:$0xff] }
 0x418   : > { %7409 = vmatpush1.bf16.msra.mxu0 %v8802_v16  ;;  %7737 = vmatpush1.bf16.msra.mxu1 %v8804_v12  ;;  %v1154_v16 = vld [vmem:[%s9567_s22 + $0x1c50] sm:$0xff] }
 0x419   : > { %7410 = vmatprep.subr.bf16.mxu0 %v8811_v63  ;;  %7738 = vmatprep.subr.bf16.mxu1 %v8813_v1  ;;  %v1158_v12 = vld [vmem:[%s9567_s22 + $0x1c70] sm:$0xff]  ;;  %v1155_v63 = vld [vmem:[%s9567_s22 + $0x1c58] sm:$0xff] }
 0x41a   : > { %v1159_v1 = vld [vmem:[%s9567_s22 + $0x1c78] sm:$0xff]  ;;  %v8875_v4 = vcombine.high %v1154_v16, %v1158_v12  ;;  %v8874_v46 = vcombine.low %v1154_v16, %v1158_v12  ;;  %v1214_v36 = vld [vmem:[%s9567_s22 + $0x1e30] sm:$0xff] }
 0x41b   : > { %v8877_v5 = vcombine.high %v1155_v63, %v1159_v1  ;;  %v8876_v8 = vcombine.low %v1155_v63, %v1159_v1  ;;  %v8931_v16 = vcombine.high %v1210_v56, %v1214_v36  ;;  %v1218_v63 = vld [vmem:[%s9567_s22 + $0x1e50] sm:$0xff] }
 0x41c   : > { %7411 = vmatpush1.bf16.msra.mxu0 %v8810_v6  ;;  %7739 = vmatpush1.bf16.msra.mxu1 %v8812_v59  ;;  %v1162_v6 = vld [vmem:[%s9567_s22 + $0x1c90] sm:$0xff] }
 0x41d   : > { %7412 = vmatprep.subr.bf16.mxu0 %v8819_v7  ;;  %7740 = vmatprep.subr.bf16.mxu1 %v8821_v53  ;;  %v1166_v59 = vld [vmem:[%s9567_s22 + $0x1cb0] sm:$0xff]  ;;  %v1163_v7 = vld [vmem:[%s9567_s22 + $0x1c98] sm:$0xff] }
 0x41e   : > { %v1167_v53 = vld [vmem:[%s9567_s22 + $0x1cb8] sm:$0xff]  ;;  %v8883_v24 = vcombine.high %v1162_v6, %v1166_v59  ;;  %v1222_v1 = vld [vmem:[%s9567_s22 + $0x1e70] sm:$0xff] }
 0x41f   : > { %v8885_v9 = vcombine.high %v1163_v7, %v1167_v53  ;;  %v8884_v17 = vcombine.low %v1163_v7, %v1167_v53  ;;  %v1226_v7 = vld [vmem:[%s9567_s22 + $0x1e90] sm:$0xff] }
 0x420   : > { %7413 = vmatpush1.bf16.msra.mxu0 %v8818_v10  ;;  %7741 = vmatpush1.bf16.msra.mxu1 %v8820_v11  ;;  %v1170_v10 = vld [vmem:[%s9567_s22 + $0x1cd0] sm:$0xff] }
 0x421   : > { %7414 = vmatprep.subr.bf16.mxu0 %v8827_v13  ;;  %7742 = vmatprep.subr.bf16.mxu1 %v8829_v14  ;;  %v1174_v11 = vld [vmem:[%s9567_s22 + $0x1cf0] sm:$0xff]  ;;  %v1171_v13 = vld [vmem:[%s9567_s22 + $0x1cd8] sm:$0xff] }
 0x422   : > { %v1175_v14 = vld [vmem:[%s9567_s22 + $0x1cf8] sm:$0xff]  ;;  %v8891_v19 = vcombine.high %v1170_v10, %v1174_v11  ;;  %v1230_v53 = vld [vmem:[%s9567_s22 + $0x1eb0] sm:$0xff] }
 0x423   : > { %v8893_v18 = vcombine.high %v1171_v13, %v1175_v14 }
 0x424   : > { %7415 = vmatpush1.bf16.msra.mxu0 %v8826_v23  ;;  %7743 = vmatpush1.bf16.msra.mxu1 %v8828_v26  ;;  %v1182_v23 = vld [vmem:[%s9567_s22 + $0x1d30] sm:$0xff]  ;;  %v1179_v26 = vld [vmem:[%s9567_s22 + $0x1d18] sm:$0xff] }
 0x425   : > { %7416 = vmatprep.subr.bf16.mxu0 %v8835_v27  ;;  %7744 = vmatprep.subr.bf16.mxu1 %v8837_v28  ;;  %v1183_v27 = vld [vmem:[%s9567_s22 + $0x1d38] sm:$0xff]  ;;  %v8890_v28 = vcombine.low %v1170_v10, %v1174_v11  ;;  %v8899_v29 = vcombine.high %v1178_v21, %v1182_v23  ;;  %v8947_v10 = vcombine.high %v1226_v7, %v1230_v53 }
 0x426   : > { %v8901_v30 = vcombine.high %v1179_v26, %v1183_v27 }
 0x428   : > { %7417 = vmatpush1.bf16.msra.mxu0 %v8834_v32  ;;  %7745 = vmatpush1.bf16.msra.mxu1 %v8836_v33  ;;  %v1187_v32 = vld [vmem:[%s9567_s22 + $0x1d58] sm:$0xff] }
 0x429   : > { %7418 = vmatprep.subr.bf16.mxu0 %v8843_v34  ;;  %7746 = vmatprep.subr.bf16.mxu1 %v8845_v57  ;;  %v1191_v33 = vld [vmem:[%s9567_s22 + $0x1d78] sm:$0xff]  ;;  %v8898_v34 = vcombine.low %v1178_v21, %v1182_v23  ;;  %v8900_v57 = vcombine.low %v1179_v26, %v1183_v27  ;;  %v1242_v26 = vld [vmem:[%s9567_s22 + $0x1f10] sm:$0xff] }
 0x42a   : > { %v8909_v37 = vcombine.high %v1187_v32, %v1191_v33  ;;  %v1246_v27 = vld [vmem:[%s9567_s22 + $0x1f30] sm:$0xff] }
 0x42c   : > { %7419 = vmatpush1.bf16.msra.mxu0 %v8842_v40  ;;  %7747 = vmatpush1.bf16.msra.mxu1 %v8844_v41  ;;  %v1195_v40 = vld [vmem:[%s9567_s22 + $0x1d98] sm:$0xff] }
 0x42d   : > { %7420 = vmatprep.subr.bf16.mxu0 %v8851_v42  ;;  %7748 = vmatprep.subr.bf16.mxu1 %v8853_v43  ;;  %v1199_v41 = vld [vmem:[%s9567_s22 + $0x1db8] sm:$0xff]  ;;  %v8906_v42 = vcombine.low %v1186_v22, %v1190_v31  ;;  %v8908_v43 = vcombine.low %v1187_v32, %v1191_v33  ;;  %v8963_v22 = vcombine.high %v1242_v26, %v1246_v27  ;;  %v1250_v32 = vld [vmem:[%s9567_s22 + $0x1f50] sm:$0xff] }
 0x42e   : > { %v8917_v44 = vcombine.high %v1195_v40, %v1199_v41  ;;  %v1254_v33 = vld [vmem:[%s9567_s22 + $0x1f70] sm:$0xff] }
 0x430   : > { %7421 = vmatpush1.bf16.msra.mxu0 %v8850_v48  ;;  %7749 = vmatpush1.bf16.msra.mxu1 %v8852_v50  ;;  %v1203_v48 = vld [vmem:[%s9567_s22 + $0x1dd8] sm:$0xff] }
 0x431   : > { %7422 = vmatprep.subr.bf16.mxu0 %v8859_v51  ;;  %7750 = vmatprep.subr.bf16.mxu1 %v8861_v52  ;;  %v1207_v50 = vld [vmem:[%s9567_s22 + $0x1df8] sm:$0xff]  ;;  %v8914_v51 = vcombine.low %v1194_v38, %v1198_v15  ;;  %v8916_v52 = vcombine.low %v1195_v40, %v1199_v41  ;;  %v8971_v38 = vcombine.high %v1250_v32, %v1254_v33  ;;  %v1258_v40 = vld [vmem:[%s9567_s22 + $0x1f90] sm:$0xff] }
 0x432   : > { %v8925_v39 = vcombine.high %v1203_v48, %v1207_v50  ;;  %v1262_v41 = vld [vmem:[%s9567_s22 + $0x1fb0] sm:$0xff] }
 0x434   : > { %7423 = vmatpush1.bf16.msra.mxu0 %v8858_v58  ;;  %7751 = vmatpush1.bf16.msra.mxu1 %v8860_v60  ;;  %v1211_v58 = vld [vmem:[%s9567_s22 + $0x1e18] sm:$0xff] }
 0x435   : > { %7433 = vmatprep.subr.bf16.mxu0 %v8867_v61  ;;  %7761 = vmatprep.subr.bf16.mxu1 %v8869_v62  ;;  %v1215_v60 = vld [vmem:[%s9567_s22 + $0x1e38] sm:$0xff]  ;;  %v8922_v61 = vcombine.low %v1202_v45, %v1206_v47  ;;  %v8924_v62 = vcombine.low %v1203_v48, %v1207_v50  ;;  %v8979_v45 = vcombine.high %v1258_v40, %v1262_v41  ;;  %v1266_v48 = vld [vmem:[%s9567_s22 + $0x1fd0] sm:$0xff] }
 0x436   : > { %v8933_v12 = vcombine.high %v1211_v58, %v1215_v60  ;;  %v1270_v50 = vld [vmem:[%s9567_s22 + $0x1ff0] sm:$0xff] }
 0x437   : > { %7425 = vmatmul.mubr.bf16.vlgmr.msra.gmra.mrb[4].mxu0 %v10121_v20  ;;  %7753 = vmatmul.mubr.bf16.vlgmr.msra.gmra.mrb[4].mxu1 %v10121_v20  ;;  %v8882_v20 = vcombine.low %v1162_v6, %v1166_v59  ;;  %v8939_v6 = vcombine.high %v1218_v63, %v1222_v1 }
 0x438   : > { %7434 = vmatpush1.bf16.msra.mxu0 %v8866_v25  ;;  %7762 = vmatpush1.bf16.msra.mxu1 %v8868_v3  ;;  %v1219_v25 = vld [vmem:[%s9567_s22 + $0x1e58] sm:$0xff] }
 0x439   : > { %7435 = vmatprep.subr.bf16.mxu0 %v8875_v4  ;;  %7763 = vmatprep.subr.bf16.mxu1 %v8877_v5  ;;  %v1223_v3 = vld [vmem:[%s9567_s22 + $0x1e78] sm:$0xff]  ;;  %v8930_v4 = vcombine.low %v1210_v56, %v1214_v36  ;;  %v8932_v5 = vcombine.low %v1211_v58, %v1215_v60  ;;  %v8987_v56 = vcombine.high %v1266_v48, %v1270_v50 }
 0x43a   : > { %7465 = vmatprep.mubr.bf16.mxu0 %v10131_v49  ;;  %7793 = vmatprep.mubr.bf16.mxu1 %v10131_v49  ;;  %v8892_v49 = vcombine.low %v1171_v13, %v1175_v14  ;;  %v8941_v59 = vcombine.high %v1219_v25, %v1223_v3  ;;  %v1234_v13 = vld [vmem:[%s9567_s22 + $0x1ed0] sm:$0xff]  ;;  %v8986_v58 = vcombine.low %v1266_v48, %v1270_v50 }
 0x43b   : > { %v1238_v14 = vld [vmem:[%s9567_s22 + $0x1ef0] sm:$0xff] }
 0x43c   : > { %7436 = vmatpush1.bf16.msra.mxu0 %v8874_v46  ;;  %7764 = vmatpush1.bf16.msra.mxu1 %v8876_v8  ;;  %v1227_v46 = vld [vmem:[%s9567_s22 + $0x1e98] sm:$0xff]  ;;  %v8955_v21 = vcombine.high %v1234_v13, %v1238_v14 }
 0x43d   : > { %7437 = vmatprep.subr.bf16.mxu0 %v8883_v24  ;;  %7765 = vmatprep.subr.bf16.mxu1 %v8885_v9  ;;  %v1231_v8 = vld [vmem:[%s9567_s22 + $0x1eb8] sm:$0xff]  ;;  %v8938_v24 = vcombine.low %v1218_v63, %v1222_v1  ;;  %v8940_v9 = vcombine.low %v1219_v25, %v1223_v3  ;;  %v9199_v63 = vld [vmem:[%s10431_s27] sm:$0xff] }
 0x43e   : > { %v8949_v11 = vcombine.high %v1227_v46, %v1231_v8 }
 0x440   : > { %7438 = vmatpush1.bf16.msra.mxu0 %v8882_v20  ;;  %7766 = vmatpush1.bf16.msra.mxu1 %v8884_v17  ;;  %v1235_v20 = vld [vmem:[%s9567_s22 + $0x1ed8] sm:$0xff] }
 0x441   : > { %7439 = vmatprep.subr.bf16.mxu0 %v8891_v19  ;;  %7767 = vmatprep.subr.bf16.mxu1 %v8893_v18  ;;  %v1239_v17 = vld [vmem:[%s9567_s22 + $0x1ef8] sm:$0xff]  ;;  %v8946_v19 = vcombine.low %v1226_v7, %v1230_v53  ;;  %v8948_v18 = vcombine.low %v1227_v46, %v1231_v8 }
 0x442   : > { %v8957_v23 = vcombine.high %v1235_v20, %v1239_v17 }
 0x444   : > { %7440 = vmatpush1.bf16.msra.mxu0 %v8890_v28  ;;  %7768 = vmatpush1.bf16.msra.mxu1 %v8892_v49  ;;  %v1243_v28 = vld [vmem:[%s9567_s22 + $0x1f18] sm:$0xff] }
 0x445   : > { %7441 = vmatprep.subr.bf16.mxu0 %v8899_v29  ;;  %7769 = vmatprep.subr.bf16.mxu1 %v8901_v30  ;;  %v1247_v49 = vld [vmem:[%s9567_s22 + $0x1f38] sm:$0xff]  ;;  %v8954_v29 = vcombine.low %v1234_v13, %v1238_v14  ;;  %v8956_v30 = vcombine.low %v1235_v20, %v1239_v17 }
 0x446   : > { %v8965_v31 = vcombine.high %v1243_v28, %v1247_v49 }
 0x448   : > { %7442 = vmatpush1.bf16.msra.mxu0 %v8898_v34  ;;  %7770 = vmatpush1.bf16.msra.mxu1 %v8900_v57  ;;  %v1251_v34 = vld [vmem:[%s9567_s22 + $0x1f58] sm:$0xff] }
 0x449   : > { %7443 = vmatprep.subr.bf16.mxu0 %v8907_v35  ;;  %7771 = vmatprep.subr.bf16.mxu1 %v8909_v37  ;;  %v1255_v57 = vld [vmem:[%s9567_s22 + $0x1f78] sm:$0xff]  ;;  %v8962_v35 = vcombine.low %v1242_v26, %v1246_v27  ;;  %v8964_v37 = vcombine.low %v1243_v28, %v1247_v49 }
 0x44a   : > { %v8973_v15 = vcombine.high %v1251_v34, %v1255_v57 }
 0x44c   : > { %7444 = vmatpush1.bf16.msra.mxu0 %v8906_v42  ;;  %7772 = vmatpush1.bf16.msra.mxu1 %v8908_v43  ;;  %v1259_v42 = vld [vmem:[%s9567_s22 + $0x1f98] sm:$0xff] }
 0x44d   : > { %7445 = vmatprep.subr.bf16.mxu0 %v8915_v55  ;;  %7773 = vmatprep.subr.bf16.mxu1 %v8917_v44  ;;  %v1263_v43 = vld [vmem:[%s9567_s22 + $0x1fb8] sm:$0xff]  ;;  %v8970_v55 = vcombine.low %v1250_v32, %v1254_v33  ;;  %v8972_v44 = vcombine.low %v1251_v34, %v1255_v57 }
 0x44e   : > { %v8981_v47 = vcombine.high %v1259_v42, %v1263_v43 }
 0x450   : > { %7446 = vmatpush1.bf16.msra.mxu0 %v8914_v51  ;;  %7774 = vmatpush1.bf16.msra.mxu1 %v8916_v52  ;;  %v1267_v51 = vld [vmem:[%s9567_s22 + $0x1fd8] sm:$0xff] }
 0x451   : > { %7447 = vmatprep.subr.bf16.mxu0 %v8923_v54  ;;  %7775 = vmatprep.subr.bf16.mxu1 %v8925_v39  ;;  %v1271_v52 = vld [vmem:[%s9567_s22 + $0x1ff8] sm:$0xff]  ;;  %v8978_v54 = vcombine.low %v1258_v40, %v1262_v41  ;;  %v8980_v39 = vcombine.low %v1259_v42, %v1263_v43 }
 0x452   : > { %v8989_v36 = vcombine.high %v1267_v51, %v1271_v52  ;;  %v8988_v60 = vcombine.low %v1267_v51, %v1271_v52 }
 0x454   : > { %7448 = vmatpush1.bf16.msra.mxu0 %v8922_v61  ;;  %7776 = vmatpush1.bf16.msra.mxu1 %v8924_v62  ;;  %v1292_v61 = vsub.s32 4, %v10424_v2  ;;  %v1300_v62 = vsub.s32 6, %v10424_v2 }
 0x455   : > { %7449 = vmatprep.subr.bf16.mxu0 %v8931_v16  ;;  %7777 = vmatprep.subr.bf16.mxu1 %v8933_v12  ;;  %v1296_v16 = vsub.s32 5, %v10424_v2  ;;  %v1304_v12 = vsub.s32 7, %v10424_v2 }
 0x456   : > { %v1293_v1 = vrot.slane %v9199_v63, %v1292_v61  ;;  %v1301_v25 = vrot.slane %v9199_v63, %v1300_v62 }
 0x457   : > { %v1297_v3 = vrot.slane %v9199_v63, %v1296_v16 }
 0x458   : > { %7450 = vmatpush1.bf16.msra.mxu0 %v8930_v4  ;;  %7778 = vmatpush1.bf16.msra.mxu1 %v8932_v5  ;;  %v1305_v4 = vrot.slane %v9199_v63, %v1304_v12 }
 0x459   : > { %7451 = vmatprep.subr.bf16.mxu0 %v8939_v6  ;;  %7779 = vmatprep.subr.bf16.mxu1 %v8941_v59 }
 0x45c   : > { %7452 = vmatpush1.bf16.msra.mxu0 %v8938_v24  ;;  %7780 = vmatpush1.bf16.msra.mxu1 %v8940_v9 }
 0x45d   : > { %7453 = vmatprep.subr.bf16.mxu0 %v8947_v10  ;;  %7781 = vmatprep.subr.bf16.mxu1 %v8949_v11 }
 0x460   : > { %7454 = vmatpush1.bf16.msra.mxu0 %v8946_v19  ;;  %7782 = vmatpush1.bf16.msra.mxu1 %v8948_v18 }
 0x461   : > { %7455 = vmatprep.subr.bf16.mxu0 %v8955_v21  ;;  %7783 = vmatprep.subr.bf16.mxu1 %v8957_v23 }
 0x464   : > { %7456 = vmatpush1.bf16.msra.mxu0 %v8954_v29  ;;  %7784 = vmatpush1.bf16.msra.mxu1 %v8956_v30 }
 0x465   : > { %7457 = vmatprep.subr.bf16.mxu0 %v8963_v22  ;;  %7785 = vmatprep.subr.bf16.mxu1 %v8965_v31 }
 0x468   : > { %7458 = vmatpush1.bf16.msra.mxu0 %v8962_v35  ;;  %7786 = vmatpush1.bf16.msra.mxu1 %v8964_v37 }
 0x469   : > { %7459 = vmatprep.subr.bf16.mxu0 %v8971_v38  ;;  %7787 = vmatprep.subr.bf16.mxu1 %v8973_v15 }
 0x46c   : > { %7460 = vmatpush1.bf16.msra.mxu0 %v8970_v55  ;;  %7788 = vmatpush1.bf16.msra.mxu1 %v8972_v44 }
 0x46d   : > { %7461 = vmatprep.subr.bf16.mxu0 %v8979_v45  ;;  %7789 = vmatprep.subr.bf16.mxu1 %v8981_v47 }
 0x470   : > { %7462 = vmatpush1.bf16.msra.mxu0 %v8978_v54  ;;  %7790 = vmatpush1.bf16.msra.mxu1 %v8980_v39 }
 0x471   : > { %7463 = vmatprep.subr.bf16.mxu0 %v8987_v56  ;;  %7791 = vmatprep.subr.bf16.mxu1 %v8989_v36 }
 0x474   : > { %7464 = vmatpush1.bf16.msra.mxu0 %v8986_v58  ;;  %7792 = vmatpush1.bf16.msra.mxu1 %v8988_v60 }
 0x477   : > { %7466 = vmatmul.mubr.bf16.vlgmr.msra.gmra.mrb[4].mxu0 %v10199_v0  ;;  %7794 = vmatmul.mubr.bf16.vlgmr.msra.gmra.mrb[4].mxu1 %v10199_v0 }
 0x54a   : > { %v7467_v5 = vpop.f32.mrb[4].mxu0  ;;  %v7795_v59 = vpop.f32.mrb[4].mxu1 }
 0x54b   : > { %v9002_v6 = vadd.f32 %v7467_v5, %v1293_v1  ;;  %v7469_v0 = vpop.f32.mrb[5].mxu0  ;;  %v9004_v7 = vadd.f32 %v7795_v59, %v1301_v25  ;;  %v7797_v46 = vpop.f32.mrb[5].mxu1 }
 0x54c   : > { %v9003_v53 = vadd.f32 %v7469_v0, %v1297_v3  ;;  %v7471_v8 = vpop.f32.mrb[6].mxu0  ;;  %v9005_v24 = vadd.f32 %v7797_v46, %v1305_v4  ;;  %v7799_v9 = vpop.f32.mrb[6].mxu1 }
 0x54d   : > { %v7806_v2 = vmax.f32 %v9002_v6, 0.0  ;;  %v7472_v10 = vpop.f32.mrb[7].mxu0  ;;  %v7808_v11 = vmax.f32 %v9004_v7, 0.0  ;;  %v7800_v14 = vpop.f32.mrb[7].mxu1 }
 0x54e   : > { %v7807_v13 = vmax.f32 %v9003_v53, 0.0  ;;  %v7809_v20 = vmax.f32 %v9005_v24, 0.0 }
 0x54f   : > { %7814 = vst [vmem:[%s10450_s10 + $0x20] sm:$0xff] %v7806_v2  ;;  %7816 = vst [vmem:[%s10450_s10 + $0x30] sm:$0xff] %v7808_v11 }
 0x550   : > { %7815 = vst [vmem:[%s10450_s10 + $0x28] sm:$0xff] %v7807_v13  ;;  %7817 = vst [vmem:[%s10450_s10 + $0x38] sm:$0xff] %v7809_v20 }
 0x551   : > { %9301 = shalt.err (!%p9298_p1)
}
 0x552   : > { %s9302_s17 = scalar_lea.hbm %s10771_s5, 1024  ;;  %s9306_s21 = scalar_lea.hbm %s10820_s3, 4096 }
 0x553   : > { %p9303_p5 = scmp.ne.s32.totalorder %s10771_s5, %s9302_s17  ;;  %p9307_p6 = scmp.lt.u32.totalorder %s10771_s5, %s10820_s3 }
 0x554   : > { %p9308_p8 = scmp.lt.u32.totalorder %s9306_s21, %s9302_s17  ;;  %p9310_p11 = scmp.lt.u32.totalorder %s9302_s17, %s10771_s5 }
 0x555   : > { %p9304_p4 = pnand %p9303_p5, %p10841_p3 }
 0x556   : > { %p9309_p13 = por %p9308_p8, %p9307_p6 }
 0x557   : > { %p9305_p2 = pneg %p9304_p4 }
 0x558   : > { %p9311_p0 = por %p9310_p11, %p9309_p13 }
 0x55a   : > { %p9312_p10 = pnand %p9311_p0, %p9305_p2 }
 0x55c   : > { %9315 = shalt.err (!%p9312_p10)
}
 0x55d   : > { %9126 = dma.vmem_to_hbm [thread:$0]  (%p10841_p3), %s10773_s23, 1024, %s10771_s5, %s7819_s24  }
 0x55e PF: > { %p9146_p12 = scmp.ge.s32.totalorder %s9358_s15, 2  ;;  %s7845_s27 = sand.u32 1, %s9346_s12  }
 0x55f   : > { %p10842_p9 = scmp.ne.s32.totalorder %s10831_s28, 0  ;;  %s7846_s4 = scalar_lea.sflag [#allocation4], %s7845_s27 }
 0x561   : > { %p9140_p7 = pnand %p9146_p12, %p10842_p9 }
 0x563   : > { %9341 = dma.done.wait (!%p9140_p7), %s7846_s4, 1024  }
 0x564   : > { %9343 = vsyncadd (!%p9140_p7), %s7846_s4, 4294966272  ;;  %p17_p1 = scmp.ge.s32.totalorder %s9408_s16, 6   ;;  %s10843_s12 = smov %s9350_s13 }
 0x565   : > { %s10844_s13 = smov %s9354_s14  ;;  %s10845_s14 = smov %s9418_s19 }
 0x566   : > { %s10846_s15 = smov %s9408_s16  ;;  %19 = sbr.rel (!%p17_p1) target bundleno = 6 (0x6), region = 93 }
 0x56d   :  { %7851 = vsyncpa [#allocation3], 1 }
 0x56e   :  { %7853 = vsyncpa [#allocation3 + $0x1], 1 }
 0x56f   :  { %7854 = vsyncpa [#allocation6], 1 }
 0x570   :  { %7856 = vsyncpa [#allocation6 + $0x1], 1 }
 0x571   :  { %7857 = vsyncpa [#allocation4], 1 }
 0x572   :  { %7859 = vsyncpa [#allocation4 + $0x1], 1 }

</bundles_post_ra>
